<compile_context>
chip_gen: v7x
topology: tpu7x:2x2x1
jax: 0.10.0
libtpu: 0.0.40
codegen_flags: <defaults>
</compile_context>

<pallas_src>
import math

import jax
import jax.numpy as jnp
from jax.experimental import pallas as pl
from jax.experimental.pallas import tpu as pltpu

LN_EPS = 1e-5


class NeuralConfig:
    # Small, self-consistent version of the reference config.
    n_channels = 16
    n_cross_layers = 2
    n_self_layers = 0
    n_latents = [16, 16, 8]
    hidden_size = [32, 32, 64]
    n_heads = [4, 4]
    rope_theta = 10000.0
    embed_context = False
    embed_gate = False
    dropout = 0.5            # identity in this eval-mode forward


# ------------------------------ in-kernel helpers ------------------------------
def _layernorm(x, gamma, beta):
    mu = jnp.mean(x, axis=-1, keepdims=True)
    var = jnp.mean((x - mu) ** 2, axis=-1, keepdims=True)
    return (x - mu) * jax.lax.rsqrt(var + LN_EPS) * gamma + beta


def _make_encoder_kernel(layer_meta):
    """layer_meta: tuple of (L_in, h_in, H, hd, L_out, inter, h_out, r) per layer."""

    def kernel(*refs):
        o_ref = refs[-1]
        it = iter(refs[:-1])
        feat_ref = next(it)      # (1, T, C)
        mask_ref = next(it)      # (1, 1, T)
        lat0_ref = next(it)      # (L0, h0)  learned latents (same for every batch)
        wemb_ref = next(it)      # (C, h0)

        # embed_spikes (no bias); dropout is identity in eval mode.
        feats = jnp.dot(feat_ref[0], wemb_ref[...],
                        preferred_element_type=jnp.float32)            # (T, h0)
        neg = jnp.where(mask_ref[0] > 0.0, 0.0, -1e30)                  # (1, T)
        x = lat0_ref[...]                                               # (L0, h0)

        for (L_in, h_in, H, hd, L_out, inter, h_out, r) in layer_meta:
            cosk = next(it)[0]      # (T, h_in)   cos/sin pre-tiled across heads
            sink = next(it)[0]
            cosq = next(it)[...]    # (L_in, h_in)
            sinq = next(it)[...]
            rotP = next(it)[...]    # (h_in, h_in) block-diag rotate_half matrix
            g1 = next(it)[...]
            b1 = next(it)[...]
            wq = next(it)[...]
            wk = next(it)[...]
            wv = next(it)[...]
            wo = next(it)[...]
            g2 = next(it)[...]
            b2 = next(it)[...]
            wres = next(it)[...]
            wup = next(it)[...]
            wgate = next(it)[...]
            wdown = next(it)[...]
            sel = next(it)[...] if r > 1 else None   # (L_in, L_in) row-group select

            # Pre-norm; residual is added on the *normalized* latents (matches spec:
            # latents = ln1(latents); latents = latents + attention(latents, ...)).
            xl = _layernorm(x, g1, b1)             # (L_in, h_in)
            tl = _layernorm(feats, g1, b1)         # (T, h_in)

            q = jnp.dot(xl, wq, preferred_element_type=jnp.float32)
            k = jnp.dot(tl, wk, preferred_element_type=jnp.float32)
            v = jnp.dot(tl, wv, preferred_element_type=jnp.float32)

            # RoPE on full-width Q/K: rotate_half == right-multiply by rotP.
            q = q * cosq + jnp.dot(q, rotP, preferred_element_type=jnp.float32) * sinq
            k = k * cosk + jnp.dot(k, rotP, preferred_element_type=jnp.float32) * sink

            # Multi-head attention: static head loop, no rot-half / head concats.
            scale = 1.0 / math.sqrt(hd)
            attn = jnp.zeros((L_in, h_in), jnp.float32)
            for h in range(H):
                sl = slice(h * hd, (h + 1) * hd)
                s = jnp.dot(q[:, sl], k[:, sl].T,
                            preferred_element_type=jnp.float32) * scale + neg
                s = s - jnp.max(s, axis=-1, keepdims=True)
                p = jnp.exp(s)
                p = p * pl.reciprocal(jnp.sum(p, axis=-1, keepdims=True), approx=True)
                ctx = jnp.dot(p, v[:, sl], preferred_element_type=jnp.float32)  # (L, hd)
                # fold this head straight into the output projection
                attn = attn + jnp.dot(ctx, wo[sl, :],
                                      preferred_element_type=jnp.float32)
            a = xl + attn                                               # (L_in, h_in)

            # .view(B, L_out, inter): r consecutive rows become one wide row.
            if r == 1:
                y = a
            else:
                perm = jnp.dot(sel, a, preferred_element_type=jnp.float32)  # regrouped rows
                y = jnp.concatenate(
                    [perm[i * L_out:(i + 1) * L_out, :] for i in range(r)], axis=-1)

            # residual_projection(y) + MLP(ln2(y))   (gated SiLU, no bias)
            z = _layernorm(y, g2, b2)
            up = jnp.dot(z, wup, preferred_element_type=jnp.float32)
            gate = jnp.dot(z, wgate, preferred_element_type=jnp.float32)
            hidden = up * (gate * jax.nn.sigmoid(gate))
            x = (jnp.dot(y, wres, preferred_element_type=jnp.float32)
                 + jnp.dot(hidden, wdown, preferred_element_type=jnp.float32))

        o_ref[0] = x

    return kernel


# --------------------------------- JAX glue -----------------------------------
def get_cos_sin(dim, max_pos, base):
    inv_freq = 1.0 / base ** (jnp.arange(0, dim, 2, dtype=jnp.float32) / dim)
    t = jnp.arange(max_pos, dtype=jnp.float32)
    freqs = jnp.einsum("i,j->ij", t, inv_freq)
    emb = jnp.concatenate([freqs, freqs], axis=-1)
    return jnp.cos(emb), jnp.sin(emb)


def _rotate_half_matrix(h_in, hd):
    # u @ blk == rotate_half(u) per head; block-diagonal over heads.
    half = hd // 2
    idx = jnp.arange(half)
    blk = jnp.zeros((hd, hd), jnp.float32)
    blk = blk.at[idx + half, idx].set(-1.0)   # out col j (<half)  = -u[j+half]
    blk = blk.at[idx, idx + half].set(1.0)    # out col j (>=half) =  u[j-half]
    return jnp.kron(jnp.eye(h_in // hd, dtype=jnp.float32), blk)


def _row_group_select(L_in, L_out, r):
    # Stacked [E_0; ...; E_{r-1}] with E_i[j, j*r + i] = 1, so (sel @ a) groups the
    # rows so that part i (rows i*L_out:(i+1)*L_out) == a[i::r].
    mats = []
    for i in range(r):
        e = jnp.zeros((L_out, L_in), jnp.float32)
        e = e.at[jnp.arange(L_out), jnp.arange(L_out) * r + i].set(1.0)
        mats.append(e)
    return jnp.concatenate(mats, axis=0)      # (L_in, L_in)


def neural_encoder_forward(params, cfg, features, features_mask, features_timestamp,
                           block_idx, date_idx):
    # block_idx / date_idx unused (cfg.embed_context is False); dropout is identity.
    # TODO(synk): self-attention layers (n_self_layers > 0) are not wired into the
    # fused kernel; the reference config uses n_self_layers = 0.
    assert cfg.n_self_layers == 0
    B, T, C = features.shape
    max_lat = max(cfg.n_latents)
    n_layers = cfg.n_cross_layers + cfg.n_self_layers

    args, specs = [], []

    def add_batched(arr, block_shape):          # 3-D, one batch element per grid step
        args.append(arr)
        specs.append(pl.BlockSpec(block_shape, lambda b: (b, 0, 0)))

    def add_const(arr):                         # 2-D, same (whole-array) block each step
        args.append(arr)
        specs.append(pl.BlockSpec(arr.shape, lambda b: (0, 0)))

    add_batched(features.astype(jnp.float32), (1, T, C))
    add_batched(features_mask[:, None, :].astype(jnp.float32), (1, 1, T))
    add_const(params["latents"])
    add_const(params["w_embed"])

    layer_meta = []
    for idx in range(n_layers):
        L_in, L_out = cfg.n_latents[idx], cfg.n_latents[idx + 1]
        h_in, h_out = cfg.hidden_size[idx], cfg.hidden_size[idx + 1]
        H = cfg.n_heads[idx]
        hd = h_in // H
        assert L_in % L_out == 0, "fused view requires n_latents_in % n_latents_out == 0"
        r = L_in // L_out
        inter = r * h_in                         # == L_in * h_in // L_out
        layer_meta.append((L_in, h_in, H, hd, L_out, inter, h_out, r))

        cos_t, sin_t = get_cos_sin(hd, max_lat, cfg.rope_theta)
        lat_ts = (jnp.arange(L_in) * (max_lat - 1) / (L_in - 1)).astype(jnp.int32)
        p = params["layers"][idx]

        add_batched(jnp.tile(cos_t[features_timestamp], (1, 1, H)), (1, T, h_in))
        add_batched(jnp.tile(sin_t[features_timestamp], (1, 1, H)), (1, T, h_in))
        add_const(jnp.tile(cos_t[lat_ts], (1, H)))
        add_const(jnp.tile(sin_t[lat_ts], (1, H)))
        add_const(_rotate_half_matrix(h_in, hd))
        for name in ("ln1_g", "ln1_b", "wq", "wk", "wv", "wo",
                     "ln2_g", "ln2_b", "wres", "wup", "wgate", "wdown"):
            add_const(p[name])
        if r > 1:
            add_const(_row_group_select(L_in, L_out, r))

    L_last, h_last = cfg.n_latents[-1], cfg.hidden_size[-1]
    kernel = _make_encoder_kernel(tuple(layer_meta))
    return pl.pallas_call(
        kernel,
        out_shape=jax.ShapeDtypeStruct((B, L_last, h_last), jnp.float32),
        grid=(B,),
        in_specs=specs,
        out_specs=pl.BlockSpec((1, L_last, h_last), lambda b: (b, 0, 0)),
        compiler_params=pltpu.CompilerParams(
            dimension_semantics=("parallel",),
            vmem_limit_bytes=32 * 1024 * 1024),
    )(*args)


def init_params(cfg, key):
    keys = jax.random.split(key, 64)
    ki = iter(keys)

    def rnd(shape, scale=0.05):
        return scale * jax.random.normal(next(ki), shape, jnp.float32)

    params = {
        "latents": jax.random.normal(next(ki), (cfg.n_latents[0], cfg.hidden_size[0]),
                                     jnp.float32),
        "w_embed": rnd((cfg.n_channels, cfg.hidden_size[0])),
        "layers": [],
    }
    n_layers = cfg.n_cross_layers + cfg.n_self_layers
    for idx in range(n_layers):
        L_in, L_out = cfg.n_latents[idx], cfg.n_latents[idx + 1]
        h_in, h_out = cfg.hidden_size[idx], cfg.hidden_size[idx + 1]
        inter = L_in * h_in // L_out
        params["layers"].append({
            "ln1_g": jnp.ones((1, h_in), jnp.float32),
            "ln1_b": jnp.zeros((1, h_in), jnp.float32),
            "wq": rnd((h_in, h_in)), "wk": rnd((h_in, h_in)),
            "wv": rnd((h_in, h_in)), "wo": rnd((h_in, h_in)),
            "ln2_g": jnp.ones((1, inter), jnp.float32),
            "ln2_b": jnp.zeros((1, inter), jnp.float32),
            "wres": rnd((inter, h_out)),
            "wup": rnd((inter, 4 * inter)),
            "wgate": rnd((inter, 4 * inter)),
            "wdown": rnd((4 * inter, h_out)),
        })
    return params


if __name__ == "__main__":
    cfg = NeuralConfig()
    key = jax.random.PRNGKey(0)
    k0, k1, k2 = jax.random.split(key, 3)

    B, T = 2, 12
    params = init_params(cfg, k0)
    features = jax.random.normal(k1, (B, T, cfg.n_channels), jnp.float32)
    features_mask = jnp.ones((B, T), jnp.float32).at[1, -2:].set(0.0)
    features_timestamp = jax.random.randint(k2, (B, T), 0, max(cfg.n_latents), jnp.int32)
    block_idx = jnp.zeros((B,), jnp.int32)
    date_idx = jnp.zeros((B,), jnp.int32)

    run = jax.jit(lambda p, f, m, ts, bi, di:
                  neural_encoder_forward(p, cfg, f, m, ts, bi, di))
    out = run(params, features, features_mask, features_timestamp, block_idx, date_idx)
    out = jax.block_until_ready(out)
    assert out.shape == (B, cfg.n_latents[-1], cfg.hidden_size[-1]), out.shape
    assert bool(jnp.all(jnp.isfinite(out)))
    print("KERNEL_OK")
</pallas_src>

<mosaic_0001>
module attributes {stable_mosaic.version = 11 : i64} {
  func.func @kernel(%arg0: i32, %arg1: memref<1x12x16xf32, #tpu.memory_space<vmem>>, %arg2: memref<1x1x12xf32, #tpu.memory_space<vmem>>, %arg3: memref<16x32xf32, #tpu.memory_space<vmem>>, %arg4: memref<16x32xf32, #tpu.memory_space<vmem>>, %arg5: memref<1x12x32xf32, #tpu.memory_space<vmem>>, %arg6: memref<1x12x32xf32, #tpu.memory_space<vmem>>, %arg7: memref<16x32xf32, #tpu.memory_space<vmem>>, %arg8: memref<16x32xf32, #tpu.memory_space<vmem>>, %arg9: memref<32x32xf32, #tpu.memory_space<vmem>>, %arg10: memref<1x32xf32, #tpu.memory_space<vmem>>, %arg11: memref<1x32xf32, #tpu.memory_space<vmem>>, %arg12: memref<32x32xf32, #tpu.memory_space<vmem>>, %arg13: memref<32x32xf32, #tpu.memory_space<vmem>>, %arg14: memref<32x32xf32, #tpu.memory_space<vmem>>, %arg15: memref<32x32xf32, #tpu.memory_space<vmem>>, %arg16: memref<1x32xf32, #tpu.memory_space<vmem>>, %arg17: memref<1x32xf32, #tpu.memory_space<vmem>>, %arg18: memref<32x32xf32, #tpu.memory_space<vmem>>, %arg19: memref<32x128xf32, #tpu.memory_space<vmem>>, %arg20: memref<32x128xf32, #tpu.memory_space<vmem>>, %arg21: memref<128x32xf32, #tpu.memory_space<vmem>>, %arg22: memref<1x12x32xf32, #tpu.memory_space<vmem>>, %arg23: memref<1x12x32xf32, #tpu.memory_space<vmem>>, %arg24: memref<16x32xf32, #tpu.memory_space<vmem>>, %arg25: memref<16x32xf32, #tpu.memory_space<vmem>>, %arg26: memref<32x32xf32, #tpu.memory_space<vmem>>, %arg27: memref<1x32xf32, #tpu.memory_space<vmem>>, %arg28: memref<1x32xf32, #tpu.memory_space<vmem>>, %arg29: memref<32x32xf32, #tpu.memory_space<vmem>>, %arg30: memref<32x32xf32, #tpu.memory_space<vmem>>, %arg31: memref<32x32xf32, #tpu.memory_space<vmem>>, %arg32: memref<32x32xf32, #tpu.memory_space<vmem>>, %arg33: memref<1x64xf32, #tpu.memory_space<vmem>>, %arg34: memref<1x64xf32, #tpu.memory_space<vmem>>, %arg35: memref<64x64xf32, #tpu.memory_space<vmem>>, %arg36: memref<64x256xf32, #tpu.memory_space<vmem>>, %arg37: memref<64x256xf32, #tpu.memory_space<vmem>>, %arg38: memref<256x64xf32, #tpu.memory_space<vmem>>, %arg39: memref<16x16xf32, #tpu.memory_space<vmem>>, %arg40: memref<1x8x64xf32, #tpu.memory_space<vmem>>) attributes {dimension_semantics = [#tpu.dimension_semantics<parallel>], iteration_bounds = array<i64: 2>, scalar_prefetch = 0 : i64, scratch_operands = 0 : i64, tpu.core_type = #tpu.core_type<tc>, window_params = [{transform_indices = @transform_0, window_bounds = array<i64: 1, 12, 16>}, {transform_indices = @transform_1, window_bounds = array<i64: 1, 1, 12>}, {pipeline_mode = #tpu.pipeline_mode<synchronous>, transform_indices = @transform_2, window_bounds = array<i64: 16, 32>}, {pipeline_mode = #tpu.pipeline_mode<synchronous>, transform_indices = @transform_3, window_bounds = array<i64: 16, 32>}, {transform_indices = @transform_4, window_bounds = array<i64: 1, 12, 32>}, {transform_indices = @transform_5, window_bounds = array<i64: 1, 12, 32>}, {pipeline_mode = #tpu.pipeline_mode<synchronous>, transform_indices = @transform_6, window_bounds = array<i64: 16, 32>}, {pipeline_mode = #tpu.pipeline_mode<synchronous>, transform_indices = @transform_7, window_bounds = array<i64: 16, 32>}, {pipeline_mode = #tpu.pipeline_mode<synchronous>, transform_indices = @transform_8, window_bounds = array<i64: 32, 32>}, {pipeline_mode = #tpu.pipeline_mode<synchronous>, transform_indices = @transform_9, window_bounds = array<i64: 1, 32>}, {pipeline_mode = #tpu.pipeline_mode<synchronous>, transform_indices = @transform_10, window_bounds = array<i64: 1, 32>}, {pipeline_mode = #tpu.pipeline_mode<synchronous>, transform_indices = @transform_11, window_bounds = array<i64: 32, 32>}, {pipeline_mode = #tpu.pipeline_mode<synchronous>, transform_indices = @transform_12, window_bounds = array<i64: 32, 32>}, {pipeline_mode = #tpu.pipeline_mode<synchronous>, transform_indices = @transform_13, window_bounds = array<i64: 32, 32>}, {pipeline_mode = #tpu.pipeline_mode<synchronous>, transform_indices = @transform_14, window_bounds = array<i64: 32, 32>}, {pipeline_mode = #tpu.pipeline_mode<synchronous>, transform_indices = @transform_15, window_bounds = array<i64: 1, 32>}, {pipeline_mode = #tpu.pipeline_mode<synchronous>, transform_indices = @transform_16, window_bounds = array<i64: 1, 32>}, {pipeline_mode = #tpu.pipeline_mode<synchronous>, transform_indices = @transform_17, window_bounds = array<i64: 32, 32>}, {pipeline_mode = #tpu.pipeline_mode<synchronous>, transform_indices = @transform_18, window_bounds = array<i64: 32, 128>}, {pipeline_mode = #tpu.pipeline_mode<synchronous>, transform_indices = @transform_19, window_bounds = array<i64: 32, 128>}, {pipeline_mode = #tpu.pipeline_mode<synchronous>, transform_indices = @transform_20, window_bounds = array<i64: 128, 32>}, {transform_indices = @transform_21, window_bounds = array<i64: 1, 12, 32>}, {transform_indices = @transform_22, window_bounds = array<i64: 1, 12, 32>}, {pipeline_mode = #tpu.pipeline_mode<synchronous>, transform_indices = @transform_23, window_bounds = array<i64: 16, 32>}, {pipeline_mode = #tpu.pipeline_mode<synchronous>, transform_indices = @transform_24, window_bounds = array<i64: 16, 32>}, {pipeline_mode = #tpu.pipeline_mode<synchronous>, transform_indices = @transform_25, window_bounds = array<i64: 32, 32>}, {pipeline_mode = #tpu.pipeline_mode<synchronous>, transform_indices = @transform_26, window_bounds = array<i64: 1, 32>}, {pipeline_mode = #tpu.pipeline_mode<synchronous>, transform_indices = @transform_27, window_bounds = array<i64: 1, 32>}, {pipeline_mode = #tpu.pipeline_mode<synchronous>, transform_indices = @transform_28, window_bounds = array<i64: 32, 32>}, {pipeline_mode = #tpu.pipeline_mode<synchronous>, transform_indices = @transform_29, window_bounds = array<i64: 32, 32>}, {pipeline_mode = #tpu.pipeline_mode<synchronous>, transform_indices = @transform_30, window_bounds = array<i64: 32, 32>}, {pipeline_mode = #tpu.pipeline_mode<synchronous>, transform_indices = @transform_31, window_bounds = array<i64: 32, 32>}, {pipeline_mode = #tpu.pipeline_mode<synchronous>, transform_indices = @transform_32, window_bounds = array<i64: 1, 64>}, {pipeline_mode = #tpu.pipeline_mode<synchronous>, transform_indices = @transform_33, window_bounds = array<i64: 1, 64>}, {pipeline_mode = #tpu.pipeline_mode<synchronous>, transform_indices = @transform_34, window_bounds = array<i64: 64, 64>}, {pipeline_mode = #tpu.pipeline_mode<synchronous>, transform_indices = @transform_35, window_bounds = array<i64: 64, 256>}, {pipeline_mode = #tpu.pipeline_mode<synchronous>, transform_indices = @transform_36, window_bounds = array<i64: 64, 256>}, {pipeline_mode = #tpu.pipeline_mode<synchronous>, transform_indices = @transform_37, window_bounds = array<i64: 256, 64>}, {pipeline_mode = #tpu.pipeline_mode<synchronous>, transform_indices = @transform_38, window_bounds = array<i64: 16, 16>}, {transform_indices = @transform_39, window_bounds = array<i64: 1, 8, 64>}]} {
    %c0 = arith.constant 0 : index
    %c0_0 = arith.constant 0 : index
    %c0_1 = arith.constant 0 : index
    %0 = vector.load %arg1[%c0, %c0_0, %c0_1] : memref<1x12x16xf32, #tpu.memory_space<vmem>>, vector<1x12x16xf32>
    %1 = vector.shape_cast %0 : vector<1x12x16xf32> to vector<12x16xf32>
    %c0_2 = arith.constant 0 : index
    %c0_3 = arith.constant 0 : index
    %2 = vector.load %arg4[%c0_2, %c0_3] : memref<16x32xf32, #tpu.memory_space<vmem>>, vector<16x32xf32>
    %cst = arith.constant dense<0.000000e+00> : vector<12x32xf32>
    %3 = tpu.matmul %1, %2, %cst {dimension_numbers = #tpu.dot_dimension_numbers<[1], [0], [0], [1], [0, 0, 1, 1], [], []>} : vector<12x16xf32>, vector<16x32xf32>, vector<12x32xf32> -> vector<12x32xf32>
    %c0_4 = arith.constant 0 : index
    %c0_5 = arith.constant 0 : index
    %c0_6 = arith.constant 0 : index
    %4 = vector.load %arg2[%c0_4, %c0_5, %c0_6] : memref<1x1x12xf32, #tpu.memory_space<vmem>>, vector<1x1x12xf32>
    %5 = vector.shape_cast %4 : vector<1x1x12xf32> to vector<1x12xf32>
    %cst_7 = arith.constant 0.000000e+00 : f32
    %6 = vector.broadcast %cst_7 : f32 to vector<1x12xf32>
    %7 = arith.cmpf ogt, %5, %6 : vector<1x12xf32>
    %cst_8 = arith.constant 0.000000e+00 : f32
    %cst_9 = arith.constant -1.000000e+30 : f32
    %8 = vector.broadcast %cst_8 : f32 to vector<1x12xf32>
    %9 = vector.broadcast %cst_9 : f32 to vector<1x12xf32>
    %10 = arith.select %7, %8, %9 : vector<1x12xi1>, vector<1x12xf32>
    %c0_10 = arith.constant 0 : index
    %c0_11 = arith.constant 0 : index
    %11 = vector.load %arg3[%c0_10, %c0_11] : memref<16x32xf32, #tpu.memory_space<vmem>>, vector<16x32xf32>
    %c0_12 = arith.constant 0 : index
    %c0_13 = arith.constant 0 : index
    %c0_14 = arith.constant 0 : index
    %12 = vector.load %arg5[%c0_12, %c0_13, %c0_14] : memref<1x12x32xf32, #tpu.memory_space<vmem>>, vector<1x12x32xf32>
    %13 = vector.shape_cast %12 : vector<1x12x32xf32> to vector<12x32xf32>
    %c0_15 = arith.constant 0 : index
    %c0_16 = arith.constant 0 : index
    %c0_17 = arith.constant 0 : index
    %14 = vector.load %arg6[%c0_15, %c0_16, %c0_17] : memref<1x12x32xf32, #tpu.memory_space<vmem>>, vector<1x12x32xf32>
    %15 = vector.shape_cast %14 : vector<1x12x32xf32> to vector<12x32xf32>
    %c0_18 = arith.constant 0 : index
    %c0_19 = arith.constant 0 : index
    %16 = vector.load %arg7[%c0_18, %c0_19] : memref<16x32xf32, #tpu.memory_space<vmem>>, vector<16x32xf32>
    %c0_20 = arith.constant 0 : index
    %c0_21 = arith.constant 0 : index
    %17 = vector.load %arg8[%c0_20, %c0_21] : memref<16x32xf32, #tpu.memory_space<vmem>>, vector<16x32xf32>
    %c0_22 = arith.constant 0 : index
    %c0_23 = arith.constant 0 : index
    %18 = vector.load %arg9[%c0_22, %c0_23] : memref<32x32xf32, #tpu.memory_space<vmem>>, vector<32x32xf32>
    %c0_24 = arith.constant 0 : index
    %c0_25 = arith.constant 0 : index
    %19 = vector.load %arg10[%c0_24, %c0_25] : memref<1x32xf32, #tpu.memory_space<vmem>>, vector<1x32xf32>
    %c0_26 = arith.constant 0 : index
    %c0_27 = arith.constant 0 : index
    %20 = vector.load %arg11[%c0_26, %c0_27] : memref<1x32xf32, #tpu.memory_space<vmem>>, vector<1x32xf32>
    %c0_28 = arith.constant 0 : index
    %c0_29 = arith.constant 0 : index
    %21 = vector.load %arg12[%c0_28, %c0_29] : memref<32x32xf32, #tpu.memory_space<vmem>>, vector<32x32xf32>
    %c0_30 = arith.constant 0 : index
    %c0_31 = arith.constant 0 : index
    %22 = vector.load %arg13[%c0_30, %c0_31] : memref<32x32xf32, #tpu.memory_space<vmem>>, vector<32x32xf32>
    %c0_32 = arith.constant 0 : index
    %c0_33 = arith.constant 0 : index
    %23 = vector.load %arg14[%c0_32, %c0_33] : memref<32x32xf32, #tpu.memory_space<vmem>>, vector<32x32xf32>
    %c0_34 = arith.constant 0 : index
    %c0_35 = arith.constant 0 : index
    %24 = vector.load %arg15[%c0_34, %c0_35] : memref<32x32xf32, #tpu.memory_space<vmem>>, vector<32x32xf32>
    %c0_36 = arith.constant 0 : index
    %c0_37 = arith.constant 0 : index
    %25 = vector.load %arg16[%c0_36, %c0_37] : memref<1x32xf32, #tpu.memory_space<vmem>>, vector<1x32xf32>
    %c0_38 = arith.constant 0 : index
    %c0_39 = arith.constant 0 : index
    %26 = vector.load %arg17[%c0_38, %c0_39] : memref<1x32xf32, #tpu.memory_space<vmem>>, vector<1x32xf32>
    %c0_40 = arith.constant 0 : index
    %c0_41 = arith.constant 0 : index
    %27 = vector.load %arg18[%c0_40, %c0_41] : memref<32x32xf32, #tpu.memory_space<vmem>>, vector<32x32xf32>
    %c0_42 = arith.constant 0 : index
    %c0_43 = arith.constant 0 : index
    %28 = vector.load %arg19[%c0_42, %c0_43] : memref<32x128xf32, #tpu.memory_space<vmem>>, vector<32x128xf32>
    %c0_44 = arith.constant 0 : index
    %c0_45 = arith.constant 0 : index
    %29 = vector.load %arg20[%c0_44, %c0_45] : memref<32x128xf32, #tpu.memory_space<vmem>>, vector<32x128xf32>
    %c0_46 = arith.constant 0 : index
    %c0_47 = arith.constant 0 : index
    %30 = vector.load %arg21[%c0_46, %c0_47] : memref<128x32xf32, #tpu.memory_space<vmem>>, vector<128x32xf32>
    %cst_48 = arith.constant dense<0.000000e+00> : vector<16xf32>
    %31 = vector.multi_reduction <add>, %11, %cst_48 [1] : vector<16x32xf32> to vector<16xf32>
    %32 = vector.shape_cast %31 : vector<16xf32> to vector<16x1xf32>
    %cst_49 = arith.constant 3.200000e+01 : f32
    %33 = vector.broadcast %cst_49 : f32 to vector<16x1xf32>
    %34 = arith.divf %32, %33 : vector<16x1xf32>
    %35 = vector.broadcast %34 : vector<16x1xf32> to vector<16x32xf32>
    %36 = arith.subf %11, %35 : vector<16x32xf32>
    %37 = arith.mulf %36, %36 : vector<16x32xf32>
    %cst_50 = arith.constant dense<0.000000e+00> : vector<16xf32>
    %38 = vector.multi_reduction <add>, %37, %cst_50 [1] : vector<16x32xf32> to vector<16xf32>
    %39 = vector.shape_cast %38 : vector<16xf32> to vector<16x1xf32>
    %cst_51 = arith.constant 3.200000e+01 : f32
    %40 = vector.broadcast %cst_51 : f32 to vector<16x1xf32>
    %41 = arith.divf %39, %40 : vector<16x1xf32>
    %42 = vector.broadcast %34 : vector<16x1xf32> to vector<16x32xf32>
    %43 = arith.subf %11, %42 : vector<16x32xf32>
    %cst_52 = arith.constant 9.99999974E-6 : f32
    %44 = vector.broadcast %cst_52 : f32 to vector<16x1xf32>
    %45 = arith.addf %41, %44 : vector<16x1xf32>
    %46 = math.rsqrt %45 : vector<16x1xf32>
    %47 = vector.broadcast %46 : vector<16x1xf32> to vector<16x32xf32>
    %48 = arith.mulf %43, %47 : vector<16x32xf32>
    %49 = vector.broadcast %19 : vector<1x32xf32> to vector<16x32xf32>
    %50 = arith.mulf %48, %49 : vector<16x32xf32>
    %51 = vector.broadcast %20 : vector<1x32xf32> to vector<16x32xf32>
    %52 = arith.addf %50, %51 : vector<16x32xf32>
    %cst_53 = arith.constant dense<0.000000e+00> : vector<12xf32>
    %53 = vector.multi_reduction <add>, %3, %cst_53 [1] : vector<12x32xf32> to vector<12xf32>
    %54 = vector.shape_cast %53 : vector<12xf32> to vector<12x1xf32>
    %cst_54 = arith.constant 3.200000e+01 : f32
    %55 = vector.broadcast %cst_54 : f32 to vector<12x1xf32>
    %56 = arith.divf %54, %55 : vector<12x1xf32>
    %57 = vector.broadcast %56 : vector<12x1xf32> to vector<12x32xf32>
    %58 = arith.subf %3, %57 : vector<12x32xf32>
    %59 = arith.mulf %58, %58 : vector<12x32xf32>
    %cst_55 = arith.constant dense<0.000000e+00> : vector<12xf32>
    %60 = vector.multi_reduction <add>, %59, %cst_55 [1] : vector<12x32xf32> to vector<12xf32>
    %61 = vector.shape_cast %60 : vector<12xf32> to vector<12x1xf32>
    %cst_56 = arith.constant 3.200000e+01 : f32
    %62 = vector.broadcast %cst_56 : f32 to vector<12x1xf32>
    %63 = arith.divf %61, %62 : vector<12x1xf32>
    %64 = vector.broadcast %56 : vector<12x1xf32> to vector<12x32xf32>
    %65 = arith.subf %3, %64 : vector<12x32xf32>
    %cst_57 = arith.constant 9.99999974E-6 : f32
    %66 = vector.broadcast %cst_57 : f32 to vector<12x1xf32>
    %67 = arith.addf %63, %66 : vector<12x1xf32>
    %68 = math.rsqrt %67 : vector<12x1xf32>
    %69 = vector.broadcast %68 : vector<12x1xf32> to vector<12x32xf32>
    %70 = arith.mulf %65, %69 : vector<12x32xf32>
    %71 = vector.broadcast %19 : vector<1x32xf32> to vector<12x32xf32>
    %72 = arith.mulf %70, %71 : vector<12x32xf32>
    %73 = vector.broadcast %20 : vector<1x32xf32> to vector<12x32xf32>
    %74 = arith.addf %72, %73 : vector<12x32xf32>
    %cst_58 = arith.constant dense<0.000000e+00> : vector<16x32xf32>
    %75 = tpu.matmul %52, %21, %cst_58 {dimension_numbers = #tpu.dot_dimension_numbers<[1], [0], [0], [1], [0, 0, 1, 1], [], []>} : vector<16x32xf32>, vector<32x32xf32>, vector<16x32xf32> -> vector<16x32xf32>
    %cst_59 = arith.constant dense<0.000000e+00> : vector<12x32xf32>
    %76 = tpu.matmul %74, %22, %cst_59 {dimension_numbers = #tpu.dot_dimension_numbers<[1], [0], [0], [1], [0, 0, 1, 1], [], []>} : vector<12x32xf32>, vector<32x32xf32>, vector<12x32xf32> -> vector<12x32xf32>
    %cst_60 = arith.constant dense<0.000000e+00> : vector<12x32xf32>
    %77 = tpu.matmul %74, %23, %cst_60 {dimension_numbers = #tpu.dot_dimension_numbers<[1], [0], [0], [1], [0, 0, 1, 1], [], []>} : vector<12x32xf32>, vector<32x32xf32>, vector<12x32xf32> -> vector<12x32xf32>
    %78 = arith.mulf %75, %16 : vector<16x32xf32>
    %cst_61 = arith.constant dense<0.000000e+00> : vector<16x32xf32>
    %79 = tpu.matmul %75, %18, %cst_61 {dimension_numbers = #tpu.dot_dimension_numbers<[1], [0], [0], [1], [0, 0, 1, 1], [], []>} : vector<16x32xf32>, vector<32x32xf32>, vector<16x32xf32> -> vector<16x32xf32>
    %80 = arith.mulf %79, %17 : vector<16x32xf32>
    %81 = arith.addf %78, %80 : vector<16x32xf32>
    %82 = arith.mulf %76, %13 : vector<12x32xf32>
    %cst_62 = arith.constant dense<0.000000e+00> : vector<12x32xf32>
    %83 = tpu.matmul %76, %18, %cst_62 {dimension_numbers = #tpu.dot_dimension_numbers<[1], [0], [0], [1], [0, 0, 1, 1], [], []>} : vector<12x32xf32>, vector<32x32xf32>, vector<12x32xf32> -> vector<12x32xf32>
    %84 = arith.mulf %83, %15 : vector<12x32xf32>
    %85 = arith.addf %82, %84 : vector<12x32xf32>
    %cst_63 = arith.constant 0.000000e+00 : f32
    %86 = vector.broadcast %cst_63 : f32 to vector<16x32xf32>
    %87 = vector.extract_strided_slice %81 {offsets = [0, 0], sizes = [16, 8], strides = [1, 1]} : vector<16x32xf32> to vector<16x8xf32>
    %88 = vector.extract_strided_slice %85 {offsets = [0, 0], sizes = [12, 8], strides = [1, 1]} : vector<12x32xf32> to vector<12x8xf32>
    %89 = tpu.transpose %88, [1, 0] : vector<12x8xf32> -> vector<8x12xf32>
    %cst_64 = arith.constant dense<0.000000e+00> : vector<16x12xf32>
    %90 = tpu.matmul %87, %89, %cst_64 {dimension_numbers = #tpu.dot_dimension_numbers<[1], [0], [0], [1], [0, 0, 1, 1], [], []>} : vector<16x8xf32>, vector<8x12xf32>, vector<16x12xf32> -> vector<16x12xf32>
    %cst_65 = arith.constant 0.353553385 : f32
    %91 = vector.broadcast %cst_65 : f32 to vector<16x12xf32>
    %92 = arith.mulf %90, %91 : vector<16x12xf32>
    %93 = vector.broadcast %10 : vector<1x12xf32> to vector<16x12xf32>
    %94 = arith.addf %92, %93 : vector<16x12xf32>
    %cst_66 = arith.constant dense<0xFF800000> : vector<16xf32>
    %95 = vector.multi_reduction <maximumf>, %94, %cst_66 [1] : vector<16x12xf32> to vector<16xf32>
    %96 = vector.shape_cast %95 : vector<16xf32> to vector<16x1xf32>
    %97 = vector.broadcast %96 : vector<16x1xf32> to vector<16x12xf32>
    %98 = arith.subf %94, %97 : vector<16x12xf32>
    %99 = math.exp %98 : vector<16x12xf32>
    %cst_67 = arith.constant dense<0.000000e+00> : vector<16xf32>
    %100 = vector.multi_reduction <add>, %99, %cst_67 [1] : vector<16x12xf32> to vector<16xf32>
    %101 = vector.shape_cast %100 : vector<16xf32> to vector<16x1xf32>
    %102 = tpu.reciprocal %101 {approx = true} : vector<16x1xf32> -> vector<16x1xf32>
    %103 = vector.broadcast %102 : vector<16x1xf32> to vector<16x12xf32>
    %104 = arith.mulf %99, %103 : vector<16x12xf32>
    %105 = vector.extract_strided_slice %77 {offsets = [0, 0], sizes = [12, 8], strides = [1, 1]} : vector<12x32xf32> to vector<12x8xf32>
    %cst_68 = arith.constant dense<0.000000e+00> : vector<16x8xf32>
    %106 = tpu.matmul %104, %105, %cst_68 {dimension_numbers = #tpu.dot_dimension_numbers<[1], [0], [0], [1], [0, 0, 1, 1], [], []>} : vector<16x12xf32>, vector<12x8xf32>, vector<16x8xf32> -> vector<16x8xf32>
    %107 = vector.extract_strided_slice %24 {offsets = [0, 0], sizes = [8, 32], strides = [1, 1]} : vector<32x32xf32> to vector<8x32xf32>
    %cst_69 = arith.constant dense<0.000000e+00> : vector<16x32xf32>
    %108 = tpu.matmul %106, %107, %cst_69 {dimension_numbers = #tpu.dot_dimension_numbers<[1], [0], [0], [1], [0, 0, 1, 1], [], []>} : vector<16x8xf32>, vector<8x32xf32>, vector<16x32xf32> -> vector<16x32xf32>
    %109 = arith.addf %86, %108 : vector<16x32xf32>
    %110 = vector.extract_strided_slice %81 {offsets = [0, 8], sizes = [16, 8], strides = [1, 1]} : vector<16x32xf32> to vector<16x8xf32>
    %111 = vector.extract_strided_slice %85 {offsets = [0, 8], sizes = [12, 8], strides = [1, 1]} : vector<12x32xf32> to vector<12x8xf32>
    %112 = tpu.transpose %111, [1, 0] : vector<12x8xf32> -> vector<8x12xf32>
    %cst_70 = arith.constant dense<0.000000e+00> : vector<16x12xf32>
    %113 = tpu.matmul %110, %112, %cst_70 {dimension_numbers = #tpu.dot_dimension_numbers<[1], [0], [0], [1], [0, 0, 1, 1], [], []>} : vector<16x8xf32>, vector<8x12xf32>, vector<16x12xf32> -> vector<16x12xf32>
    %cst_71 = arith.constant 0.353553385 : f32
    %114 = vector.broadcast %cst_71 : f32 to vector<16x12xf32>
    %115 = arith.mulf %113, %114 : vector<16x12xf32>
    %116 = vector.broadcast %10 : vector<1x12xf32> to vector<16x12xf32>
    %117 = arith.addf %115, %116 : vector<16x12xf32>
    %cst_72 = arith.constant dense<0xFF800000> : vector<16xf32>
    %118 = vector.multi_reduction <maximumf>, %117, %cst_72 [1] : vector<16x12xf32> to vector<16xf32>
    %119 = vector.shape_cast %118 : vector<16xf32> to vector<16x1xf32>
    %120 = vector.broadcast %119 : vector<16x1xf32> to vector<16x12xf32>
    %121 = arith.subf %117, %120 : vector<16x12xf32>
    %122 = math.exp %121 : vector<16x12xf32>
    %cst_73 = arith.constant dense<0.000000e+00> : vector<16xf32>
    %123 = vector.multi_reduction <add>, %122, %cst_73 [1] : vector<16x12xf32> to vector<16xf32>
    %124 = vector.shape_cast %123 : vector<16xf32> to vector<16x1xf32>
    %125 = tpu.reciprocal %124 {approx = true} : vector<16x1xf32> -> vector<16x1xf32>
    %126 = vector.broadcast %125 : vector<16x1xf32> to vector<16x12xf32>
    %127 = arith.mulf %122, %126 : vector<16x12xf32>
    %128 = vector.extract_strided_slice %77 {offsets = [0, 8], sizes = [12, 8], strides = [1, 1]} : vector<12x32xf32> to vector<12x8xf32>
    %cst_74 = arith.constant dense<0.000000e+00> : vector<16x8xf32>
    %129 = tpu.matmul %127, %128, %cst_74 {dimension_numbers = #tpu.dot_dimension_numbers<[1], [0], [0], [1], [0, 0, 1, 1], [], []>} : vector<16x12xf32>, vector<12x8xf32>, vector<16x8xf32> -> vector<16x8xf32>
    %130 = vector.extract_strided_slice %24 {offsets = [8, 0], sizes = [8, 32], strides = [1, 1]} : vector<32x32xf32> to vector<8x32xf32>
    %cst_75 = arith.constant dense<0.000000e+00> : vector<16x32xf32>
    %131 = tpu.matmul %129, %130, %cst_75 {dimension_numbers = #tpu.dot_dimension_numbers<[1], [0], [0], [1], [0, 0, 1, 1], [], []>} : vector<16x8xf32>, vector<8x32xf32>, vector<16x32xf32> -> vector<16x32xf32>
    %132 = arith.addf %109, %131 : vector<16x32xf32>
    %133 = vector.extract_strided_slice %81 {offsets = [0, 16], sizes = [16, 8], strides = [1, 1]} : vector<16x32xf32> to vector<16x8xf32>
    %134 = vector.extract_strided_slice %85 {offsets = [0, 16], sizes = [12, 8], strides = [1, 1]} : vector<12x32xf32> to vector<12x8xf32>
    %135 = tpu.transpose %134, [1, 0] : vector<12x8xf32> -> vector<8x12xf32>
    %cst_76 = arith.constant dense<0.000000e+00> : vector<16x12xf32>
    %136 = tpu.matmul %133, %135, %cst_76 {dimension_numbers = #tpu.dot_dimension_numbers<[1], [0], [0], [1], [0, 0, 1, 1], [], []>} : vector<16x8xf32>, vector<8x12xf32>, vector<16x12xf32> -> vector<16x12xf32>
    %cst_77 = arith.constant 0.353553385 : f32
    %137 = vector.broadcast %cst_77 : f32 to vector<16x12xf32>
    %138 = arith.mulf %136, %137 : vector<16x12xf32>
    %139 = vector.broadcast %10 : vector<1x12xf32> to vector<16x12xf32>
    %140 = arith.addf %138, %139 : vector<16x12xf32>
    %cst_78 = arith.constant dense<0xFF800000> : vector<16xf32>
    %141 = vector.multi_reduction <maximumf>, %140, %cst_78 [1] : vector<16x12xf32> to vector<16xf32>
    %142 = vector.shape_cast %141 : vector<16xf32> to vector<16x1xf32>
    %143 = vector.broadcast %142 : vector<16x1xf32> to vector<16x12xf32>
    %144 = arith.subf %140, %143 : vector<16x12xf32>
    %145 = math.exp %144 : vector<16x12xf32>
    %cst_79 = arith.constant dense<0.000000e+00> : vector<16xf32>
    %146 = vector.multi_reduction <add>, %145, %cst_79 [1] : vector<16x12xf32> to vector<16xf32>
    %147 = vector.shape_cast %146 : vector<16xf32> to vector<16x1xf32>
    %148 = tpu.reciprocal %147 {approx = true} : vector<16x1xf32> -> vector<16x1xf32>
    %149 = vector.broadcast %148 : vector<16x1xf32> to vector<16x12xf32>
    %150 = arith.mulf %145, %149 : vector<16x12xf32>
    %151 = vector.extract_strided_slice %77 {offsets = [0, 16], sizes = [12, 8], strides = [1, 1]} : vector<12x32xf32> to vector<12x8xf32>
    %cst_80 = arith.constant dense<0.000000e+00> : vector<16x8xf32>
    %152 = tpu.matmul %150, %151, %cst_80 {dimension_numbers = #tpu.dot_dimension_numbers<[1], [0], [0], [1], [0, 0, 1, 1], [], []>} : vector<16x12xf32>, vector<12x8xf32>, vector<16x8xf32> -> vector<16x8xf32>
    %153 = vector.extract_strided_slice %24 {offsets = [16, 0], sizes = [8, 32], strides = [1, 1]} : vector<32x32xf32> to vector<8x32xf32>
    %cst_81 = arith.constant dense<0.000000e+00> : vector<16x32xf32>
    %154 = tpu.matmul %152, %153, %cst_81 {dimension_numbers = #tpu.dot_dimension_numbers<[1], [0], [0], [1], [0, 0, 1, 1], [], []>} : vector<16x8xf32>, vector<8x32xf32>, vector<16x32xf32> -> vector<16x32xf32>
    %155 = arith.addf %132, %154 : vector<16x32xf32>
    %156 = vector.extract_strided_slice %81 {offsets = [0, 24], sizes = [16, 8], strides = [1, 1]} : vector<16x32xf32> to vector<16x8xf32>
    %157 = vector.extract_strided_slice %85 {offsets = [0, 24], sizes = [12, 8], strides = [1, 1]} : vector<12x32xf32> to vector<12x8xf32>
    %158 = tpu.transpose %157, [1, 0] : vector<12x8xf32> -> vector<8x12xf32>
    %cst_82 = arith.constant dense<0.000000e+00> : vector<16x12xf32>
    %159 = tpu.matmul %156, %158, %cst_82 {dimension_numbers = #tpu.dot_dimension_numbers<[1], [0], [0], [1], [0, 0, 1, 1], [], []>} : vector<16x8xf32>, vector<8x12xf32>, vector<16x12xf32> -> vector<16x12xf32>
    %cst_83 = arith.constant 0.353553385 : f32
    %160 = vector.broadcast %cst_83 : f32 to vector<16x12xf32>
    %161 = arith.mulf %159, %160 : vector<16x12xf32>
    %162 = vector.broadcast %10 : vector<1x12xf32> to vector<16x12xf32>
    %163 = arith.addf %161, %162 : vector<16x12xf32>
    %cst_84 = arith.constant dense<0xFF800000> : vector<16xf32>
    %164 = vector.multi_reduction <maximumf>, %163, %cst_84 [1] : vector<16x12xf32> to vector<16xf32>
    %165 = vector.shape_cast %164 : vector<16xf32> to vector<16x1xf32>
    %166 = vector.broadcast %165 : vector<16x1xf32> to vector<16x12xf32>
    %167 = arith.subf %163, %166 : vector<16x12xf32>
    %168 = math.exp %167 : vector<16x12xf32>
    %cst_85 = arith.constant dense<0.000000e+00> : vector<16xf32>
    %169 = vector.multi_reduction <add>, %168, %cst_85 [1] : vector<16x12xf32> to vector<16xf32>
    %170 = vector.shape_cast %169 : vector<16xf32> to vector<16x1xf32>
    %171 = tpu.reciprocal %170 {approx = true} : vector<16x1xf32> -> vector<16x1xf32>
    %172 = vector.broadcast %171 : vector<16x1xf32> to vector<16x12xf32>
    %173 = arith.mulf %168, %172 : vector<16x12xf32>
    %174 = vector.extract_strided_slice %77 {offsets = [0, 24], sizes = [12, 8], strides = [1, 1]} : vector<12x32xf32> to vector<12x8xf32>
    %cst_86 = arith.constant dense<0.000000e+00> : vector<16x8xf32>
    %175 = tpu.matmul %173, %174, %cst_86 {dimension_numbers = #tpu.dot_dimension_numbers<[1], [0], [0], [1], [0, 0, 1, 1], [], []>} : vector<16x12xf32>, vector<12x8xf32>, vector<16x8xf32> -> vector<16x8xf32>
    %176 = vector.extract_strided_slice %24 {offsets = [24, 0], sizes = [8, 32], strides = [1, 1]} : vector<32x32xf32> to vector<8x32xf32>
    %cst_87 = arith.constant dense<0.000000e+00> : vector<16x32xf32>
    %177 = tpu.matmul %175, %176, %cst_87 {dimension_numbers = #tpu.dot_dimension_numbers<[1], [0], [0], [1], [0, 0, 1, 1], [], []>} : vector<16x8xf32>, vector<8x32xf32>, vector<16x32xf32> -> vector<16x32xf32>
    %178 = arith.addf %155, %177 : vector<16x32xf32>
    %179 = arith.addf %52, %178 : vector<16x32xf32>
    %cst_88 = arith.constant dense<0.000000e+00> : vector<16xf32>
    %180 = vector.multi_reduction <add>, %179, %cst_88 [1] : vector<16x32xf32> to vector<16xf32>
    %181 = vector.shape_cast %180 : vector<16xf32> to vector<16x1xf32>
    %cst_89 = arith.constant 3.200000e+01 : f32
    %182 = vector.broadcast %cst_89 : f32 to vector<16x1xf32>
    %183 = arith.divf %181, %182 : vector<16x1xf32>
    %184 = vector.broadcast %183 : vector<16x1xf32> to vector<16x32xf32>
    %185 = arith.subf %179, %184 : vector<16x32xf32>
    %186 = arith.mulf %185, %185 : vector<16x32xf32>
    %cst_90 = arith.constant dense<0.000000e+00> : vector<16xf32>
    %187 = vector.multi_reduction <add>, %186, %cst_90 [1] : vector<16x32xf32> to vector<16xf32>
    %188 = vector.shape_cast %187 : vector<16xf32> to vector<16x1xf32>
    %cst_91 = arith.constant 3.200000e+01 : f32
    %189 = vector.broadcast %cst_91 : f32 to vector<16x1xf32>
    %190 = arith.divf %188, %189 : vector<16x1xf32>
    %191 = vector.broadcast %183 : vector<16x1xf32> to vector<16x32xf32>
    %192 = arith.subf %179, %191 : vector<16x32xf32>
    %cst_92 = arith.constant 9.99999974E-6 : f32
    %193 = vector.broadcast %cst_92 : f32 to vector<16x1xf32>
    %194 = arith.addf %190, %193 : vector<16x1xf32>
    %195 = math.rsqrt %194 : vector<16x1xf32>
    %196 = vector.broadcast %195 : vector<16x1xf32> to vector<16x32xf32>
    %197 = arith.mulf %192, %196 : vector<16x32xf32>
    %198 = vector.broadcast %25 : vector<1x32xf32> to vector<16x32xf32>
    %199 = arith.mulf %197, %198 : vector<16x32xf32>
    %200 = vector.broadcast %26 : vector<1x32xf32> to vector<16x32xf32>
    %201 = arith.addf %199, %200 : vector<16x32xf32>
    %cst_93 = arith.constant dense<0.000000e+00> : vector<16x128xf32>
    %202 = tpu.matmul %201, %28, %cst_93 {dimension_numbers = #tpu.dot_dimension_numbers<[1], [0], [0], [1], [0, 0, 1, 1], [], []>} : vector<16x32xf32>, vector<32x128xf32>, vector<16x128xf32> -> vector<16x128xf32>
    %cst_94 = arith.constant dense<0.000000e+00> : vector<16x128xf32>
    %203 = tpu.matmul %201, %29, %cst_94 {dimension_numbers = #tpu.dot_dimension_numbers<[1], [0], [0], [1], [0, 0, 1, 1], [], []>} : vector<16x32xf32>, vector<32x128xf32>, vector<16x128xf32> -> vector<16x128xf32>
    %204 = arith.negf %203 : vector<16x128xf32>
    %205 = math.exp %204 : vector<16x128xf32>
    %cst_95 = arith.constant 1.000000e+00 : f32
    %206 = vector.broadcast %cst_95 : f32 to vector<16x128xf32>
    %207 = arith.addf %206, %205 : vector<16x128xf32>
    %208 = arith.divf %206, %207 : vector<16x128xf32>
    %209 = arith.mulf %203, %208 : vector<16x128xf32>
    %210 = arith.mulf %202, %209 : vector<16x128xf32>
    %cst_96 = arith.constant dense<0.000000e+00> : vector<16x32xf32>
    %211 = tpu.matmul %179, %27, %cst_96 {dimension_numbers = #tpu.dot_dimension_numbers<[1], [0], [0], [1], [0, 0, 1, 1], [], []>} : vector<16x32xf32>, vector<32x32xf32>, vector<16x32xf32> -> vector<16x32xf32>
    %cst_97 = arith.constant dense<0.000000e+00> : vector<16x32xf32>
    %212 = tpu.matmul %210, %30, %cst_97 {dimension_numbers = #tpu.dot_dimension_numbers<[1], [0], [0], [1], [0, 0, 1, 1], [], []>} : vector<16x128xf32>, vector<128x32xf32>, vector<16x32xf32> -> vector<16x32xf32>
    %213 = arith.addf %211, %212 : vector<16x32xf32>
    %c0_98 = arith.constant 0 : index
    %c0_99 = arith.constant 0 : index
    %c0_100 = arith.constant 0 : index
    %214 = vector.load %arg22[%c0_98, %c0_99, %c0_100] : memref<1x12x32xf32, #tpu.memory_space<vmem>>, vector<1x12x32xf32>
    %215 = vector.shape_cast %214 : vector<1x12x32xf32> to vector<12x32xf32>
    %c0_101 = arith.constant 0 : index
    %c0_102 = arith.constant 0 : index
    %c0_103 = arith.constant 0 : index
    %216 = vector.load %arg23[%c0_101, %c0_102, %c0_103] : memref<1x12x32xf32, #tpu.memory_space<vmem>>, vector<1x12x32xf32>
    %217 = vector.shape_cast %216 : vector<1x12x32xf32> to vector<12x32xf32>
    %c0_104 = arith.constant 0 : index
    %c0_105 = arith.constant 0 : index
    %218 = vector.load %arg24[%c0_104, %c0_105] : memref<16x32xf32, #tpu.memory_space<vmem>>, vector<16x32xf32>
    %c0_106 = arith.constant 0 : index
    %c0_107 = arith.constant 0 : index
    %219 = vector.load %arg25[%c0_106, %c0_107] : memref<16x32xf32, #tpu.memory_space<vmem>>, vector<16x32xf32>
    %c0_108 = arith.constant 0 : index
    %c0_109 = arith.constant 0 : index
    %220 = vector.load %arg26[%c0_108, %c0_109] : memref<32x32xf32, #tpu.memory_space<vmem>>, vector<32x32xf32>
    %c0_110 = arith.constant 0 : index
    %c0_111 = arith.constant 0 : index
    %221 = vector.load %arg27[%c0_110, %c0_111] : memref<1x32xf32, #tpu.memory_space<vmem>>, vector<1x32xf32>
    %c0_112 = arith.constant 0 : index
    %c0_113 = arith.constant 0 : index
    %222 = vector.load %arg28[%c0_112, %c0_113] : memref<1x32xf32, #tpu.memory_space<vmem>>, vector<1x32xf32>
    %c0_114 = arith.constant 0 : index
    %c0_115 = arith.constant 0 : index
    %223 = vector.load %arg29[%c0_114, %c0_115] : memref<32x32xf32, #tpu.memory_space<vmem>>, vector<32x32xf32>
    %c0_116 = arith.constant 0 : index
    %c0_117 = arith.constant 0 : index
    %224 = vector.load %arg30[%c0_116, %c0_117] : memref<32x32xf32, #tpu.memory_space<vmem>>, vector<32x32xf32>
    %c0_118 = arith.constant 0 : index
    %c0_119 = arith.constant 0 : index
    %225 = vector.load %arg31[%c0_118, %c0_119] : memref<32x32xf32, #tpu.memory_space<vmem>>, vector<32x32xf32>
    %c0_120 = arith.constant 0 : index
    %c0_121 = arith.constant 0 : index
    %226 = vector.load %arg32[%c0_120, %c0_121] : memref<32x32xf32, #tpu.memory_space<vmem>>, vector<32x32xf32>
    %c0_122 = arith.constant 0 : index
    %c0_123 = arith.constant 0 : index
    %227 = vector.load %arg33[%c0_122, %c0_123] : memref<1x64xf32, #tpu.memory_space<vmem>>, vector<1x64xf32>
    %c0_124 = arith.constant 0 : index
    %c0_125 = arith.constant 0 : index
    %228 = vector.load %arg34[%c0_124, %c0_125] : memref<1x64xf32, #tpu.memory_space<vmem>>, vector<1x64xf32>
    %c0_126 = arith.constant 0 : index
    %c0_127 = arith.constant 0 : index
    %229 = vector.load %arg35[%c0_126, %c0_127] : memref<64x64xf32, #tpu.memory_space<vmem>>, vector<64x64xf32>
    %c0_128 = arith.constant 0 : index
    %c0_129 = arith.constant 0 : index
    %230 = vector.load %arg36[%c0_128, %c0_129] : memref<64x256xf32, #tpu.memory_space<vmem>>, vector<64x256xf32>
    %c0_130 = arith.constant 0 : index
    %c0_131 = arith.constant 0 : index
    %231 = vector.load %arg37[%c0_130, %c0_131] : memref<64x256xf32, #tpu.memory_space<vmem>>, vector<64x256xf32>
    %c0_132 = arith.constant 0 : index
    %c0_133 = arith.constant 0 : index
    %232 = vector.load %arg38[%c0_132, %c0_133] : memref<256x64xf32, #tpu.memory_space<vmem>>, vector<256x64xf32>
    %c0_134 = arith.constant 0 : index
    %c0_135 = arith.constant 0 : index
    %233 = vector.load %arg39[%c0_134, %c0_135] : memref<16x16xf32, #tpu.memory_space<vmem>>, vector<16x16xf32>
    %cst_136 = arith.constant dense<0.000000e+00> : vector<16xf32>
    %234 = vector.multi_reduction <add>, %213, %cst_136 [1] : vector<16x32xf32> to vector<16xf32>
    %235 = vector.shape_cast %234 : vector<16xf32> to vector<16x1xf32>
    %cst_137 = arith.constant 3.200000e+01 : f32
    %236 = vector.broadcast %cst_137 : f32 to vector<16x1xf32>
    %237 = arith.divf %235, %236 : vector<16x1xf32>
    %238 = vector.broadcast %237 : vector<16x1xf32> to vector<16x32xf32>
    %239 = arith.subf %213, %238 : vector<16x32xf32>
    %240 = arith.mulf %239, %239 : vector<16x32xf32>
    %cst_138 = arith.constant dense<0.000000e+00> : vector<16xf32>
    %241 = vector.multi_reduction <add>, %240, %cst_138 [1] : vector<16x32xf32> to vector<16xf32>
    %242 = vector.shape_cast %241 : vector<16xf32> to vector<16x1xf32>
    %cst_139 = arith.constant 3.200000e+01 : f32
    %243 = vector.broadcast %cst_139 : f32 to vector<16x1xf32>
    %244 = arith.divf %242, %243 : vector<16x1xf32>
    %245 = vector.broadcast %237 : vector<16x1xf32> to vector<16x32xf32>
    %246 = arith.subf %213, %245 : vector<16x32xf32>
    %cst_140 = arith.constant 9.99999974E-6 : f32
    %247 = vector.broadcast %cst_140 : f32 to vector<16x1xf32>
    %248 = arith.addf %244, %247 : vector<16x1xf32>
    %249 = math.rsqrt %248 : vector<16x1xf32>
    %250 = vector.broadcast %249 : vector<16x1xf32> to vector<16x32xf32>
    %251 = arith.mulf %246, %250 : vector<16x32xf32>
    %252 = vector.broadcast %221 : vector<1x32xf32> to vector<16x32xf32>
    %253 = arith.mulf %251, %252 : vector<16x32xf32>
    %254 = vector.broadcast %222 : vector<1x32xf32> to vector<16x32xf32>
    %255 = arith.addf %253, %254 : vector<16x32xf32>
    %cst_141 = arith.constant dense<0.000000e+00> : vector<12xf32>
    %256 = vector.multi_reduction <add>, %3, %cst_141 [1] : vector<12x32xf32> to vector<12xf32>
    %257 = vector.shape_cast %256 : vector<12xf32> to vector<12x1xf32>
    %cst_142 = arith.constant 3.200000e+01 : f32
    %258 = vector.broadcast %cst_142 : f32 to vector<12x1xf32>
    %259 = arith.divf %257, %258 : vector<12x1xf32>
    %260 = vector.broadcast %259 : vector<12x1xf32> to vector<12x32xf32>
    %261 = arith.subf %3, %260 : vector<12x32xf32>
    %262 = arith.mulf %261, %261 : vector<12x32xf32>
    %cst_143 = arith.constant dense<0.000000e+00> : vector<12xf32>
    %263 = vector.multi_reduction <add>, %262, %cst_143 [1] : vector<12x32xf32> to vector<12xf32>
    %264 = vector.shape_cast %263 : vector<12xf32> to vector<12x1xf32>
    %cst_144 = arith.constant 3.200000e+01 : f32
    %265 = vector.broadcast %cst_144 : f32 to vector<12x1xf32>
    %266 = arith.divf %264, %265 : vector<12x1xf32>
    %267 = vector.broadcast %259 : vector<12x1xf32> to vector<12x32xf32>
    %268 = arith.subf %3, %267 : vector<12x32xf32>
    %cst_145 = arith.constant 9.99999974E-6 : f32
    %269 = vector.broadcast %cst_145 : f32 to vector<12x1xf32>
    %270 = arith.addf %266, %269 : vector<12x1xf32>
    %271 = math.rsqrt %270 : vector<12x1xf32>
    %272 = vector.broadcast %271 : vector<12x1xf32> to vector<12x32xf32>
    %273 = arith.mulf %268, %272 : vector<12x32xf32>
    %274 = vector.broadcast %221 : vector<1x32xf32> to vector<12x32xf32>
    %275 = arith.mulf %273, %274 : vector<12x32xf32>
    %276 = vector.broadcast %222 : vector<1x32xf32> to vector<12x32xf32>
    %277 = arith.addf %275, %276 : vector<12x32xf32>
    %cst_146 = arith.constant dense<0.000000e+00> : vector<16x32xf32>
    %278 = tpu.matmul %255, %223, %cst_146 {dimension_numbers = #tpu.dot_dimension_numbers<[1], [0], [0], [1], [0, 0, 1, 1], [], []>} : vector<16x32xf32>, vector<32x32xf32>, vector<16x32xf32> -> vector<16x32xf32>
    %cst_147 = arith.constant dense<0.000000e+00> : vector<12x32xf32>
    %279 = tpu.matmul %277, %224, %cst_147 {dimension_numbers = #tpu.dot_dimension_numbers<[1], [0], [0], [1], [0, 0, 1, 1], [], []>} : vector<12x32xf32>, vector<32x32xf32>, vector<12x32xf32> -> vector<12x32xf32>
    %cst_148 = arith.constant dense<0.000000e+00> : vector<12x32xf32>
    %280 = tpu.matmul %277, %225, %cst_148 {dimension_numbers = #tpu.dot_dimension_numbers<[1], [0], [0], [1], [0, 0, 1, 1], [], []>} : vector<12x32xf32>, vector<32x32xf32>, vector<12x32xf32> -> vector<12x32xf32>
    %281 = arith.mulf %278, %218 : vector<16x32xf32>
    %cst_149 = arith.constant dense<0.000000e+00> : vector<16x32xf32>
    %282 = tpu.matmul %278, %220, %cst_149 {dimension_numbers = #tpu.dot_dimension_numbers<[1], [0], [0], [1], [0, 0, 1, 1], [], []>} : vector<16x32xf32>, vector<32x32xf32>, vector<16x32xf32> -> vector<16x32xf32>
    %283 = arith.mulf %282, %219 : vector<16x32xf32>
    %284 = arith.addf %281, %283 : vector<16x32xf32>
    %285 = arith.mulf %279, %215 : vector<12x32xf32>
    %cst_150 = arith.constant dense<0.000000e+00> : vector<12x32xf32>
    %286 = tpu.matmul %279, %220, %cst_150 {dimension_numbers = #tpu.dot_dimension_numbers<[1], [0], [0], [1], [0, 0, 1, 1], [], []>} : vector<12x32xf32>, vector<32x32xf32>, vector<12x32xf32> -> vector<12x32xf32>
    %287 = arith.mulf %286, %217 : vector<12x32xf32>
    %288 = arith.addf %285, %287 : vector<12x32xf32>
    %cst_151 = arith.constant 0.000000e+00 : f32
    %289 = vector.broadcast %cst_151 : f32 to vector<16x32xf32>
    %290 = vector.extract_strided_slice %284 {offsets = [0, 0], sizes = [16, 8], strides = [1, 1]} : vector<16x32xf32> to vector<16x8xf32>
    %291 = vector.extract_strided_slice %288 {offsets = [0, 0], sizes = [12, 8], strides = [1, 1]} : vector<12x32xf32> to vector<12x8xf32>
    %292 = tpu.transpose %291, [1, 0] : vector<12x8xf32> -> vector<8x12xf32>
    %cst_152 = arith.constant dense<0.000000e+00> : vector<16x12xf32>
    %293 = tpu.matmul %290, %292, %cst_152 {dimension_numbers = #tpu.dot_dimension_numbers<[1], [0], [0], [1], [0, 0, 1, 1], [], []>} : vector<16x8xf32>, vector<8x12xf32>, vector<16x12xf32> -> vector<16x12xf32>
    %cst_153 = arith.constant 0.353553385 : f32
    %294 = vector.broadcast %cst_153 : f32 to vector<16x12xf32>
    %295 = arith.mulf %293, %294 : vector<16x12xf32>
    %296 = vector.broadcast %10 : vector<1x12xf32> to vector<16x12xf32>
    %297 = arith.addf %295, %296 : vector<16x12xf32>
    %cst_154 = arith.constant dense<0xFF800000> : vector<16xf32>
    %298 = vector.multi_reduction <maximumf>, %297, %cst_154 [1] : vector<16x12xf32> to vector<16xf32>
    %299 = vector.shape_cast %298 : vector<16xf32> to vector<16x1xf32>
    %300 = vector.broadcast %299 : vector<16x1xf32> to vector<16x12xf32>
    %301 = arith.subf %297, %300 : vector<16x12xf32>
    %302 = math.exp %301 : vector<16x12xf32>
    %cst_155 = arith.constant dense<0.000000e+00> : vector<16xf32>
    %303 = vector.multi_reduction <add>, %302, %cst_155 [1] : vector<16x12xf32> to vector<16xf32>
    %304 = vector.shape_cast %303 : vector<16xf32> to vector<16x1xf32>
    %305 = tpu.reciprocal %304 {approx = true} : vector<16x1xf32> -> vector<16x1xf32>
    %306 = vector.broadcast %305 : vector<16x1xf32> to vector<16x12xf32>
    %307 = arith.mulf %302, %306 : vector<16x12xf32>
    %308 = vector.extract_strided_slice %280 {offsets = [0, 0], sizes = [12, 8], strides = [1, 1]} : vector<12x32xf32> to vector<12x8xf32>
    %cst_156 = arith.constant dense<0.000000e+00> : vector<16x8xf32>
    %309 = tpu.matmul %307, %308, %cst_156 {dimension_numbers = #tpu.dot_dimension_numbers<[1], [0], [0], [1], [0, 0, 1, 1], [], []>} : vector<16x12xf32>, vector<12x8xf32>, vector<16x8xf32> -> vector<16x8xf32>
    %310 = vector.extract_strided_slice %226 {offsets = [0, 0], sizes = [8, 32], strides = [1, 1]} : vector<32x32xf32> to vector<8x32xf32>
    %cst_157 = arith.constant dense<0.000000e+00> : vector<16x32xf32>
    %311 = tpu.matmul %309, %310, %cst_157 {dimension_numbers = #tpu.dot_dimension_numbers<[1], [0], [0], [1], [0, 0, 1, 1], [], []>} : vector<16x8xf32>, vector<8x32xf32>, vector<16x32xf32> -> vector<16x32xf32>
    %312 = arith.addf %289, %311 : vector<16x32xf32>
    %313 = vector.extract_strided_slice %284 {offsets = [0, 8], sizes = [16, 8], strides = [1, 1]} : vector<16x32xf32> to vector<16x8xf32>
    %314 = vector.extract_strided_slice %288 {offsets = [0, 8], sizes = [12, 8], strides = [1, 1]} : vector<12x32xf32> to vector<12x8xf32>
    %315 = tpu.transpose %314, [1, 0] : vector<12x8xf32> -> vector<8x12xf32>
    %cst_158 = arith.constant dense<0.000000e+00> : vector<16x12xf32>
    %316 = tpu.matmul %313, %315, %cst_158 {dimension_numbers = #tpu.dot_dimension_numbers<[1], [0], [0], [1], [0, 0, 1, 1], [], []>} : vector<16x8xf32>, vector<8x12xf32>, vector<16x12xf32> -> vector<16x12xf32>
    %cst_159 = arith.constant 0.353553385 : f32
    %317 = vector.broadcast %cst_159 : f32 to vector<16x12xf32>
    %318 = arith.mulf %316, %317 : vector<16x12xf32>
    %319 = vector.broadcast %10 : vector<1x12xf32> to vector<16x12xf32>
    %320 = arith.addf %318, %319 : vector<16x12xf32>
    %cst_160 = arith.constant dense<0xFF800000> : vector<16xf32>
    %321 = vector.multi_reduction <maximumf>, %320, %cst_160 [1] : vector<16x12xf32> to vector<16xf32>
    %322 = vector.shape_cast %321 : vector<16xf32> to vector<16x1xf32>
    %323 = vector.broadcast %322 : vector<16x1xf32> to vector<16x12xf32>
    %324 = arith.subf %320, %323 : vector<16x12xf32>
    %325 = math.exp %324 : vector<16x12xf32>
    %cst_161 = arith.constant dense<0.000000e+00> : vector<16xf32>
    %326 = vector.multi_reduction <add>, %325, %cst_161 [1] : vector<16x12xf32> to vector<16xf32>
    %327 = vector.shape_cast %326 : vector<16xf32> to vector<16x1xf32>
    %328 = tpu.reciprocal %327 {approx = true} : vector<16x1xf32> -> vector<16x1xf32>
    %329 = vector.broadcast %328 : vector<16x1xf32> to vector<16x12xf32>
    %330 = arith.mulf %325, %329 : vector<16x12xf32>
    %331 = vector.extract_strided_slice %280 {offsets = [0, 8], sizes = [12, 8], strides = [1, 1]} : vector<12x32xf32> to vector<12x8xf32>
    %cst_162 = arith.constant dense<0.000000e+00> : vector<16x8xf32>
    %332 = tpu.matmul %330, %331, %cst_162 {dimension_numbers = #tpu.dot_dimension_numbers<[1], [0], [0], [1], [0, 0, 1, 1], [], []>} : vector<16x12xf32>, vector<12x8xf32>, vector<16x8xf32> -> vector<16x8xf32>
    %333 = vector.extract_strided_slice %226 {offsets = [8, 0], sizes = [8, 32], strides = [1, 1]} : vector<32x32xf32> to vector<8x32xf32>
    %cst_163 = arith.constant dense<0.000000e+00> : vector<16x32xf32>
    %334 = tpu.matmul %332, %333, %cst_163 {dimension_numbers = #tpu.dot_dimension_numbers<[1], [0], [0], [1], [0, 0, 1, 1], [], []>} : vector<16x8xf32>, vector<8x32xf32>, vector<16x32xf32> -> vector<16x32xf32>
    %335 = arith.addf %312, %334 : vector<16x32xf32>
    %336 = vector.extract_strided_slice %284 {offsets = [0, 16], sizes = [16, 8], strides = [1, 1]} : vector<16x32xf32> to vector<16x8xf32>
    %337 = vector.extract_strided_slice %288 {offsets = [0, 16], sizes = [12, 8], strides = [1, 1]} : vector<12x32xf32> to vector<12x8xf32>
    %338 = tpu.transpose %337, [1, 0] : vector<12x8xf32> -> vector<8x12xf32>
    %cst_164 = arith.constant dense<0.000000e+00> : vector<16x12xf32>
    %339 = tpu.matmul %336, %338, %cst_164 {dimension_numbers = #tpu.dot_dimension_numbers<[1], [0], [0], [1], [0, 0, 1, 1], [], []>} : vector<16x8xf32>, vector<8x12xf32>, vector<16x12xf32> -> vector<16x12xf32>
    %cst_165 = arith.constant 0.353553385 : f32
    %340 = vector.broadcast %cst_165 : f32 to vector<16x12xf32>
    %341 = arith.mulf %339, %340 : vector<16x12xf32>
    %342 = vector.broadcast %10 : vector<1x12xf32> to vector<16x12xf32>
    %343 = arith.addf %341, %342 : vector<16x12xf32>
    %cst_166 = arith.constant dense<0xFF800000> : vector<16xf32>
    %344 = vector.multi_reduction <maximumf>, %343, %cst_166 [1] : vector<16x12xf32> to vector<16xf32>
    %345 = vector.shape_cast %344 : vector<16xf32> to vector<16x1xf32>
    %346 = vector.broadcast %345 : vector<16x1xf32> to vector<16x12xf32>
    %347 = arith.subf %343, %346 : vector<16x12xf32>
    %348 = math.exp %347 : vector<16x12xf32>
    %cst_167 = arith.constant dense<0.000000e+00> : vector<16xf32>
    %349 = vector.multi_reduction <add>, %348, %cst_167 [1] : vector<16x12xf32> to vector<16xf32>
    %350 = vector.shape_cast %349 : vector<16xf32> to vector<16x1xf32>
    %351 = tpu.reciprocal %350 {approx = true} : vector<16x1xf32> -> vector<16x1xf32>
    %352 = vector.broadcast %351 : vector<16x1xf32> to vector<16x12xf32>
    %353 = arith.mulf %348, %352 : vector<16x12xf32>
    %354 = vector.extract_strided_slice %280 {offsets = [0, 16], sizes = [12, 8], strides = [1, 1]} : vector<12x32xf32> to vector<12x8xf32>
    %cst_168 = arith.constant dense<0.000000e+00> : vector<16x8xf32>
    %355 = tpu.matmul %353, %354, %cst_168 {dimension_numbers = #tpu.dot_dimension_numbers<[1], [0], [0], [1], [0, 0, 1, 1], [], []>} : vector<16x12xf32>, vector<12x8xf32>, vector<16x8xf32> -> vector<16x8xf32>
    %356 = vector.extract_strided_slice %226 {offsets = [16, 0], sizes = [8, 32], strides = [1, 1]} : vector<32x32xf32> to vector<8x32xf32>
    %cst_169 = arith.constant dense<0.000000e+00> : vector<16x32xf32>
    %357 = tpu.matmul %355, %356, %cst_169 {dimension_numbers = #tpu.dot_dimension_numbers<[1], [0], [0], [1], [0, 0, 1, 1], [], []>} : vector<16x8xf32>, vector<8x32xf32>, vector<16x32xf32> -> vector<16x32xf32>
    %358 = arith.addf %335, %357 : vector<16x32xf32>
    %359 = vector.extract_strided_slice %284 {offsets = [0, 24], sizes = [16, 8], strides = [1, 1]} : vector<16x32xf32> to vector<16x8xf32>
    %360 = vector.extract_strided_slice %288 {offsets = [0, 24], sizes = [12, 8], strides = [1, 1]} : vector<12x32xf32> to vector<12x8xf32>
    %361 = tpu.transpose %360, [1, 0] : vector<12x8xf32> -> vector<8x12xf32>
    %cst_170 = arith.constant dense<0.000000e+00> : vector<16x12xf32>
    %362 = tpu.matmul %359, %361, %cst_170 {dimension_numbers = #tpu.dot_dimension_numbers<[1], [0], [0], [1], [0, 0, 1, 1], [], []>} : vector<16x8xf32>, vector<8x12xf32>, vector<16x12xf32> -> vector<16x12xf32>
    %cst_171 = arith.constant 0.353553385 : f32
    %363 = vector.broadcast %cst_171 : f32 to vector<16x12xf32>
    %364 = arith.mulf %362, %363 : vector<16x12xf32>
    %365 = vector.broadcast %10 : vector<1x12xf32> to vector<16x12xf32>
    %366 = arith.addf %364, %365 : vector<16x12xf32>
    %cst_172 = arith.constant dense<0xFF800000> : vector<16xf32>
    %367 = vector.multi_reduction <maximumf>, %366, %cst_172 [1] : vector<16x12xf32> to vector<16xf32>
    %368 = vector.shape_cast %367 : vector<16xf32> to vector<16x1xf32>
    %369 = vector.broadcast %368 : vector<16x1xf32> to vector<16x12xf32>
    %370 = arith.subf %366, %369 : vector<16x12xf32>
    %371 = math.exp %370 : vector<16x12xf32>
    %cst_173 = arith.constant dense<0.000000e+00> : vector<16xf32>
    %372 = vector.multi_reduction <add>, %371, %cst_173 [1] : vector<16x12xf32> to vector<16xf32>
    %373 = vector.shape_cast %372 : vector<16xf32> to vector<16x1xf32>
    %374 = tpu.reciprocal %373 {approx = true} : vector<16x1xf32> -> vector<16x1xf32>
    %375 = vector.broadcast %374 : vector<16x1xf32> to vector<16x12xf32>
    %376 = arith.mulf %371, %375 : vector<16x12xf32>
    %377 = vector.extract_strided_slice %280 {offsets = [0, 24], sizes = [12, 8], strides = [1, 1]} : vector<12x32xf32> to vector<12x8xf32>
    %cst_174 = arith.constant dense<0.000000e+00> : vector<16x8xf32>
    %378 = tpu.matmul %376, %377, %cst_174 {dimension_numbers = #tpu.dot_dimension_numbers<[1], [0], [0], [1], [0, 0, 1, 1], [], []>} : vector<16x12xf32>, vector<12x8xf32>, vector<16x8xf32> -> vector<16x8xf32>
    %379 = vector.extract_strided_slice %226 {offsets = [24, 0], sizes = [8, 32], strides = [1, 1]} : vector<32x32xf32> to vector<8x32xf32>
    %cst_175 = arith.constant dense<0.000000e+00> : vector<16x32xf32>
    %380 = tpu.matmul %378, %379, %cst_175 {dimension_numbers = #tpu.dot_dimension_numbers<[1], [0], [0], [1], [0, 0, 1, 1], [], []>} : vector<16x8xf32>, vector<8x32xf32>, vector<16x32xf32> -> vector<16x32xf32>
    %381 = arith.addf %358, %380 : vector<16x32xf32>
    %382 = arith.addf %255, %381 : vector<16x32xf32>
    %cst_176 = arith.constant dense<0.000000e+00> : vector<16x32xf32>
    %383 = tpu.matmul %233, %382, %cst_176 {dimension_numbers = #tpu.dot_dimension_numbers<[1], [0], [0], [1], [0, 0, 1, 1], [], []>} : vector<16x16xf32>, vector<16x32xf32>, vector<16x32xf32> -> vector<16x32xf32>
    %384 = vector.extract_strided_slice %383 {offsets = [0, 0], sizes = [8, 32], strides = [1, 1]} : vector<16x32xf32> to vector<8x32xf32>
    %385 = vector.extract_strided_slice %383 {offsets = [8, 0], sizes = [8, 32], strides = [1, 1]} : vector<16x32xf32> to vector<8x32xf32>
    %386 = tpu.concatenate %384, %385 in 1 : vector<8x32xf32>, vector<8x32xf32> -> vector<8x64xf32>
    %cst_177 = arith.constant dense<0.000000e+00> : vector<8xf32>
    %387 = vector.multi_reduction <add>, %386, %cst_177 [1] : vector<8x64xf32> to vector<8xf32>
    %388 = vector.shape_cast %387 : vector<8xf32> to vector<8x1xf32>
    %cst_178 = arith.constant 6.400000e+01 : f32
    %389 = vector.broadcast %cst_178 : f32 to vector<8x1xf32>
    %390 = arith.divf %388, %389 : vector<8x1xf32>
    %391 = vector.broadcast %390 : vector<8x1xf32> to vector<8x64xf32>
    %392 = arith.subf %386, %391 : vector<8x64xf32>
    %393 = arith.mulf %392, %392 : vector<8x64xf32>
    %cst_179 = arith.constant dense<0.000000e+00> : vector<8xf32>
    %394 = vector.multi_reduction <add>, %393, %cst_179 [1] : vector<8x64xf32> to vector<8xf32>
    %395 = vector.shape_cast %394 : vector<8xf32> to vector<8x1xf32>
    %cst_180 = arith.constant 6.400000e+01 : f32
    %396 = vector.broadcast %cst_180 : f32 to vector<8x1xf32>
    %397 = arith.divf %395, %396 : vector<8x1xf32>
    %398 = vector.broadcast %390 : vector<8x1xf32> to vector<8x64xf32>
    %399 = arith.subf %386, %398 : vector<8x64xf32>
    %cst_181 = arith.constant 9.99999974E-6 : f32
    %400 = vector.broadcast %cst_181 : f32 to vector<8x1xf32>
    %401 = arith.addf %397, %400 : vector<8x1xf32>
    %402 = math.rsqrt %401 : vector<8x1xf32>
    %403 = vector.broadcast %402 : vector<8x1xf32> to vector<8x64xf32>
    %404 = arith.mulf %399, %403 : vector<8x64xf32>
    %405 = vector.broadcast %227 : vector<1x64xf32> to vector<8x64xf32>
    %406 = arith.mulf %404, %405 : vector<8x64xf32>
    %407 = vector.broadcast %228 : vector<1x64xf32> to vector<8x64xf32>
    %408 = arith.addf %406, %407 : vector<8x64xf32>
    %cst_182 = arith.constant dense<0.000000e+00> : vector<8x256xf32>
    %409 = tpu.matmul %408, %230, %cst_182 {dimension_numbers = #tpu.dot_dimension_numbers<[1], [0], [0], [1], [0, 0, 1, 1], [], []>} : vector<8x64xf32>, vector<64x256xf32>, vector<8x256xf32> -> vector<8x256xf32>
    %cst_183 = arith.constant dense<0.000000e+00> : vector<8x256xf32>
    %410 = tpu.matmul %408, %231, %cst_183 {dimension_numbers = #tpu.dot_dimension_numbers<[1], [0], [0], [1], [0, 0, 1, 1], [], []>} : vector<8x64xf32>, vector<64x256xf32>, vector<8x256xf32> -> vector<8x256xf32>
    %411 = arith.negf %410 : vector<8x256xf32>
    %412 = math.exp %411 : vector<8x256xf32>
    %cst_184 = arith.constant 1.000000e+00 : f32
    %413 = vector.broadcast %cst_184 : f32 to vector<8x256xf32>
    %414 = arith.addf %413, %412 : vector<8x256xf32>
    %415 = arith.divf %413, %414 : vector<8x256xf32>
    %416 = arith.mulf %410, %415 : vector<8x256xf32>
    %417 = arith.mulf %409, %416 : vector<8x256xf32>
    %cst_185 = arith.constant dense<0.000000e+00> : vector<8x64xf32>
    %418 = tpu.matmul %386, %229, %cst_185 {dimension_numbers = #tpu.dot_dimension_numbers<[1], [0], [0], [1], [0, 0, 1, 1], [], []>} : vector<8x64xf32>, vector<64x64xf32>, vector<8x64xf32> -> vector<8x64xf32>
    %cst_186 = arith.constant dense<0.000000e+00> : vector<8x64xf32>
    %419 = tpu.matmul %417, %232, %cst_186 {dimension_numbers = #tpu.dot_dimension_numbers<[1], [0], [0], [1], [0, 0, 1, 1], [], []>} : vector<8x256xf32>, vector<256x64xf32>, vector<8x64xf32> -> vector<8x64xf32>
    %420 = arith.addf %418, %419 : vector<8x64xf32>
    %c0_187 = arith.constant 0 : index
    %c0_188 = arith.constant 0 : index
    %c0_189 = arith.constant 0 : index
    %421 = vector.load %arg40[%c0_187, %c0_188, %c0_189] : memref<1x8x64xf32, #tpu.memory_space<vmem>>, vector<1x8x64xf32>
    %422 = vector.shape_cast %421 : vector<1x8x64xf32> to vector<8x64xf32>
    %423 = vector.shape_cast %420 : vector<8x64xf32> to vector<1x8x64xf32>
    tpu.vector_store %arg40[%c0_187, %c0_188, %c0_189], %423 {strides = array<i32>} : memref<1x8x64xf32, #tpu.memory_space<vmem>>, vector<1x8x64xf32>,
    return
  }
  func.func @transform_0(%arg0: i32) -> (i32, i32, i32) {
    %c0_i32 = arith.constant 0 : i32
    %c0_i32_0 = arith.constant 0 : i32
    %c0_i32_1 = arith.constant 0 : i32
    return %arg0, %c0_i32, %c0_i32_0 : i32, i32, i32
  }
  func.func @transform_1(%arg0: i32) -> (i32, i32, i32) {
    %c0_i32 = arith.constant 0 : i32
    %c0_i32_0 = arith.constant 0 : i32
    %c0_i32_1 = arith.constant 0 : i32
    return %arg0, %c0_i32, %c0_i32_0 : i32, i32, i32
  }
  func.func @transform_2(%arg0: i32) -> (i32, i32) {
    %c0_i32 = arith.constant 0 : i32
    %c0_i32_0 = arith.constant 0 : i32
    %c0_i32_1 = arith.constant 0 : i32
    return %c0_i32, %c0_i32_0 : i32, i32
  }
  func.func @transform_3(%arg0: i32) -> (i32, i32) {
    %c0_i32 = arith.constant 0 : i32
    %c0_i32_0 = arith.constant 0 : i32
    %c0_i32_1 = arith.constant 0 : i32
    return %c0_i32, %c0_i32_0 : i32, i32
  }
  func.func @transform_4(%arg0: i32) -> (i32, i32, i32) {
    %c0_i32 = arith.constant 0 : i32
    %c0_i32_0 = arith.constant 0 : i32
    %c0_i32_1 = arith.constant 0 : i32
    return %arg0, %c0_i32, %c0_i32_0 : i32, i32, i32
  }
  func.func @transform_5(%arg0: i32) -> (i32, i32, i32) {
    %c0_i32 = arith.constant 0 : i32
    %c0_i32_0 = arith.constant 0 : i32
    %c0_i32_1 = arith.constant 0 : i32
    return %arg0, %c0_i32, %c0_i32_0 : i32, i32, i32
  }
  func.func @transform_6(%arg0: i32) -> (i32, i32) {
    %c0_i32 = arith.constant 0 : i32
    %c0_i32_0 = arith.constant 0 : i32
    %c0_i32_1 = arith.constant 0 : i32
    return %c0_i32, %c0_i32_0 : i32, i32
  }
  func.func @transform_7(%arg0: i32) -> (i32, i32) {
    %c0_i32 = arith.constant 0 : i32
    %c0_i32_0 = arith.constant 0 : i32
    %c0_i32_1 = arith.constant 0 : i32
    return %c0_i32, %c0_i32_0 : i32, i32
  }
  func.func @transform_8(%arg0: i32) -> (i32, i32) {
    %c0_i32 = arith.constant 0 : i32
    %c0_i32_0 = arith.constant 0 : i32
    %c0_i32_1 = arith.constant 0 : i32
    return %c0_i32, %c0_i32_0 : i32, i32
  }
  func.func @transform_9(%arg0: i32) -> (i32, i32) {
    %c0_i32 = arith.constant 0 : i32
    %c0_i32_0 = arith.constant 0 : i32
    %c0_i32_1 = arith.constant 0 : i32
    return %c0_i32, %c0_i32_0 : i32, i32
  }
  func.func @transform_10(%arg0: i32) -> (i32, i32) {
    %c0_i32 = arith.constant 0 : i32
    %c0_i32_0 = arith.constant 0 : i32
    %c0_i32_1 = arith.constant 0 : i32
    return %c0_i32, %c0_i32_0 : i32, i32
  }
  func.func @transform_11(%arg0: i32) -> (i32, i32) {
    %c0_i32 = arith.constant 0 : i32
    %c0_i32_0 = arith.constant 0 : i32
    %c0_i32_1 = arith.constant 0 : i32
    return %c0_i32, %c0_i32_0 : i32, i32
  }
  func.func @transform_12(%arg0: i32) -> (i32, i32) {
    %c0_i32 = arith.constant 0 : i32
    %c0_i32_0 = arith.constant 0 : i32
    %c0_i32_1 = arith.constant 0 : i32
    return %c0_i32, %c0_i32_0 : i32, i32
  }
  func.func @transform_13(%arg0: i32) -> (i32, i32) {
    %c0_i32 = arith.constant 0 : i32
    %c0_i32_0 = arith.constant 0 : i32
    %c0_i32_1 = arith.constant 0 : i32
    return %c0_i32, %c0_i32_0 : i32, i32
  }
  func.func @transform_14(%arg0: i32) -> (i32, i32) {
    %c0_i32 = arith.constant 0 : i32
    %c0_i32_0 = arith.constant 0 : i32
    %c0_i32_1 = arith.constant 0 : i32
    return %c0_i32, %c0_i32_0 : i32, i32
  }
  func.func @transform_15(%arg0: i32) -> (i32, i32) {
    %c0_i32 = arith.constant 0 : i32
    %c0_i32_0 = arith.constant 0 : i32
    %c0_i32_1 = arith.constant 0 : i32
    return %c0_i32, %c0_i32_0 : i32, i32
  }
  func.func @transform_16(%arg0: i32) -> (i32, i32) {
    %c0_i32 = arith.constant 0 : i32
    %c0_i32_0 = arith.constant 0 : i32
    %c0_i32_1 = arith.constant 0 : i32
    return %c0_i32, %c0_i32_0 : i32, i32
  }
  func.func @transform_17(%arg0: i32) -> (i32, i32) {
    %c0_i32 = arith.constant 0 : i32
    %c0_i32_0 = arith.constant 0 : i32
    %c0_i32_1 = arith.constant 0 : i32
    return %c0_i32, %c0_i32_0 : i32, i32
  }
  func.func @transform_18(%arg0: i32) -> (i32, i32) {
    %c0_i32 = arith.constant 0 : i32
    %c0_i32_0 = arith.constant 0 : i32
    %c0_i32_1 = arith.constant 0 : i32
    return %c0_i32, %c0_i32_0 : i32, i32
  }
  func.func @transform_19(%arg0: i32) -> (i32, i32) {
    %c0_i32 = arith.constant 0 : i32
    %c0_i32_0 = arith.constant 0 : i32
    %c0_i32_1 = arith.constant 0 : i32
    return %c0_i32, %c0_i32_0 : i32, i32
  }
  func.func @transform_20(%arg0: i32) -> (i32, i32) {
    %c0_i32 = arith.constant 0 : i32
    %c0_i32_0 = arith.constant 0 : i32
    %c0_i32_1 = arith.constant 0 : i32
    return %c0_i32, %c0_i32_0 : i32, i32
  }
  func.func @transform_21(%arg0: i32) -> (i32, i32, i32) {
    %c0_i32 = arith.constant 0 : i32
    %c0_i32_0 = arith.constant 0 : i32
    %c0_i32_1 = arith.constant 0 : i32
    return %arg0, %c0_i32, %c0_i32_0 : i32, i32, i32
  }
  func.func @transform_22(%arg0: i32) -> (i32, i32, i32) {
    %c0_i32 = arith.constant 0 : i32
    %c0_i32_0 = arith.constant 0 : i32
    %c0_i32_1 = arith.constant 0 : i32
    return %arg0, %c0_i32, %c0_i32_0 : i32, i32, i32
  }
  func.func @transform_23(%arg0: i32) -> (i32, i32) {
    %c0_i32 = arith.constant 0 : i32
    %c0_i32_0 = arith.constant 0 : i32
    %c0_i32_1 = arith.constant 0 : i32
    return %c0_i32, %c0_i32_0 : i32, i32
  }
  func.func @transform_24(%arg0: i32) -> (i32, i32) {
    %c0_i32 = arith.constant 0 : i32
    %c0_i32_0 = arith.constant 0 : i32
    %c0_i32_1 = arith.constant 0 : i32
    return %c0_i32, %c0_i32_0 : i32, i32
  }
  func.func @transform_25(%arg0: i32) -> (i32, i32) {
    %c0_i32 = arith.constant 0 : i32
    %c0_i32_0 = arith.constant 0 : i32
    %c0_i32_1 = arith.constant 0 : i32
    return %c0_i32, %c0_i32_0 : i32, i32
  }
  func.func @transform_26(%arg0: i32) -> (i32, i32) {
    %c0_i32 = arith.constant 0 : i32
    %c0_i32_0 = arith.constant 0 : i32
    %c0_i32_1 = arith.constant 0 : i32
    return %c0_i32, %c0_i32_0 : i32, i32
  }
  func.func @transform_27(%arg0: i32) -> (i32, i32) {
    %c0_i32 = arith.constant 0 : i32
    %c0_i32_0 = arith.constant 0 : i32
    %c0_i32_1 = arith.constant 0 : i32
    return %c0_i32, %c0_i32_0 : i32, i32
  }
  func.func @transform_28(%arg0: i32) -> (i32, i32) {
    %c0_i32 = arith.constant 0 : i32
    %c0_i32_0 = arith.constant 0 : i32
    %c0_i32_1 = arith.constant 0 : i32
    return %c0_i32, %c0_i32_0 : i32, i32
  }
  func.func @transform_29(%arg0: i32) -> (i32, i32) {
    %c0_i32 = arith.constant 0 : i32
    %c0_i32_0 = arith.constant 0 : i32
    %c0_i32_1 = arith.constant 0 : i32
    return %c0_i32, %c0_i32_0 : i32, i32
  }
  func.func @transform_30(%arg0: i32) -> (i32, i32) {
    %c0_i32 = arith.constant 0 : i32
    %c0_i32_0 = arith.constant 0 : i32
    %c0_i32_1 = arith.constant 0 : i32
    return %c0_i32, %c0_i32_0 : i32, i32
  }
  func.func @transform_31(%arg0: i32) -> (i32, i32) {
    %c0_i32 = arith.constant 0 : i32
    %c0_i32_0 = arith.constant 0 : i32
    %c0_i32_1 = arith.constant 0 : i32
    return %c0_i32, %c0_i32_0 : i32, i32
  }
  func.func @transform_32(%arg0: i32) -> (i32, i32) {
    %c0_i32 = arith.constant 0 : i32
    %c0_i32_0 = arith.constant 0 : i32
    %c0_i32_1 = arith.constant 0 : i32
    return %c0_i32, %c0_i32_0 : i32, i32
  }
  func.func @transform_33(%arg0: i32) -> (i32, i32) {
    %c0_i32 = arith.constant 0 : i32
    %c0_i32_0 = arith.constant 0 : i32
    %c0_i32_1 = arith.constant 0 : i32
    return %c0_i32, %c0_i32_0 : i32, i32
  }
  func.func @transform_34(%arg0: i32) -> (i32, i32) {
    %c0_i32 = arith.constant 0 : i32
    %c0_i32_0 = arith.constant 0 : i32
    %c0_i32_1 = arith.constant 0 : i32
    return %c0_i32, %c0_i32_0 : i32, i32
  }
  func.func @transform_35(%arg0: i32) -> (i32, i32) {
    %c0_i32 = arith.constant 0 : i32
    %c0_i32_0 = arith.constant 0 : i32
    %c0_i32_1 = arith.constant 0 : i32
    return %c0_i32, %c0_i32_0 : i32, i32
  }
  func.func @transform_36(%arg0: i32) -> (i32, i32) {
    %c0_i32 = arith.constant 0 : i32
    %c0_i32_0 = arith.constant 0 : i32
    %c0_i32_1 = arith.constant 0 : i32
    return %c0_i32, %c0_i32_0 : i32, i32
  }
  func.func @transform_37(%arg0: i32) -> (i32, i32) {
    %c0_i32 = arith.constant 0 : i32
    %c0_i32_0 = arith.constant 0 : i32
    %c0_i32_1 = arith.constant 0 : i32
    return %c0_i32, %c0_i32_0 : i32, i32
  }
  func.func @transform_38(%arg0: i32) -> (i32, i32) {
    %c0_i32 = arith.constant 0 : i32
    %c0_i32_0 = arith.constant 0 : i32
    %c0_i32_1 = arith.constant 0 : i32
    return %c0_i32, %c0_i32_0 : i32, i32
  }
  func.func @transform_39(%arg0: i32) -> (i32, i32, i32) {
    %c0_i32 = arith.constant 0 : i32
    %c0_i32_0 = arith.constant 0 : i32
    %c0_i32_1 = arith.constant 0 : i32
    return %arg0, %c0_i32, %c0_i32_0 : i32, i32, i32
  }
}

</mosaic_0001>

<bundles_post_ra>
// kernel: _lambda_.1
= control target key start
LH: loop header
LB: loop body
LE: loop exit
PB: predicated region body
PF: predicated region fallthrough
CT: control target
= control target key end

     0   :  { %s7108_s6 = smov 1   ;;  %s7109_s10 = smov 2   ;;  %s7981_s0 = inlined_call_operand.smem [shape: u32[40], index: -1, kind: input, shape index: {}] }
   0x1   :  { %s7165_s5 = sld [smem:[%s7981_s0]]   ;;  %s7110_s14 = smov 3  }
   0x2   :  { %s7170_s9 = sld [smem:[%s7981_s0 + %s7108_s6]]   ;;  %s7111_s18 = smov 4  }
   0x3   :  { %s7175_s13 = sld [smem:[%s7981_s0 + %s7109_s10]]   ;;  %s7112_s22 = smov 5  }
   0x4   :  { %s7180_s17 = sld [smem:[%s7981_s0 + %s7110_s14]]   ;;  %s7113_s26 = smov 6  }
   0x5   :  { %s7185_s21 = sld [smem:[%s7981_s0 + %s7111_s18]]   ;;  %s7114_s30 = smov 7  }
   0x6   :  { %s7190_s25 = sld [smem:[%s7981_s0 + %s7112_s22]]   ;;  %s7115_s4 = smov 8  }
   0x7   :  { %8019 = sst [smem:[#allocation5_spill]] %s7165_s5  ;;  %s7116_s10 = smov 9  }
   0x8   :  { %8020 = sst [smem:[#allocation6_spill]] %s7170_s9  ;;  %s7117_s15 = smov 10  }
   0x9   :  { %s7195_s29 = sld [smem:[%s7981_s0 + %s7113_s26]]   ;;  %s7118_s20 = smov 11  }
   0xa   :  { %s7200_s3 = sld [smem:[%s7981_s0 + %s7114_s30]]   ;;  %s7119_s26 = smov 12  }
   0xb   :  { %s7205_s8 = sld [smem:[%s7981_s0 + %s7115_s4]]   ;;  %s7120_s1 = smov 13  }
   0xc   :  { %s7210_s14 = sld [smem:[%s7981_s0 + %s7116_s10]]   ;;  %s7121_s7 = smov 14  }
   0xd   :  { %s7215_s19 = sld [smem:[%s7981_s0 + %s7117_s15]]   ;;  %s7122_s15 = smov 15  }
   0xe   :  { %s7220_s24 = sld [smem:[%s7981_s0 + %s7118_s20]]   ;;  %s7123_s22 = smov 16  }
   0xf   :  { %s7225_s30 = sld [smem:[%s7981_s0 + %s7119_s26]]   ;;  %s7124_s28 = smov 17  }
  0x10   :  { %8021 = sst [smem:[#allocation7_spill]] %s7200_s3 }
  0x11   :  { %8022 = sst [smem:[#allocation8_spill]] %s7205_s8 }
  0x12   :  { %s7230_s6 = sld [smem:[%s7981_s0 + %s7120_s1]]  }
  0x13   :  { %s7235_s12 = sld [smem:[%s7981_s0 + %s7121_s7]]   ;;  %s7125_s7 = smov 18  }
  0x14   :  { %s7240_s20 = sld [smem:[%s7981_s0 + %s7122_s15]]   ;;  %s7126_s15 = smov 19  }
  0x15   :  { %s7245_s27 = sld [smem:[%s7981_s0 + %s7123_s22]]   ;;  %s7127_s22 = smov 20  }
  0x16   :  { %s7250_s4 = sld [smem:[%s7981_s0 + %s7124_s28]]   ;;  %s7128_s28 = smov 21  }
  0x18   :  { %8023 = sst [smem:[#allocation9_spill]] %s7230_s6 }
  0x19   :  { %8024 = sst [smem:[#allocation10_spill]] %s7235_s12 }
  0x1a   :  { %8025 = sst [smem:[#allocation11_spill]] %s7240_s20 }
  0x1b   :  { %8026 = sst [smem:[#allocation12_spill]] %s7245_s27 }
  0x1c   :  { %8027 = sst [smem:[#allocation13_spill]] %s7250_s4 }
  0x1d   :  { %s7255_s12 = sld [smem:[%s7981_s0 + %s7125_s7]]   ;;  %s7129_s7 = smov 22  }
  0x1e   :  { %s7260_s20 = sld [smem:[%s7981_s0 + %s7126_s15]]   ;;  %s7130_s15 = smov 23  }
  0x1f   :  { %s7265_s27 = sld [smem:[%s7981_s0 + %s7127_s22]]   ;;  %s7131_s22 = smov 24  }
  0x20   :  { %s7270_s4 = sld [smem:[%s7981_s0 + %s7128_s28]]   ;;  %s7132_s28 = smov 25  }
  0x23   :  { %8028 = sst [smem:[#allocation14_spill]] %s7255_s12 }
  0x24   :  { %8029 = sst [smem:[#allocation15_spill]] %s7260_s20 }
  0x25   :  { %8030 = sst [smem:[#allocation16_spill]] %s7265_s27 }
  0x26   :  { %8031 = sst [smem:[#allocation17_spill]] %s7270_s4 }
  0x27   :  { %s7275_s12 = sld [smem:[%s7981_s0 + %s7129_s7]]   ;;  %s7133_s7 = smov 26  }
  0x28   :  { %s7280_s20 = sld [smem:[%s7981_s0 + %s7130_s15]]   ;;  %s7134_s15 = smov 27  }
  0x29   :  { %s7285_s27 = sld [smem:[%s7981_s0 + %s7131_s22]]   ;;  %s7135_s22 = smov 28  }
  0x2a   :  { %s7290_s4 = sld [smem:[%s7981_s0 + %s7132_s28]]   ;;  %s7136_s28 = smov 29  }
  0x2d   :  { %8032 = sst [smem:[#allocation18_spill]] %s7275_s12 }
  0x2e   :  { %8033 = sst [smem:[#allocation19_spill]] %s7280_s20 }
  0x2f   :  { %8034 = sst [smem:[#allocation20_spill]] %s7285_s27 }
  0x30   :  { %8035 = sst [smem:[#allocation21_spill]] %s7290_s4 }
  0x31   :  { %s7295_s12 = sld [smem:[%s7981_s0 + %s7133_s7]]   ;;  %s7137_s7 = smov 30  }
  0x32   :  { %s7300_s20 = sld [smem:[%s7981_s0 + %s7134_s15]]   ;;  %s7138_s15 = smov 31  }
  0x33   :  { %s7305_s27 = sld [smem:[%s7981_s0 + %s7135_s22]]   ;;  %s7139_s22 = smov 32  }
  0x34   :  { %s7310_s4 = sld [smem:[%s7981_s0 + %s7136_s28]]   ;;  %s7140_s28 = smov 33  }
  0x37   :  { %8036 = sst [smem:[#allocation22_spill]] %s7295_s12 }
  0x38   :  { %8037 = sst [smem:[#allocation23_spill]] %s7300_s20 }
  0x39   :  { %8038 = sst [smem:[#allocation24_spill]] %s7305_s27 }
  0x3a   :  { %8039 = sst [smem:[#allocation25_spill]] %s7310_s4 }
  0x3b   :  { %s7315_s12 = sld [smem:[%s7981_s0 + %s7137_s7]]   ;;  %s7141_s7 = smov 34  }
  0x3c   :  { %s7320_s20 = sld [smem:[%s7981_s0 + %s7138_s15]]   ;;  %s7142_s15 = smov 35  }
  0x3d   :  { %s7325_s27 = sld [smem:[%s7981_s0 + %s7139_s22]]   ;;  %s7143_s22 = smov 36  }
  0x3e   :  { %s7330_s4 = sld [smem:[%s7981_s0 + %s7140_s28]]   ;;  %s7144_s28 = smov 37  }
  0x41   :  { %8040 = sst [smem:[#allocation26_spill]] %s7315_s12 }
  0x42   :  { %8041 = sst [smem:[#allocation27_spill]] %s7320_s20 }
  0x43   :  { %8042 = sst [smem:[#allocation28_spill]] %s7325_s27 }
  0x44   :  { %8043 = sst [smem:[#allocation29_spill]] %s7330_s4 }
  0x45   :  { %s7335_s12 = sld [smem:[%s7981_s0 + %s7141_s7]]   ;;  %s7145_s7 = smov 38  }
  0x46   :  { %s7340_s20 = sld [smem:[%s7981_s0 + %s7142_s15]]   ;;  %s7146_s15 = smov 39  }
  0x47   :  { %s7345_s27 = sld [smem:[%s7981_s0 + %s7143_s22]]  }
  0x48   :  { %s7350_s4 = sld [smem:[%s7981_s0 + %s7144_s28]]  }
  0x4b   :  { %8044 = sst [smem:[#allocation30_spill]] %s7335_s12 }
  0x4c   :  { %8045 = sst [smem:[#allocation31_spill]] %s7340_s20 }
  0x4d   :  { %s7355_s12 = sld [smem:[%s7981_s0 + %s7145_s7]]  }
  0x4e   :  { %8046 = sst [smem:[#allocation32_spill]] %s7350_s4 }
  0x4f   :  { %s7360_s20 = sld [smem:[%s7981_s0 + %s7146_s15]]  }
  0x50   :  { %84 = vsyncpa [#allocation3], 0 }
  0x51   :  { %86 = vsyncpa [#allocation3 + $0x1], 0  ;;  %s7362_s22 = smov 0   ;;  %s7364_s23 = smov 0  }
  0x52   :  { %s7366_s26 = smov 0   ;;  %s7368_s28 = smov 0  }
  0x53 LB: > { %s8047_s4 = sld [smem:[#allocation32_spill]]  ;;  %s8049_s6 = sld [smem:[#allocation9_spill]]  ;;  %s7106_s28 = sphi %s7368_s28, %s8087_s28   ;;  %s7102_s26 = sphi %s7366_s26, %s8086_s26   ;;  %s7098_s23 = sphi %s7364_s23, %s8085_s23   ;;  %s7094_s22 = sphi %s7362_s22, %s8084_s22  }
  0x54   : > { %s8048_s8 = sld [smem:[#allocation8_spill]]  ;;  %s8050_s3 = sld [smem:[#allocation7_spill]] }
  0x55   : > { %s7383_s0 = sadd.s32 4294967295, %s7106_s28   ;;  %s5729_s1 = sadd.s32 4294967294, %s7106_s28  }
  0x56   : > { %s7387_s2 = sadd.s32 1, %s7106_s28   ;;  %s948_s7 = sadd.s32 1, %s7102_s26 }
  0x57   : > { %s945_s10 = ssub.s32 %s7106_s28, %s7387_s2  ;;  %p958_p0 = scmp.ne.s32.totalorder %s7102_s26, %s7098_s23 }
  0x58   : > { %p946_p1 = scmp.eq.s32.totalorder %s945_s10, 0  ;;  %p959_p2 = scmp.eq.s32.totalorder %s7383_s0, 1 }
  0x59   : > { %p964_p3 = scmp.ne.s32.totalorder %s7098_s23, %s7094_s22  ;;  %p965_p4 = scmp.eq.s32.totalorder %s5729_s1, 1 }
  0x5a   : > { %s7398_s11 = scalar_select %p946_p1, %s7102_s26, %s948_s7  }
  0x5b   : > { %p7400_p5 = por %p959_p2, %p958_p0  ;;  %p7404_p6 = por %p965_p4, %p964_p3 }
  0x5c   : > { %p5732_p7 = scmp.ge.s32.totalorder %s7106_s28, 1  ;;  %p1128_p8 = scmp.lt.s32.totalorder %s7106_s28, 3 }
  0x5e   : > { %p1129_p9 = pnand %p5732_p7, %p1128_p8 }
  0x5f   : > { %s8053_s5 = sld [smem:[#allocation5_spill]] (!%p1129_p9)  ;;  %v1277_v0 = vld [vmem:[%s7180_s17] sm:$0xff] (!%p1129_p9)  ;;  %v1278_v1 = vld [vmem:[%s7180_s17 + $0x8] sm:$0xff] (!%p1129_p9)  ;;  %p1247_p10 = scmp.lt.s32.totalorder (!%p1129_p9), %s7383_s0, 1  ;;  %vm1426_vm0 = vcmask (!%p1129_p9), 261120   ;;  %vm1279_vm1 = vcmask (!%p1129_p9), 130048  }
  0x60   : > { %1132 = sbr.rel (%p1129_p9) target bundleno = 7002 (0x1b5a), region = 176  ;;  %v6469_v2 = vpack.c.bf16 (!%p1129_p9), %v1278_v1, %v1277_v0  ;;  %v1364_v3 = vld [vmem:[%s7175_s13] sm:$0xff] (!%p1129_p9)  ;;  %v1365_v4 = vld [vmem:[%s7175_s13 + $0x8] sm:$0xff] (!%p1129_p9)  ;;  %vm1473_vm2 = vcmask (!%p1129_p9), 257024   ;;  %v1382_v25 = vld [vmem:[%s7220_s24 + $0x10] sm:$0xff] (!%p1129_p9)  ;;  %vm2039_vm3 = vcmask (!%p1129_p9), 1043456  }
  0x61   : > { %v1427_v5 = vsel (!%p1129_p9), %vm1426_vm0, %v1364_v3, 0.0  ;;  %v1430_v6 = vsel (!%p1129_p9), %vm1426_vm0, %v1365_v4, 0.0  ;;  %v1380_v23 = vld [vmem:[%s7220_s24] sm:$0xff] (!%p1129_p9)  ;;  %v1381_v24 = vld [vmem:[%s7220_s24 + $0x8] sm:$0xff] (!%p1129_p9)  ;;  %v1383_v27 = vld [vmem:[%s7220_s24 + $0x18] sm:$0xff] (!%p1129_p9)  ;;  %vm7147_vm4 = vmmov (!%p1129_p9), 1  }
  0x62   : > { %6470 = vmatprep.subr.bf16.mxu0 (!%p1129_p9), %v6469_v2  ;;  %1428 = vadd.xlane.f32.xlu0 (!%p1129_p9), %v1427_v5  ;;  %v6473_v26 = vpack.c.bf16 (!%p1129_p9), %v1381_v24, %v1380_v23  ;;  %v6477_v28 = vpack.c.bf16 (!%p1129_p9), %v1383_v27, %v1382_v25  ;;  %v7436_v33 = vld [vmem:[%s7210_s14] ss:$0 sm:$0xff] (!%p1129_p9)  ;;  %v1385_v56 = vld [vmem:[%s7225_s30 + $0x8] sm:$0xff] (!%p1129_p9)  ;;  %v1386_v58 = vld [vmem:[%s7225_s30 + $0x10] sm:$0xff] (!%p1129_p9)  ;;  %vm1912_vm6 = vcmask (!%p1129_p9), 64512   ;;  %s7997_s10 = smov (!%p1129_p9), 120  }
  0x63   : > { %6472 = vmatpush3.bf16.msra.mxu0 (!%p1129_p9), %v6469_v2  ;;  %v7439_v35 = vld [vmem:[%s7215_s19] ss:$0 sm:$0xff] (!%p1129_p9)  ;;  %v1387_v59 = vld [vmem:[%s7225_s30 + $0x18] sm:$0xff] (!%p1129_p9)  ;;  %v1389_v62 = vld [vmem:[%s8049_s6 + $0x8] sm:$0xff] (!%p1129_p9)  ;;  %s8059_s9 = sld [smem:[#allocation6_spill]] (!%p1129_p9)  ;;  %vm2010_vm9 = vcmask (!%p1129_p9), 97280  }
  0x64   : > { %6474 = vmatprep.subr.bf16.mxu1 (!%p1129_p9), %v6473_v26  ;;  %v1384_v55 = vld [vmem:[%s7225_s30] sm:$0xff] (!%p1129_p9)  ;;  %v6485_v60 = vpack.c.bf16 (!%p1129_p9), %v1387_v59, %v1386_v58  ;;  %v1375_v1 = vld [vmem:[%s8048_s8 + $0x8] sm:$0xff] (!%p1129_p9)  ;;  %v1376_v2 = vld [vmem:[%s8048_s8 + $0x10] sm:$0xff] (!%p1129_p9)  ;;  %vm5226_vm10 = vcmask (!%p1129_p9), 523264   ;;  %vm7155_vm11 = vmmov (!%p1129_p9), 0  }
  0x65   : > { %6476 = vmatpush3.bf16.msra.mxu1 (!%p1129_p9), %v6473_v26  ;;  %v6481_v57 = vpack.c.bf16 (!%p1129_p9), %v1385_v56, %v1384_v55  ;;  %v1388_v61 = vld [vmem:[%s8049_s6] sm:$0xff] (!%p1129_p9)  ;;  %vm7485_vm5 = vmpackc.low (!%p1129_p9), %vm2039_vm3, %vm7147_vm4 }
  0x66   : > { %1431 = vadd.xlane.f32.xlu0 (!%p1129_p9), %v1430_v6  ;;  %6478 = vmatprep.subr.bf16.mxu1 (!%p1129_p9), %v6477_v28  ;;  %v6489_v63 = vpack.c.bf16 (!%p1129_p9), %v1389_v62, %v1388_v61  ;;  %v1374_v0 = vld [vmem:[%s8048_s8] sm:$0xff] (!%p1129_p9)  ;;  %vm7517_vm7 = vmpackc.low (!%p1129_p9), %vm1912_vm6, %vm1912_vm6 }
  0x67   : > { %s7416_s18 = scalar_select %p1247_p10, %s7383_s0, 1 }
  0x69   : > { %s7420_s1 = sshll.u32 %s7416_s18, 4  ;;  %6480 = vmatpush3.bf16.msra.mxu1 %v6477_v28 }
  0x6a   : > { %s1251_s7 = scalar_lea.vmem %s8053_s5, %s7420_s1  ;;  %6482 = vmatprep.subr.bf16.mxu1 %v6481_v57  ;;  %s8063_s5 = sld [smem:[#allocation11_spill]] }
  0x6b   : > { %v1275_v7 = vld [vmem:[%s1251_s7] sm:$0xff]  ;;  %v1276_v8 = vld [vmem:[%s1251_s7 + $0x8] sm:$0xf]  ;;  %s1259_s7 = scalar_lea.vmem %s7185_s21, %s7420_s1 }
  0x6c   : > { %6110 = vmatprep.mubr.msk.f32.mxu0 %vm1279_vm1, %v1275_v7 }
  0x6d   : > { %6111 = vmatmul.mubr.msk.f32.vlgmr.msra.gmra.mrb[0].mxu0 %vm1279_vm1, %v1276_v8 }
  0xef   : > { %v1429_v9 = vpop.xlane.xlu0 %1428 }
  0xf0   : > { %v1434_v10 = vmul.f32 0.03125, %v1429_v9 }
  0xf2   : > { %v1436_v11 = vsub.f32 %v1364_v3, %v1434_v10  ;;  %v6497_v3 = vpack.c.bf16 %v1375_v1, %v1374_v0 }
  0xf3   : > { %v1432_v14 = vpop.xlane.xlu0 %1431 }
  0xf4   : > { %v1438_v12 = vmul.f32 %v1436_v11, %v1436_v11  ;;  %v1435_v15 = vmul.f32 0.03125, %v1432_v14  ;;  %6498 = vmatprep.subr.bf16.mxu0 %v6497_v3 }
  0xf5   : > { %6500 = vmatpush3.bf16.msra.mxu0 %v6497_v3 }
  0xf6   : > { %v1440_v13 = vsel %vm1426_vm0, %v1438_v12, 0.0  ;;  %v1437_v17 = vsub.f32 %v1365_v4, %v1435_v15  ;;  %v1377_v4 = vld [vmem:[%s8048_s8 + $0x18] sm:$0xff]  ;;  %s8070_s8 = sld [smem:[#allocation23_spill]] }
  0xf7   : > { %1441 = vadd.xlane.f32.xlu0 %v1440_v13  ;;  %v6501_v5 = vpack.c.bf16 %v1377_v4, %v1376_v2 }
  0xf8   : > { %v1439_v20 = vmul.f32 %v1437_v17, %v1437_v17 }
  0xf9   : > { %6502 = vmatprep.subr.bf16.mxu0 %v6501_v5 }
  0xfa   : > { %v1443_v22 = vsel %vm1426_vm0, %v1439_v20, 0.0  ;;  %6504 = vmatpush3.bf16.msra.mxu0 %v6501_v5 }
 0x140   : > { %v6112_v16 = vpop.f32.mrb[0].mxu0 }
 0x141   : > { %v1352_v18 = vpop.f32.mrb[1].mxu0  ;;  %v1474_v21 = vsel %vm1473_vm2, %v6112_v16, 0.0 }
 0x142   : > { %v1470_v19 = vsel %vm1426_vm0, %v1352_v18, 0.0 }
 0x143   : > { %1471 = vadd.xlane.f32.xlu1 %v1470_v19  ;;  %v1391_v19 = vld [vmem:[%s8049_s6 + $0x18] sm:$0xff] }
 0x147   : > { %1475 = vadd.xlane.f32.xlu1 %v1474_v21 }
 0x14b   : > { %1444 = vadd.xlane.f32.xlu1 %v1443_v22 }
 0x184   : > { %v1442_v29 = vpop.xlane.xlu0 %1441 }
 0x185   : > { %v1446_v30 = vmul.f32 0.03125, %v1442_v29 }
 0x187   : > { %v1448_v31 = vadd.f32 1e-05, %v1446_v30 }
 0x189   : > { %6946 = vrsqrt.f32 %v1448_v31 }
 0x193   : > { %v6947_v32 = vpop.eup %6946 }
 0x194   : > { %v1452_v34 = vmul.f32 %v6947_v32, %v1436_v11  ;;  %v1371_v32 = vld [vmem:[%s7195_s29 + $0x8] sm:$0xff] }
 0x196   : > { %v1460_v36 = vmul.f32 %v7436_v33, %v1452_v34  ;;  %v1370_v34 = vld [vmem:[%s7195_s29] sm:$0xff] }
 0x198   : > { %v7443_v37 = vadd.f32 %v7439_v35, %v1460_v36 }
 0x19a   : > { %6121 = vmatprep.mubr.msk.f32.mxu1 %vm1426_vm0, %v7443_v37 }
 0x1d0   : > { %v1472_v38 = vpop.xlane.xlu1 %1471 }
 0x1d1   : > { %v1477_v39 = vmul.f32 0.03125, %v1472_v38 }
 0x1d3   : > { %v1479_v40 = vsub.f32 %v1352_v18, %v1477_v39  ;;  %v1390_v18 = vld [vmem:[%s8049_s6 + $0x10] sm:$0xff]  ;;  %s8064_s6 = sld [smem:[#allocation12_spill]] }
 0x1d4   : > { %v1476_v41 = vpop.xlane.xlu1 %1475  ;;  %v6493_v22 = vpack.c.bf16 %v1391_v19, %v1390_v18 }
 0x1d5   : > { %v1478_v42 = vmul.f32 0.03125, %v1476_v41  ;;  %v1481_v43 = vmul.f32 %v1479_v40, %v1479_v40 }
 0x1d7   : > { %v1480_v44 = vsub.f32 %v6112_v16, %v1478_v42  ;;  %v1483_v45 = vsel %vm1426_vm0, %v1481_v43, 0.0 }
 0x1d8   : > { %1484 = vadd.xlane.f32.xlu0 %v1483_v45  ;;  %v1445_v46 = vpop.xlane.xlu1 %1444  ;;  %v1367_v45 = vld [vmem:[%s1259_s7 + $0x8] sm:$0xf] }
 0x1d9   : > { %v1447_v47 = vmul.f32 0.03125, %v1445_v46  ;;  %v1482_v48 = vmul.f32 %v1480_v44, %v1480_v44 }
 0x1db   : > { %v1449_v49 = vadd.f32 1e-05, %v1447_v47  ;;  %v1486_v50 = vsel %vm1473_vm2, %v1482_v48, 0.0  ;;  %v1366_v47 = vld [vmem:[%s1259_s7] sm:$0xff]  ;;  %s1254_s7 = scalar_lea.vmem %s8059_s9, %s7416_s18  ;;  %s7999_s18 = smov 104  }
 0x1dc   : > { %1487 = vadd.xlane.f32.xlu1 %v1486_v50 }
 0x1dd   : > { %6948 = vrsqrt.f32 %v1449_v49 }
 0x1e7   : > { %v6949_v51 = vpop.eup %6948 }
 0x1e8   : > { %v1453_v52 = vmul.f32 %v6949_v51, %v1437_v17 }
 0x1ea   : > { %v1461_v53 = vmul.f32 %v7436_v33, %v1453_v52 }
 0x1ec   : > { %v7451_v54 = vadd.f32 %v7439_v35, %v1461_v53 }
 0x1ee   : > { %6122 = vmatmul.mubr.msk.f32.vlgmr.msra.gmra.mrb[0].mxu1 %vm1426_vm0, %v7451_v54 }
 0x1ef   : > { %6484 = vmatpush3.bf16.msra.mxu1 %v6481_v57 }
 0x1f0   : > { %6486 = vmatprep.subr.bf16.mxu1 %v6485_v60 }
 0x1f3   : > { %6488 = vmatpush3.bf16.msra.mxu1 %v6485_v60 }
 0x1f4   : > { %6490 = vmatprep.subr.bf16.mxu1 %v6489_v63 }
 0x265   : > { %v1485_v6 = vpop.xlane.xlu0 %1484 }
 0x266   : > { %v1489_v7 = vmul.f32 0.03125, %v1485_v6 }
 0x268   : > { %v1491_v8 = vadd.f32 1e-05, %v1489_v7 }
 0x269   : > { %v1488_v9 = vpop.xlane.xlu1 %1487 }
 0x26a   : > { %6950 = vrsqrt.f32 %v1491_v8  ;;  %v1490_v10 = vmul.f32 0.03125, %v1488_v9  ;;  %v2003_v9 = vlaneseq }
 0x26c   : > { %v1492_v11 = vadd.f32 1e-05, %v1490_v10  ;;  %v1361_v10 = vld [vmem:[%s1254_s7] sm:$0x1]  ;;  %s8060_s7 = sld [smem:[#allocation10_spill]] }
 0x26d   : > { %vm1362_vm8 = vcmp.gt.f32.partialorder %v1361_v10, 0.0 }
 0x26e   : > { %6952 = vrsqrt.f32 %v1492_v11  ;;  %v2004_v11 = vshrl.u32 %v2003_v9, 7 }
 0x274   : > { %v6951_v12 = vpop.eup %6950 }
 0x275   : > { %v7465_v13 = vmul.f32 %v6951_v12, %v1479_v40  ;;  %v2005_v12 = vsub.s32 0, %v2004_v11 }
 0x277   : > { %v1497_v14 = vmul.f32 %v7436_v33, %v7465_v13 }
 0x278   : > { %v6953_v15 = vpop.eup %6952 }
 0x279   : > { %v7469_v16 = vmul.f32 %v6953_v15, %v1480_v44  ;;  %v1499_v17 = vadd.f32 %v7439_v35, %v1497_v14  ;;  %v7150_v14 = vmov -1e+30  }
 0x27a   : > { %v1363_v15 = vsel %vm1362_vm8, 0.0, %v7150_v14 }
 0x27b   : > { %6132 = vmatprep.mubr.msk.f32.mxu1 %vm1426_vm0, %v1499_v17  ;;  %v1498_v20 = vmul.f32 %v7436_v33, %v7469_v16  ;;  %v1373_v33 = vld [vmem:[%s8050_s3 + $0x8] sm:$0xff] }
 0x27d   : > { %v1500_v21 = vadd.f32 %v7439_v35, %v1498_v20  ;;  %v1372_v35 = vld [vmem:[%s8050_s3] sm:$0xff]  ;;  %s1264_s3 = scalar_lea.vmem %s7190_s25, %s7420_s1 }
 0x27e   : > { %v1369_v46 = vld [vmem:[%s1264_s3 + $0x8] sm:$0xf]  ;;  %v1368_v48 = vld [vmem:[%s1264_s3] sm:$0xff]  ;;  %s8058_s3 = smov 120  }
 0x27f   : > { %6133 = vmatmul.mubr.msk.f32.vlgmr.msra.gmra.mrb[2].mxu1 %vm1426_vm0, %v1500_v21 }
 0x280   : > { %6492 = vmatpush3.bf16.msra.mxu1 %v6489_v63  ;;  %6143 = vmatprep.mubr.msk.f32.mxu1 %vm1426_vm0, %v1499_v17  ;;  %v7549_v17 = vrot.slane %v1363_v15, %v2005_v12 }
 0x281   : > { %6494 = vmatprep.subr.bf16.mxu1 %v6493_v22 }
 0x284   : > { %6496 = vmatpush3.bf16.msra.mxu1 %v6493_v22 }
 0x285   : > { %6506 = vmatprep.subr.bf16.mxu1 %v6497_v3 }
 0x287   : > { %6144 = vmatmul.mubr.msk.f32.vlgmr.msra.gmra.mrb[4].mxu1 %vm1426_vm0, %v1500_v21 }
 0x288   : > { %6508 = vmatpush3.bf16.msra.mxu1 %v6497_v3 }
 0x289   : > { %6510 = vmatprep.subr.bf16.mxu1 %v6501_v5 }
 0x28c   : > { %6512 = vmatpush3.bf16.msra.mxu1 %v6501_v5 }
 0x2c1   : > { %v6123_v23 = vpop.f32.mrb[0].mxu1 }
 0x2c2   : > { %v1573_v24 = vpop.f32.mrb[1].mxu1  ;;  %v1739_v38 = vmul.f32 %v6123_v23, %v1371_v32 }
 0x2c3   : > { %6154 = vmatprep.mubr.msk.f32.mxu0 %vm1426_vm0, %v1573_v24  ;;  %v1738_v41 = vmul.f32 %v1573_v24, %v1370_v34 }
 0x2c4   : > { %6155 = vmatmul.mubr.msk.f32.vlgmr.msra.gmra.mrb[2].mxu0 %vm1426_vm0, %v6123_v23 }
 0x352   : > { %v6134_v25 = vpop.f32.mrb[2].mxu1 }
 0x353   : > { %v1654_v26 = vpop.f32.mrb[3].mxu1  ;;  %v1826_v50 = vmul.f32 %v6134_v25, %v1367_v45 }
 0x354   : > { %6165 = vmatprep.mubr.msk.f32.mxu1 %vm1426_vm0, %v1654_v26  ;;  %v1825_v53 = vmul.f32 %v1654_v26, %v1366_v47 }
 0x355   : > { %6166 = vmatmul.mubr.msk.f32.vlgmr.msra.gmra.mrb[6].mxu1 %vm1426_vm0, %v6134_v25 }
 0x35a   : > { %v6145_v27 = vpop.f32.mrb[4].mxu1 }
 0x35b   : > { %v1729_v28 = vpop.f32.mrb[5].mxu1 }
 0x35c   : > { %v6519_v30 = vpack.c.bf16 %v6145_v27, %v1729_v28  ;;  %v7489_v31 = vpack.i.bf16 %v6145_v27, %v1729_v28 }
 0x35e   : > { %6521 = vmatprep.subr.msk.bf16.mxu1 %vm7485_vm5, %v6519_v30 }
 0x35f   : > { %6524 = vmatpush3.bf16.msk.msra.mxu1 %vm7485_vm5, %v6519_v30 }
 0x397   : > { %v6156_v36 = vpop.f32.mrb[2].mxu0 }
 0x398   : > { %v1822_v39 = vmul.f32 %v6156_v36, %v1373_v33  ;;  %v1812_v40 = vpop.f32.mrb[3].mxu0 }
 0x399   : > { %v1821_v42 = vmul.f32 %v1812_v40, %v1372_v35 }
 0x39a   : > { %v7499_v43 = vadd.f32 %v1822_v39, %v1739_v38 }
 0x39b   : > { %v7501_v44 = vadd.f32 %v1821_v42, %v1738_v41 }
 0x39d   : > { %2118 = vrot.lane.b32.xlu1 %v7501_v44, %s7997_s10  ;;  %6172 = vmatprep.mubr.msk.f32.mxu0 %vm1912_vm6, %v7501_v44 }
 0x3a1   : > { %2120 = vrot.lane.b32.xlu1 %v7499_v43, %s7997_s10  ;;  %s8001_s10 = smov 112  }
 0x40f   : > { %v2119_v61 = vpop.permute.xlu1 %2118 }
 0x413   : > { %v2121_v62 = vpop.permute.xlu1 %2120 }
 0x428   : > { %v6167_v49 = vpop.f32.mrb[6].mxu1 }
 0x429   : > { %v1909_v51 = vmul.f32 %v6167_v49, %v1369_v46  ;;  %v1899_v52 = vpop.f32.mrb[7].mxu1 }
 0x42a   : > { %v1908_v55 = vmul.f32 %v1899_v52, %v1368_v48 }
 0x42b   : > { %v1911_v56 = vadd.f32 %v1909_v51, %v1826_v50 }
 0x42c   : > { %v1910_v57 = vadd.f32 %v1908_v55, %v1825_v53 }
 0x42e   : > { %v7513_v58 = vpack.i.bf16 %v1911_v56, %v1910_v57  ;;  %v6513_v59 = vpack.c.bf16 %v1911_v56, %v1910_v57 }
 0x430   : > { %6892 = vrot.lane.b32.xlu1 %v7513_v58, %s8001_s10  ;;  %6887 = vrot.lane.b32.xlu0 %v7513_v58, %s8058_s3 }
 0x431   : > { %6515 = vmatprep.subr.msk.bf16.mxu0 %vm7517_vm7, %v6513_v59 }
 0x432   : > { %6518 = vmatpush3.bf16.xpose.msk.msra.mxu0 %vm7517_vm7, %v6513_v59 }
 0x434   : > { %2488 = vrot.lane.b32.xlu1 %v7499_v43, %s8001_s10  ;;  %2486 = vrot.lane.b32.xlu0 %v7501_v44, %s8001_s10 }
 0x439   : > { %6173 = vmatmul.mubr.msk.f32.vlgmr.msra.gmra.mrb[4].mxu0 %vm1912_vm6, %v7499_v43 }
 0x43a   : > { %6186 = vmatprep.mubr.msk.f32.mxu0 %vm1912_vm6, %v2119_v61 }
 0x4a2   : > { %v6888_v63 = vpop.permute.xlu0 %6887  ;;  %v6893_v0 = vpop.permute.xlu1 %6892 }
 0x4a3   : > { %v6890_v1 = vunpack.i.h.bf16 %v6888_v63  ;;  %v6889_v2 = vunpack.i.l.bf16 %v6888_v63  ;;  %v6895_v3 = vunpack.i.h.bf16 %v6893_v0  ;;  %v6894_v4 = vunpack.i.l.bf16 %v6893_v0 }
 0x4a5   : > { %v6525_v5 = vpack.c.bf16 %v6890_v1, %v6889_v2  ;;  %v6537_v6 = vpack.c.bf16 %v6895_v3, %v6894_v4 }
 0x4a6   : > { %v2487_v7 = vpop.permute.xlu0 %2486  ;;  %v2489_v8 = vpop.permute.xlu1 %2488 }
 0x4a7   : > { %6527 = vmatprep.subr.msk.bf16.mxu0 %vm7517_vm7, %v6525_v5 }
 0x4a8   : > { %6530 = vmatpush3.bf16.xpose.msk.msra.mxu0 %vm7517_vm7, %v6525_v5 }
 0x4a9   : > { %6539 = vmatprep.subr.msk.bf16.mxu0 %vm7517_vm7, %v6537_v6 }
 0x4af   : > { %6187 = vmatmul.mubr.msk.f32.vlgmr.msra.gmra.mrb[6].mxu0 %vm1912_vm6, %v2121_v62 }
 0x4b0   : > { %6542 = vmatpush3.bf16.xpose.msk.msra.mxu0 %vm7517_vm7, %v6537_v6  ;;  %6210 = vmatprep.mubr.msk.f32.mxu0 %vm1912_vm6, %v2487_v7 }
 0x4b7   : > { %6211 = vmatmul.mubr.msk.f32.vlgmr.msra.gmra.mrb[8].mxu0 %vm1912_vm6, %v2489_v8 }
 0x50c   : > { %v6174_v18 = vpop.f32.mrb[4].mxu0 }
 0x50d   : > { %v2001_v19 = vmul.f32 0.35355338, %v6174_v18  ;;  %v1991_v20 = vpop.f32.mrb[5].mxu0 }
 0x50e   : > { %v2000_v21 = vmul.f32 0.35355338, %v1991_v20 }
 0x50f   : > { %v2009_v22 = vadd.f32 %v7549_v17, %v2001_v19 }
 0x510   : > { %v2008_v23 = vadd.f32 %v7549_v17, %v2000_v21 }
 0x511   : > { %v2014_v24 = vsel %vm2010_vm9, %v2009_v22, -inf }
 0x512   : > { %2015 = vmax.xlane.f32.xlu1 %v2014_v24  ;;  %v2011_v25 = vsel %vm2010_vm9, %v2008_v23, -inf }
 0x513   : > { %2012 = vmax.xlane.f32.xlu0 %v2011_v25 }
 0x582   : > { %v6188_v26 = vpop.f32.mrb[6].mxu0 }
 0x583   : > { %v2200_v27 = vpop.f32.mrb[7].mxu0  ;;  %v2210_v28 = vmul.f32 0.35355338, %v6188_v26 }
 0x584   : > { %v2209_v30 = vmul.f32 0.35355338, %v2200_v27 }
 0x585   : > { %v2212_v34 = vadd.f32 %v2210_v28, %v7549_v17 }
 0x586   : > { %v2211_v32 = vadd.f32 %v2209_v30, %v7549_v17 }
 0x587   : > { %v2216_v38 = vsel %vm2010_vm9, %v2212_v34, -inf }
 0x588   : > { %v2213_v33 = vsel %vm2010_vm9, %v2211_v32, -inf }
 0x589   : > { %2214 = vmax.xlane.f32.xlu0 %v2213_v33 }
 0x58a   : > { %v6212_v35 = vpop.f32.mrb[8].mxu0 }
 0x58b   : > { %v2568_v36 = vpop.f32.mrb[9].mxu0  ;;  %v2578_v8 = vmul.f32 0.35355338, %v6212_v35 }
 0x58d   : > { %2217 = vmax.xlane.f32.xlu0 %v2216_v38 }
 0x59f   : > { %v2016_v39 = vpop.xlane.xlu1 %2015 }
 0x5a0   : > { %v2018_v40 = vsub.f32 %v2009_v22, %v2016_v39  ;;  %v2013_v41 = vpop.xlane.xlu0 %2012 }
 0x5a1   : > { %v2017_v42 = vsub.f32 %v2008_v23, %v2013_v41  ;;  %v1393_v41 = vld [vmem:[%s8060_s7 + $0x8] sm:$0xff] }
 0x5a2   : > { %v2021_v45 = vmul.f32 1.442695, %v2018_v40 }
 0x5a3   : > { %v2019_v46 = vmul.f32 1.442695, %v2017_v42  ;;  %v1392_v42 = vld [vmem:[%s8060_s7] sm:$0xff] }
 0x5a4   : > { %6954 = vpow2.f32 %v2021_v45 }
 0x5a5   : > { %6956 = vpow2.f32 %v2019_v46 }
 0x5ae   : > { %v6955_v47 = vpop.eup %6954 }
 0x5af   : > { %v6957_v48 = vpop.eup %6956  ;;  %v2026_v49 = vsel %vm2010_vm9, %v6955_v47, 0.0 }
 0x5b0   : > { %2027 = vadd.xlane.f32.xlu1 %v2026_v49  ;;  %v2023_v50 = vsel %vm2010_vm9, %v6957_v48, 0.0 }
 0x5b1   : > { %2024 = vadd.xlane.f32.xlu0 %v2023_v50 }
 0x616   : > { %v2215_v51 = vpop.xlane.xlu0 %2214 }
 0x617   : > { %v2219_v52 = vsub.f32 %v2211_v32, %v2215_v51 }
 0x619   : > { %v2221_v53 = vmul.f32 1.442695, %v2219_v52 }
 0x61a   : > { %v2218_v55 = vpop.xlane.xlu0 %2217 }
 0x61b   : > { %6958 = vpow2.f32 %v2221_v53  ;;  %v2220_v56 = vsub.f32 %v2212_v34, %v2218_v55 }
 0x61d   : > { %v2223_v57 = vmul.f32 1.442695, %v2220_v56 }
 0x61f   : > { %6960 = vpow2.f32 %v2223_v57 }
 0x625   : > { %v6959_v59 = vpop.eup %6958 }
 0x626   : > { %v2225_v61 = vsel %vm2010_vm9, %v6959_v59, 0.0 }
 0x627   : > { %2226 = vadd.xlane.f32.xlu0 %v2225_v61 }
 0x629   : > { %v6961_v62 = vpop.eup %6960 }
 0x62a   : > { %v2228_v63 = vsel %vm2010_vm9, %v6961_v62, 0.0 }
 0x62b   : > { %2229 = vadd.xlane.f32.xlu1 %v2228_v63 }
 0x63c   : > { %6902 = vrot.lane.b32.xlu1 %v7513_v58, %s7999_s18  ;;  %v2577_v58 = vmul.f32 0.35355338, %v2568_v36 }
 0x63d   : > { %v2028_v0 = vpop.xlane.xlu1 %2027  ;;  %6897 = vrot.lane.b32.xlu0 %v7489_v31, %s8058_s3 }
 0x63e   : > { %6962 = vrcp.f32 %v2028_v0  ;;  %v2025_v1 = vpop.xlane.xlu0 %2024  ;;  %v2579_v6 = vadd.f32 %v2577_v58, %v7549_v17  ;;  %v1394_v58 = vld [vmem:[%s8060_s7 + $0x10] sm:$0xff] }
 0x63f   : > { %6964 = vrcp.f32 %v2025_v1 }
 0x640   : > { %2774 = vrot.lane.b32.xlu1 %v7501_v44, %s7999_s18  ;;  %v2581_v7 = vsel %vm2010_vm9, %v2579_v6, -inf  ;;  %v2580_v44 = vadd.f32 %v2578_v8, %v7549_v17 }
 0x642   : > { %v2584_v9 = vsel %vm2010_vm9, %v2580_v44, -inf }
 0x644   : > { %2776 = vrot.lane.b32.xlu1 %v7499_v43, %s7999_s18 }
 0x648   : > { %v6963_v2 = vpop.eup %6962 }
 0x649   : > { %v6965_v3 = vpop.eup %6964  ;;  %v2032_v5 = vmul.f32 %v6963_v2, %v6955_v47 }
 0x64a   : > { %v2031_v4 = vmul.f32 %v6965_v3, %v6957_v48 }
 0x64c   : > { %6179 = vmatprep.mubr.msk.f32.mxu1 %vm2010_vm9, %v2031_v4 }
 0x64d   : > { %6180 = vmatmul.mubr.msk.f32.vlgmr.msra.gmra.mrb[8].mxu1 %vm2010_vm9, %v2032_v5 }
 0x65c   : > { %2582 = vmax.xlane.f32.xlu0 %v2581_v7 }
 0x668   : > { %2585 = vmax.xlane.f32.xlu1 %v2584_v9 }
 0x6b4   : > { %v2227_v43 = vpop.xlane.xlu0 %2226 }
 0x6b5   : > { %6966 = vrcp.f32 %v2227_v43 }
 0x6b8   : > { %v6898_v10 = vpop.permute.xlu0 %6897  ;;  %v2230_v11 = vpop.xlane.xlu1 %2229 }
 0x6b9   : > { %v6900_v12 = vunpack.i.h.bf16 %v6898_v10  ;;  %v6899_v14 = vunpack.i.l.bf16 %v6898_v10  ;;  %6968 = vrcp.f32 %v2230_v11 }
 0x6bb   : > { %v6531_v15 = vpack.c.bf16 %v6900_v12, %v6899_v14 }
 0x6bc   : > { %v6903_v18 = vpop.permute.xlu1 %6902 }
 0x6bd   : > { %v6905_v19 = vunpack.i.h.bf16 %v6903_v18  ;;  %v6904_v20 = vunpack.i.l.bf16 %v6903_v18  ;;  %6533 = vmatprep.subr.msk.bf16.mxu1 %vm7485_vm5, %v6531_v15 }
 0x6be   : > { %6536 = vmatpush3.bf16.msk.msra.mxu1 %vm7485_vm5, %v6531_v15 }
 0x6bf   : > { %v6967_v21 = vpop.eup %6966  ;;  %v6549_v22 = vpack.c.bf16 %v6905_v19, %v6904_v20  ;;  %6196 = vmatprep.subr.mxu1 %v1393_v41 }
 0x6c0   : > { %v2775_v23 = vpop.permute.xlu1 %2774  ;;  %v2233_v24 = vmul.f32 %v6967_v21, %v6959_v59 }
 0x6c1   : > { %6551 = vmatprep.subr.msk.bf16.mxu0 %vm7517_vm7, %v6549_v22  ;;  %6229 = vmatprep.mubr.msk.f32.mxu0 %vm1912_vm6, %v2775_v23 }
 0x6c2   : > { %6193 = vmatprep.mubr.msk.f32.mxu1 %vm2010_vm9, %v2233_v24  ;;  %6554 = vmatpush3.bf16.xpose.msk.msra.mxu0 %vm7517_vm7, %v6549_v22 }
 0x6c3   : > { %v6969_v25 = vpop.eup %6968 }
 0x6c4   : > { %v2234_v26 = vmul.f32 %v6969_v25, %v6961_v62  ;;  %v2777_v27 = vpop.permute.xlu1 %2776  ;;  %v1395_v25 = vld [vmem:[%s8060_s7 + $0x18] sm:$0xff]  ;;  %s8065_s7 = sld [smem:[#allocation16_spill]] }
 0x6c6   : > { %6194 = vmatmul.mubr.msk.f32.vlgmr.msra.gmra.mrb[10].mxu1 %vm2010_vm9, %v2234_v26 }
 0x6c7   : > { %6197 = vmatpush3.msra.mxu1 %v1393_v41 }
 0x6c8   : > { %6201 = vmatprep.subr.mxu1 %v1392_v42 }
 0x6c9   : > { %6230 = vmatmul.mubr.msk.f32.vlgmr.msra.gmra.mrb[10].mxu0 %vm1912_vm6, %v2777_v27 }
 0x6e9   : > { %v2583_v28 = vpop.xlane.xlu0 %2582 }
 0x6ea   : > { %v2587_v30 = vsub.f32 %v2579_v6, %v2583_v28 }
 0x6ec   : > { %v2589_v34 = vmul.f32 1.442695, %v2587_v30 }
 0x6f5   : > { %v2586_v32 = vpop.xlane.xlu1 %2585 }
 0x6f6   : > { %v2588_v33 = vsub.f32 %v2580_v44, %v2586_v32 }
 0x6f8   : > { %v2591_v35 = vmul.f32 1.442695, %v2588_v33 }
 0x6fa   : > { %6970 = vpow2.f32 %v2591_v35 }
 0x6fb   : > { %6972 = vpow2.f32 %v2589_v34 }
 0x704   : > { %v6971_v36 = vpop.eup %6970 }
 0x705   : > { %v2596_v38 = vsel %vm2010_vm9, %v6971_v36, 0.0  ;;  %v6973_v39 = vpop.eup %6972 }
 0x706   : > { %2597 = vadd.xlane.f32.xlu0 %v2596_v38  ;;  %v2593_v40 = vsel %vm2010_vm9, %v6973_v39, 0.0 }
 0x70a   : > { %2594 = vadd.xlane.f32.xlu0 %v2593_v40 }
 0x720   : > { %v6181_v45 = vpop.f32.mrb[8].mxu1  ;;  %6907 = vrot.lane.b32.xlu0 %v7489_v31, %s8001_s10  ;;  %s8062_s10 = sld [smem:[#allocation15_spill]] }
 0x721   : > { %v2109_v46 = vpop.f32.mrb[9].mxu1 }
 0x793   : > { %v2598_v47 = vpop.xlane.xlu0 %2597 }
 0x797   : > { %v2595_v48 = vpop.xlane.xlu0 %2594 }
 0x798   : > { %6974 = vrcp.f32 %v2595_v48 }
 0x799   : > { %6976 = vrcp.f32 %v2598_v47  ;;  %v6195_v49 = vpop.f32.mrb[10].mxu1 }
 0x79a   : > { %v2315_v50 = vpop.f32.mrb[11].mxu1 }
 0x79b   : > { %6198 = vmatprep.mubr.msk.f32.mxu1 %vm1912_vm6, %v2315_v50  ;;  %v6908_v51 = vpop.permute.xlu0 %6907 }
 0x79c   : > { %v6910_v52 = vunpack.i.h.bf16 %v6908_v51  ;;  %v6909_v53 = vunpack.i.l.bf16 %v6908_v51  ;;  %6199 = vmatmul.mubr.msk.f32.vlgmr.msra.gmra.mrb[12].mxu1 %vm1912_vm6, %v6195_v49  ;;  %v6231_v55 = vpop.f32.mrb[10].mxu0 }
 0x79d   : > { %6203 = vmatprep.mubr.msk.f32.mxu1 %vm1912_vm6, %v2109_v46  ;;  %v2856_v56 = vpop.f32.mrb[11].mxu0  ;;  %6202 = vmatpush3.msra.mxu1 %v1392_v42  ;;  %v2866_v59 = vmul.f32 0.35355338, %v6231_v55  ;;  %v1407_v55 = vld [vmem:[%s8062_s10 + $0x8] sm:$0xff] }
 0x79e   : > { %v6543_v57 = vpack.c.bf16 %v6910_v52, %v6909_v53  ;;  %v2865_v61 = vmul.f32 0.35355338, %v2856_v56  ;;  %v1406_v52 = vld [vmem:[%s8062_s10] sm:$0xff] }
 0x79f   : > { %v2868_v1 = vadd.f32 %v2866_v59, %v7549_v17  ;;  %v6569_v56 = vpack.c.bf16 %v1407_v55, %v1406_v52 }
 0x7a0   : > { %6545 = vmatprep.subr.msk.bf16.mxu1 %vm7485_vm5, %v6543_v57  ;;  %v2867_v62 = vadd.f32 %v2865_v61, %v7549_v17 }
 0x7a1   : > { %v2872_v5 = vsel %vm2010_vm9, %v2868_v1, -inf }
 0x7a2   : > { %v6975_v63 = vpop.eup %6974  ;;  %v2869_v0 = vsel %vm2010_vm9, %v2867_v62, -inf }
 0x7a3   : > { %v6977_v2 = vpop.eup %6976  ;;  %2870 = vmax.xlane.f32.xlu1 %v2869_v0  ;;  %v2601_v3 = vmul.f32 %v6975_v63, %v6973_v39  ;;  %v1409_v63 = vld [vmem:[%s8062_s10 + $0x18] sm:$0xff] }
 0x7a4   : > { %6204 = vmatmul.mubr.msk.f32.vlgmr.msra.gmra.mrb[12].mxu1 %vm1912_vm6, %v6181_v45  ;;  %v2602_v4 = vmul.f32 %v6977_v2, %v6971_v36 }
 0x7a5   : > { %6548 = vmatpush3.bf16.msk.msra.mxu1 %vm7485_vm5, %v6543_v57  ;;  %6217 = vmatprep.mubr.msk.f32.mxu1 %vm2010_vm9, %v2601_v3 }
 0x7a6   : > { %6220 = vmatprep.subr.mxu1 %v1394_v58 }
 0x7a7   : > { %2873 = vmax.xlane.f32.xlu1 %v2872_v5 }
 0x7a8   : > { %6218 = vmatmul.mubr.msk.f32.vlgmr.msra.gmra.mrb[14].mxu1 %vm2010_vm9, %v2602_v4 }
 0x7a9   : > { %6221 = vmatpush3.msra.mxu1 %v1394_v58 }
 0x830   : > { %v2871_v6 = vpop.xlane.xlu1 %2870 }
 0x831   : > { %v2875_v7 = vsub.f32 %v2867_v62, %v2871_v6  ;;  %v1408_v62 = vld [vmem:[%s8062_s10 + $0x10] sm:$0xff] }
 0x832   : > { %v6573_v0 = vpack.c.bf16 %v1409_v63, %v1408_v62 }
 0x833   : > { %v2877_v9 = vmul.f32 1.442695, %v2875_v7  ;;  %v5794_v7 = vld [vmem:[%s8063_s5] ss:$0 sm:$0xff]  ;;  %s8066_s5 = sld [smem:[#allocation13_spill]] }
 0x834   : > { %v2874_v8 = vpop.xlane.xlu1 %2873 }
 0x835   : > { %v2876_v44 = vsub.f32 %v2868_v1, %v2874_v8 }
 0x837   : > { %v2879_v43 = vmul.f32 1.442695, %v2876_v44  ;;  %v5795_v44 = vld [vmem:[%s8064_s6] ss:$0 sm:$0xff]  ;;  %s8067_s6 = sld [smem:[#allocation24_spill]] }
 0x839   : > { %6978 = vpow2.f32 %v2879_v43 }
 0x83a   : > { %6980 = vpow2.f32 %v2877_v9 }
 0x843   : > { %v6979_v10 = vpop.eup %6978 }
 0x844   : > { %v2884_v11 = vsel %vm2010_vm9, %v6979_v10, 0.0  ;;  %v6981_v12 = vpop.eup %6980 }
 0x845   : > { %2885 = vadd.xlane.f32.xlu1 %v2884_v11  ;;  %v2881_v14 = vsel %vm2010_vm9, %v6981_v12, 0.0 }
 0x849   : > { %2882 = vadd.xlane.f32.xlu1 %v2881_v14 }
 0x85a   : > { %6912 = vrot.lane.b32.xlu1 %v7489_v31, %s7999_s18  ;;  %s8061_s18 = sld [smem:[#allocation14_spill]] }
 0x860   : > { %v1402_v50 = vld [vmem:[%s8061_s18] sm:$0xff]  ;;  %v1403_v51 = vld [vmem:[%s8061_s18 + $0x8] sm:$0xff]  ;;  %v1404_v57 = vld [vmem:[%s8061_s18 + $0x10] sm:$0xff] }
 0x861   : > { %v6561_v53 = vpack.c.bf16 %v1403_v51, %v1402_v50  ;;  %v1405_v59 = vld [vmem:[%s8061_s18 + $0x18] sm:$0xff] }
 0x862   : > { %v6565_v61 = vpack.c.bf16 %v1405_v59, %v1404_v57 }
 0x863   : > { %6562 = vmatprep.subr.bf16.mxu0 %v6561_v53 }
 0x864   : > { %6564 = vmatpush3.bf16.msra.mxu0 %v6561_v53 }
 0x865   : > { %6566 = vmatprep.subr.bf16.mxu0 %v6565_v61 }
 0x868   : > { %6568 = vmatpush3.bf16.msra.mxu0 %v6565_v61 }
 0x87b   : > { %v6219_v15 = vpop.f32.mrb[14].mxu1 }
 0x87c   : > { %v2682_v18 = vpop.f32.mrb[15].mxu1 }
 0x87d   : > { %6222 = vmatprep.mubr.msk.f32.mxu1 %vm1912_vm6, %v2682_v18  ;;  %v1411_v18 = vld [vmem:[%s8065_s7 + $0x8] sm:$0xff] }
 0x87e   : > { %6223 = vmatmul.mubr.msk.f32.vlgmr.msra.gmra.mrb[12].mxu1 %vm1912_vm6, %v6219_v15  ;;  %v1410_v15 = vld [vmem:[%s8065_s7] sm:$0xff] }
 0x8d2   : > { %v2886_v19 = vpop.xlane.xlu1 %2885 }
 0x8d3   : > { %6982 = vrcp.f32 %v2886_v19  ;;  %v6577_v19 = vpack.c.bf16 %v1411_v18, %v1410_v15  ;;  %v3448_v18 = vld [vmem:[%s8067_s6] sm:$0xff] }
 0x8d5   : > { %6578 = vmatprep.subr.bf16.mxu0 %v6577_v19 }
 0x8d6   : > { %v2883_v20 = vpop.xlane.xlu1 %2882 }
 0x8d7   : > { %6984 = vrcp.f32 %v2883_v20  ;;  %v1412_v20 = vld [vmem:[%s8065_s7 + $0x10] sm:$0xff] }
 0x8da   : > { %v6913_v21 = vpop.permute.xlu1 %6912 }
 0x8db   : > { %v6915_v22 = vunpack.i.h.bf16 %v6913_v21  ;;  %v6914_v23 = vunpack.i.l.bf16 %v6913_v21  ;;  %v1413_v21 = vld [vmem:[%s8065_s7 + $0x18] sm:$0xff] }
 0x8dd   : > { %v6555_v24 = vpack.c.bf16 %v6915_v22, %v6914_v23  ;;  %v6983_v26 = vpop.eup %6982  ;;  %v6581_v22 = vpack.c.bf16 %v1413_v21, %v1412_v20  ;;  %v1414_v23 = vld [vmem:[%s8065_s7 + $0x20] sm:$0xff]  ;;  %v3450_v21 = vld [vmem:[%s8067_s6 + $0x10] sm:$0xff] }
 0x8de   : > { %v2890_v28 = vmul.f32 %v6983_v26, %v6979_v10  ;;  %v1416_v26 = vld [vmem:[%s8065_s7 + $0x30] sm:$0xff] }
 0x8df   : > { %6557 = vmatprep.subr.msk.bf16.mxu1 %vm7485_vm5, %v6555_v24 }
 0x8e0   : > { %6560 = vmatpush3.bf16.msk.msra.mxu1 %vm7485_vm5, %v6555_v24  ;;  %v1415_v24 = vld [vmem:[%s8065_s7 + $0x28] sm:$0xff] }
 0x8e1   : > { %v6985_v31 = vpop.eup %6984  ;;  %6239 = vmatprep.subr.mxu1 %v1395_v25 }
 0x8e2   : > { %v2889_v27 = vmul.f32 %v6985_v31, %v6981_v12  ;;  %v1417_v31 = vld [vmem:[%s8065_s7 + $0x38] sm:$0xff] }
 0x8e4   : > { %6236 = vmatprep.mubr.msk.f32.mxu1 %vm2010_vm9, %v2889_v27  ;;  %v6589_v27 = vpack.c.bf16 %v1417_v31, %v1416_v26 }
 0x8e5   : > { %6237 = vmatmul.mubr.msk.f32.vlgmr.msra.gmra.mrb[16].mxu1 %vm2010_vm9, %v2890_v28  ;;  %v1418_v28 = vld [vmem:[%s8065_s7 + $0x40] sm:$0xff] }
 0x8e6   : > { %6240 = vmatpush3.msra.mxu1 %v1395_v25  ;;  %v6585_v25 = vpack.c.bf16 %v1415_v24, %v1414_v23 }
 0x8e7   : > { %6570 = vmatprep.subr.bf16.mxu1 %v6569_v56 }
 0x9b8   : > { %v6238_v30 = vpop.f32.mrb[16].mxu1 }
 0x9b9   : > { %v2970_v32 = vpop.f32.mrb[17].mxu1 }
 0x9ba   : > { %6241 = vmatprep.mubr.msk.f32.mxu1 %vm1912_vm6, %v2970_v32 }
 0x9bb   : > { %6242 = vmatmul.mubr.msk.f32.vlgmr.msra.gmra.mrb[12].mxu1 %vm1912_vm6, %v6238_v30  ;;  %v1419_v30 = vld [vmem:[%s8065_s7 + $0x48] sm:$0xff] }
 0x9bc   : > { %6572 = vmatpush3.bf16.msra.mxu1 %v6569_v56  ;;  %v6593_v32 = vpack.c.bf16 %v1419_v30, %v1418_v28 }
 0x9bd   : > { %6574 = vmatprep.subr.bf16.mxu1 %v6573_v0 }
 0x9c0   : > { %6576 = vmatpush3.bf16.msra.mxu1 %v6573_v0 }
 0xa8e   : > { %v6243_v33 = vpop.f32.mrb[12].mxu1 }
 0xa8f   : > { %v7626_v34 = vadd.f32 %v6243_v33, %v7451_v54  ;;  %v3051_v35 = vpop.f32.mrb[13].mxu1  ;;  %v1420_v33 = vld [vmem:[%s8065_s7 + $0x50] sm:$0xff] }
 0xa90   : > { %v7629_v36 = vadd.f32 %v3051_v35, %v7443_v37  ;;  %v1421_v35 = vld [vmem:[%s8065_s7 + $0x58] sm:$0xff] }
 0xa91   : > { %v3067_v38 = vsel %vm1426_vm0, %v7626_v34, 0.0 }
 0xa92   : > { %3068 = vadd.xlane.f32.xlu1 %v3067_v38  ;;  %v3064_v39 = vsel %vm1426_vm0, %v7629_v36, 0.0  ;;  %v6597_v38 = vpack.c.bf16 %v1421_v35, %v1420_v33 }
 0xa93   : > { %3065 = vadd.xlane.f32.xlu0 %v3064_v39  ;;  %v1422_v39 = vld [vmem:[%s8065_s7 + $0x60] sm:$0xff] }
 0xb1f   : > { %v3069_v40 = vpop.xlane.xlu1 %3068 }
 0xb20   : > { %v3071_v41 = vmul.f32 0.03125, %v3069_v40  ;;  %v3066_v54 = vpop.xlane.xlu0 %3065  ;;  %v1423_v40 = vld [vmem:[%s8065_s7 + $0x68] sm:$0xff] }
 0xb21   : > { %v3070_v42 = vmul.f32 0.03125, %v3066_v54  ;;  %v1424_v54 = vld [vmem:[%s8065_s7 + $0x70] sm:$0xff] }
 0xb22   : > { %v3073_v45 = vsub.f32 %v7626_v34, %v3071_v41  ;;  %v6601_v41 = vpack.c.bf16 %v1423_v40, %v1422_v39 }
 0xb23   : > { %v3072_v37 = vsub.f32 %v7629_v36, %v3070_v42  ;;  %v1425_v42 = vld [vmem:[%s8065_s7 + $0x78] sm:$0xff]  ;;  %s8069_s7 = sld [smem:[#allocation22_spill]] }
 0xb24   : > { %v3075_v48 = vmul.f32 %v3073_v45, %v3073_v45 }
 0xb25   : > { %v3074_v46 = vmul.f32 %v3072_v37, %v3072_v37 }
 0xb26   : > { %v3079_v49 = vsel %vm1426_vm0, %v3075_v48, 0.0 }
 0xb27   : > { %v3076_v47 = vsel %vm1426_vm0, %v3074_v46, 0.0  ;;  %v1399_v46 = vld [vmem:[%s8066_s5 + $0x8] sm:$0xff] }
 0xb28   : > { %3077 = vadd.xlane.f32.xlu0 %v3076_v47 }
 0xb29   : > { %v5804_v39 = vld [vmem:[%s8069_s7] ss:$0 sm:$0xff]  ;;  %s8072_s7 = sld [smem:[#allocation21_spill]] }
 0xb2c   : > { %3080 = vadd.xlane.f32.xlu0 %v3079_v49 }
 0xbb5   : > { %v3078_v1 = vpop.xlane.xlu0 %3077 }
 0xbb6   : > { %v3082_v2 = vmul.f32 0.03125, %v3078_v1  ;;  %v1400_v1 = vld [vmem:[%s8066_s5 + $0x10] sm:$0xff] }
 0xbb8   : > { %v3084_v3 = vadd.f32 1e-05, %v3082_v2  ;;  %v1401_v2 = vld [vmem:[%s8066_s5 + $0x18] sm:$0xff] }
 0xbb9   : > { %v3081_v4 = vpop.xlane.xlu0 %3080 }
 0xbba   : > { %6986 = vrsqrt.f32 %v3084_v3  ;;  %v3083_v5 = vmul.f32 0.03125, %v3081_v4 }
 0xbbc   : > { %v3085_v58 = vadd.f32 1e-05, %v3083_v5  ;;  %v6613_v5 = vpack.c.bf16 %v1401_v2, %v1400_v1  ;;  %v3444_v1 = vld [vmem:[%s8072_s7 + $0x10] sm:$0xff]  ;;  %v3445_v2 = vld [vmem:[%s8072_s7 + $0x18] sm:$0xff] }
 0xbbe   : > { %6988 = vrsqrt.f32 %v3085_v58 }
 0xbc4   : > { %v6987_v6 = vpop.eup %6986 }
 0xbc5   : > { %v3088_v8 = vmul.f32 %v6987_v6, %v3072_v37  ;;  %v1398_v37 = vld [vmem:[%s8066_s5] sm:$0xff]  ;;  %s8068_s5 = sld [smem:[#allocation25_spill]] }
 0xbc6   : > { %v6609_v47 = vpack.c.bf16 %v1399_v46, %v1398_v37  ;;  %v3582_v37 = vmul.f32 %v5804_v39, %v7465_v13  ;;  %v3583_v13 = vmul.f32 %v5804_v39, %v7469_v16  ;;  %v6645_v16 = vpack.c.bf16 %v3445_v2, %v3444_v1 }
 0xbc7   : > { %v3096_v9 = vmul.f32 %v5794_v7, %v3088_v8 }
 0xbc8   : > { %v6989_v43 = vpop.eup %6988 }
 0xbc9   : > { %v3089_v10 = vmul.f32 %v6989_v43, %v3073_v45  ;;  %v3104_v11 = vadd.f32 %v5795_v44, %v3096_v9  ;;  %v6605_v45 = vpack.c.bf16 %v1425_v42, %v1424_v54  ;;  %v5805_v54 = vld [vmem:[%s8070_s8] ss:$0 sm:$0xff]  ;;  %s8073_s8 = sld [smem:[#allocation19_spill]] }
 0xbcb   : > { %v3097_v12 = vmul.f32 %v5794_v7, %v3089_v10  ;;  %6252 = vmatprep.mubr.msk.f32.mxu0 %vm1426_vm0, %v3104_v11  ;;  %6263 = vmatprep.mubr.msk.f32.mxu1 %vm1426_vm0, %v3104_v11  ;;  %v3452_v24 = vld [vmem:[%s8068_s5] sm:$0xff]  ;;  %v3454_v46 = vld [vmem:[%s8068_s5 + $0x10] sm:$0xff] }
 0xbcd   : > { %v3105_v14 = vadd.f32 %v5795_v44, %v3097_v12 }
 0xbcf   : > { %6253 = vmatmul.mubr.msk.f32.vlgmr.msra.gmra.mrb[12].mxu0 %vm1426_vm0, %v3105_v14  ;;  %6264 = vmatmul.mubr.msk.f32.vlgmr.msra.gmra.mrb[18].mxu1 %vm1426_vm0, %v3105_v14 }
 0xbd0   : > { %6580 = vmatpush3.bf16.msra.mxu0 %v6577_v19  ;;  %v3449_v19 = vld [vmem:[%s8067_s6 + $0x8] sm:$0xff] }
 0xbd1   : > { %6582 = vmatprep.subr.bf16.mxu0 %v6581_v22  ;;  %v6617_v20 = vpack.c.bf16 %v3449_v19, %v3448_v18 }
 0xbd3   : > { %6618 = vmatprep.subr.bf16.mxu1 %v6617_v20 }
 0xbd4   : > { %6584 = vmatpush3.bf16.msra.mxu0 %v6581_v22  ;;  %6620 = vmatpush3.bf16.msra.mxu1 %v6617_v20  ;;  %v3451_v22 = vld [vmem:[%s8067_s6 + $0x18] sm:$0xff]  ;;  %s8071_s6 = sld [smem:[#allocation26_spill]] }
 0xbd5   : > { %6586 = vmatprep.subr.bf16.mxu0 %v6585_v25  ;;  %v6621_v23 = vpack.c.bf16 %v3451_v22, %v3450_v21 }
 0xbd7   : > { %6622 = vmatprep.subr.bf16.mxu1 %v6621_v23 }
 0xbd8   : > { %6588 = vmatpush3.bf16.msra.mxu0 %v6585_v25  ;;  %v3453_v25 = vld [vmem:[%s8068_s5 + $0x8] sm:$0xff]  ;;  %6624 = vmatpush3.bf16.msra.mxu1 %v6621_v23 }
 0xbd9   : > { %6590 = vmatprep.subr.bf16.mxu0 %v6589_v27  ;;  %v6625_v26 = vpack.c.bf16 %v3453_v25, %v3452_v24 }
 0xbdb   : > { %6626 = vmatprep.subr.bf16.mxu1 %v6625_v26 }
 0xbdc   : > { %6592 = vmatpush3.bf16.msra.mxu0 %v6589_v27 }
 0xbdd   : > { %6594 = vmatprep.subr.bf16.mxu0 %v6593_v32 }
 0xbe0   : > { %6596 = vmatpush3.bf16.msra.mxu0 %v6593_v32 }
 0xbe1   : > { %6598 = vmatprep.subr.bf16.mxu0 %v6597_v38 }
 0xbe4   : > { %6600 = vmatpush3.bf16.msra.mxu0 %v6597_v38 }
 0xbe5   : > { %6602 = vmatprep.subr.bf16.mxu0 %v6601_v41 }
 0xbe8   : > { %6604 = vmatpush3.bf16.msra.mxu0 %v6601_v41 }
 0xbe9   : > { %6606 = vmatprep.subr.bf16.mxu0 %v6605_v45 }
 0xbec   : > { %6608 = vmatpush3.bf16.msra.mxu0 %v6605_v45 }
 0xbed   : > { %6610 = vmatprep.subr.bf16.mxu0 %v6609_v47 }
 0xca2   : > { %v6254_v48 = vpop.f32.mrb[12].mxu0  ;;  %v6265_v49 = vpop.f32.mrb[18].mxu1 }
 0xca3   : > { %v5801_v50 = vmul.f32 -1.442695, %v6265_v49  ;;  %v3178_v51 = vpop.f32.mrb[13].mxu0  ;;  %v3253_v52 = vpop.f32.mrb[19].mxu1 }
 0xca4   : > { %v5800_v53 = vmul.f32 -1.442695, %v3253_v52 }
 0xca5   : > { %6990 = vpow2.f32 %v5801_v50 }
 0xca6   : > { %6992 = vpow2.f32 %v5800_v53  ;;  %v3457_v53 = vld [vmem:[%s8071_s6 + $0x8] sm:$0xff] }
 0xcaf   : > { %v6991_v55 = vpop.eup %6990 }
 0xcb0   : > { %v6993_v56 = vpop.eup %6992  ;;  %v3269_v57 = vadd.f32 1.0, %v6991_v55 }
 0xcb1   : > { %v3268_v59 = vadd.f32 1.0, %v6993_v56  ;;  %v3458_v56 = vld [vmem:[%s8071_s6 + $0x10] sm:$0xff] }
 0xcb2   : > { %6994 = vrcp.f32 %v3269_v57  ;;  %v3459_v57 = vld [vmem:[%s8071_s6 + $0x18] sm:$0xff] }
 0xcb3   : > { %6996 = vrcp.f32 %v3268_v59  ;;  %v3585_v59 = vadd.f32 %v5805_v54, %v3583_v13 }
 0xcbc   : > { %v6995_v61 = vpop.eup %6994 }
 0xcbd   : > { %v6997_v62 = vpop.eup %6996  ;;  %v3275_v63 = vmul.f32 %v6995_v61, %v6265_v49  ;;  %v6637_v61 = vpack.c.bf16 %v3459_v57, %v3458_v56 }
 0xcbe   : > { %v3274_v0 = vmul.f32 %v6997_v62, %v3253_v52  ;;  %v3456_v52 = vld [vmem:[%s8071_s6] sm:$0xff]  ;;  %s8075_s6 = sld [smem:[#allocation17_spill]] }
 0xcbf   : > { %v3277_v3 = vmul.f32 %v6254_v48, %v3275_v63  ;;  %v6633_v55 = vpack.c.bf16 %v3457_v53, %v3456_v52  ;;  %v3442_v62 = vld [vmem:[%s8072_s7] sm:$0xff]  ;;  %v3443_v63 = vld [vmem:[%s8072_s7 + $0x8] sm:$0xff]  ;;  %s8076_s7 = sld [smem:[#allocation18_spill]] }
 0xcc0   : > { %v3276_v4 = vmul.f32 %v3274_v0, %v3178_v51  ;;  %v3584_v51 = vadd.f32 %v5805_v54, %v3582_v37  ;;  %v6641_v0 = vpack.c.bf16 %v3443_v63, %v3442_v62 }
 0xcc2   : > { %6298 = vmatprep.mubr.f32.mxu0 %v3276_v4 }
 0xcc3   : > { %6299 = vmatmul.mubr.f32.vlgmr.msra.gmra.mrb[14].mxu0 %v3277_v3 }
 0xcc4   : > { %6612 = vmatpush3.bf16.msra.mxu0 %v6609_v47  ;;  %6309 = vmatprep.mubr.msk.f32.mxu0 %vm1426_vm0, %v7629_v36  ;;  %v3455_v47 = vld [vmem:[%s8068_s5 + $0x18] sm:$0xff]  ;;  %s8074_s5 = sld [smem:[#allocation20_spill]]  ;;  %s1269_s9 = scalar_lea.vmem %s8075_s6, %s7420_s1 }
 0xcc5   : > { %6614 = vmatprep.subr.bf16.mxu0 %v6613_v5  ;;  %v6629_v50 = vpack.c.bf16 %v3455_v47, %v3454_v46  ;;  %s1274_s10 = scalar_lea.vmem %s8076_s7, %s7420_s1  ;;  %v3435_v21 = vld [vmem:[%s1269_s9 + $0x8] sm:$0xf]  ;;  %v3434_v23 = vld [vmem:[%s1269_s9] sm:$0xff]  ;;  %s8077_s9 = smov 112  }
 0xcc6   : > { %v3437_v22 = vld [vmem:[%s1274_s10 + $0x8] sm:$0xf]  ;;  %v3436_v24 = vld [vmem:[%s1274_s10] sm:$0xff]  ;;  %s8078_s1 = smov 104   ;;  %s8079_s10 = sld [smem:[#allocation27_spill]] }
 0xcc7   : > { %s8080_s6 = sld [smem:[#allocation31_spill]]  ;;  %s8081_s7 = sld [smem:[#allocation28_spill]] }
 0xcc8   : > { %6616 = vmatpush3.bf16.msra.mxu0 %v6613_v5 }
 0xccb   : > { %6310 = vmatmul.mubr.msk.f32.vlgmr.msra.gmra.mrb[14].mxu0 %vm1426_vm0, %v7626_v34 }
 0xd9e   : > { %v6311_v58 = vpop.f32.mrb[14].mxu0 }
 0xd9f   : > { %v3425_v6 = vpop.f32.mrb[15].mxu0  ;;  %v3543_v8 = vsel %vm1426_vm0, %v6311_v58, 0.0 }
 0xda0   : > { %v3540_v7 = vsel %vm1426_vm0, %v3425_v6, 0.0 }
 0xda1   : > { %3541 = vadd.xlane.f32.xlu0 %v3540_v7 }
 0xda5   : > { %3544 = vadd.xlane.f32.xlu0 %v3543_v8 }
 0xe2e   : > { %v3542_v44 = vpop.xlane.xlu0 %3541 }
 0xe2f   : > { %v3546_v9 = vmul.f32 0.03125, %v3542_v44 }
 0xe31   : > { %v3548_v43 = vsub.f32 %v3425_v6, %v3546_v9  ;;  %v3439_v9 = vld [vmem:[%s8073_s8 + $0x8] sm:$0xff] }
 0xe32   : > { %v3545_v36 = vpop.xlane.xlu0 %3544 }
 0xe33   : > { %v3547_v10 = vmul.f32 0.03125, %v3545_v36  ;;  %v3550_v11 = vmul.f32 %v3548_v43, %v3548_v43  ;;  %v3438_v36 = vld [vmem:[%s8073_s8] sm:$0xff] }
 0xe35   : > { %v3549_v34 = vsub.f32 %v6311_v58, %v3547_v10  ;;  %v3552_v12 = vsel %vm1426_vm0, %v3550_v11, 0.0  ;;  %v3440_v10 = vld [vmem:[%s8074_s5] sm:$0xff] }
 0xe36   : > { %3553 = vadd.xlane.f32.xlu0 %v3552_v12 }
 0xe37   : > { %v3551_v14 = vmul.f32 %v3549_v34, %v3549_v34 }
 0xe39   : > { %v3555_v15 = vsel %vm1426_vm0, %v3551_v14, 0.0 }
 0xe3a   : > { %3556 = vadd.xlane.f32.xlu1 %v3555_v15 }
 0xec3   : > { %v3554_v31 = vpop.xlane.xlu0 %3553 }
 0xec4   : > { %v3558_v27 = vmul.f32 0.03125, %v3554_v31 }
 0xec6   : > { %v3560_v28 = vadd.f32 1e-05, %v3558_v27 }
 0xec7   : > { %v3557_v30 = vpop.xlane.xlu1 %3556 }
 0xec8   : > { %6998 = vrsqrt.f32 %v3560_v28  ;;  %v3559_v32 = vmul.f32 0.03125, %v3557_v30 }
 0xeca   : > { %v3561_v33 = vadd.f32 1e-05, %v3559_v32 }
 0xecc   : > { %7000 = vrsqrt.f32 %v3561_v33 }
 0xed2   : > { %v6999_v35 = vpop.eup %6998 }
 0xed3   : > { %v3564_v38 = vmul.f32 %v6999_v35, %v3548_v43  ;;  %v3441_v43 = vld [vmem:[%s8074_s5 + $0x8] sm:$0xff] }
 0xed5   : > { %v3572_v40 = vmul.f32 %v5804_v39, %v3564_v38 }
 0xed6   : > { %v7001_v41 = vpop.eup %7000 }
 0xed7   : > { %v3565_v42 = vmul.f32 %v7001_v41, %v3549_v34  ;;  %v7689_v45 = vadd.f32 %v5805_v54, %v3572_v40 }
 0xed9   : > { %6320 = vmatprep.mubr.msk.f32.mxu1 %vm1426_vm0, %v7689_v45  ;;  %v3573_v48 = vmul.f32 %v5804_v39, %v3565_v42 }
 0xedb   : > { %v7696_v49 = vadd.f32 %v5805_v54, %v3573_v48 }
 0xedd   : > { %6321 = vmatmul.mubr.msk.f32.vlgmr.msra.gmra.mrb[20].mxu1 %vm1426_vm0, %v7696_v49 }
 0xede   : > { %6628 = vmatpush3.bf16.msra.mxu1 %v6625_v26  ;;  %6331 = vmatprep.mubr.msk.f32.mxu1 %vm1426_vm0, %v3584_v51 }
 0xedf   : > { %6630 = vmatprep.subr.bf16.mxu1 %v6629_v50 }
 0xee2   : > { %6632 = vmatpush3.bf16.msra.mxu1 %v6629_v50 }
 0xee3   : > { %6634 = vmatprep.subr.bf16.mxu1 %v6633_v55 }
 0xee5   : > { %6332 = vmatmul.mubr.msk.f32.vlgmr.msra.gmra.mrb[22].mxu1 %vm1426_vm0, %v3585_v59 }
 0xee6   : > { %6636 = vmatpush3.bf16.msra.mxu1 %v6633_v55  ;;  %6342 = vmatprep.mubr.msk.f32.mxu1 %vm1426_vm0, %v3584_v51 }
 0xee7   : > { %6638 = vmatprep.subr.bf16.mxu1 %v6637_v61 }
 0xeea   : > { %6640 = vmatpush3.bf16.msra.mxu1 %v6637_v61 }
 0xeeb   : > { %6642 = vmatprep.subr.bf16.mxu1 %v6641_v0 }
 0xeed   : > { %6343 = vmatmul.mubr.msk.f32.vlgmr.msra.gmra.mrb[24].mxu1 %vm1426_vm0, %v3585_v59 }
 0xeee   : > { %6644 = vmatpush3.bf16.msra.mxu1 %v6641_v0 }
 0xeef   : > { %6646 = vmatprep.subr.bf16.mxu1 %v6645_v16 }
 0xef2   : > { %6648 = vmatpush3.bf16.msra.mxu1 %v6645_v16 }
 0xef3   : > { %6650 = vmatprep.subr.bf16.mxu1 %v6641_v0 }
 0xfb0   : > { %v6322_v3 = vpop.f32.mrb[20].mxu1 }
 0xfb1   : > { %v3658_v4 = vpop.f32.mrb[21].mxu1  ;;  %v3824_v34 = vmul.f32 %v6322_v3, %v3439_v9 }
 0xfb2   : > { %6353 = vmatprep.mubr.msk.f32.mxu1 %vm1426_vm0, %v3658_v4  ;;  %v3823_v15 = vmul.f32 %v3658_v4, %v3438_v36 }
 0xfb3   : > { %6354 = vmatmul.mubr.msk.f32.vlgmr.msra.gmra.mrb[26].mxu1 %vm1426_vm0, %v6322_v3 }
 0xfb4   : > { %6652 = vmatpush3.bf16.msra.mxu1 %v6641_v0 }
 0xfb5   : > { %6654 = vmatprep.subr.bf16.mxu1 %v6645_v16 }
 0xfb8   : > { %v6333_v5 = vpop.f32.mrb[22].mxu1  ;;  %6656 = vmatpush3.bf16.msra.mxu1 %v6645_v16 }
 0xfb9   : > { %v3739_v58 = vpop.f32.mrb[23].mxu1  ;;  %v3911_v26 = vmul.f32 %v6333_v5, %v3435_v21 }
 0xfba   : > { %6364 = vmatprep.mubr.msk.f32.mxu1 %vm1426_vm0, %v3739_v58  ;;  %v3910_v28 = vmul.f32 %v3739_v58, %v3434_v23 }
 0xfbb   : > { %6365 = vmatmul.mubr.msk.f32.vlgmr.msra.gmra.mrb[28].mxu1 %vm1426_vm0, %v6333_v5 }
 0xfc0   : > { %v6344_v6 = vpop.f32.mrb[24].mxu1 }
 0xfc1   : > { %v3814_v7 = vpop.f32.mrb[25].mxu1 }
 0xfc2   : > { %v6663_v8 = vpack.c.bf16 %v6344_v6, %v3814_v7  ;;  %v7717_v44 = vpack.i.bf16 %v6344_v6, %v3814_v7 }
 0xfc4   : > { %6665 = vmatprep.subr.msk.bf16.mxu1 %vm7485_vm5, %v6663_v8 }
 0xfc5   : > { %6668 = vmatpush3.bf16.msk.msra.mxu1 %vm7485_vm5, %v6663_v8 }
0x1086   : > { %v6355_v11 = vpop.f32.mrb[26].mxu1 }
0x1087   : > { %v3907_v12 = vmul.f32 %v6355_v11, %v3441_v43  ;;  %v3897_v14 = vpop.f32.mrb[27].mxu1 }
0x1088   : > { %v3906_v18 = vmul.f32 %v3897_v14, %v3440_v10 }
0x1089   : > { %v7729_v19 = vadd.f32 %v3907_v12, %v3824_v34 }
0x108a   : > { %v7733_v20 = vadd.f32 %v3906_v18, %v3823_v15 }
0x108c   : > { %4194 = vrot.lane.b32.xlu1 %v7733_v20, %s8058_s3  ;;  %6371 = vmatprep.mubr.msk.f32.mxu0 %vm1912_vm6, %v7733_v20 }
0x108e   : > { %v6366_v25 = vpop.f32.mrb[28].mxu1 }
0x108f   : > { %v3994_v31 = vmul.f32 %v6366_v25, %v3437_v22  ;;  %v3984_v27 = vpop.f32.mrb[29].mxu1 }
0x1090   : > { %v3993_v30 = vmul.f32 %v3984_v27, %v3436_v24  ;;  %4196 = vrot.lane.b32.xlu1 %v7729_v19, %s8058_s3 }
0x1091   : > { %v3996_v32 = vadd.f32 %v3994_v31, %v3911_v26 }
0x1092   : > { %v3995_v33 = vadd.f32 %v3993_v30, %v3910_v28 }
0x1094   : > { %v7741_v35 = vpack.i.bf16 %v3996_v32, %v3995_v33  ;;  %v6657_v38 = vpack.c.bf16 %v3996_v32, %v3995_v33 }
0x1096   : > { %6917 = vrot.lane.b32.xlu0 %v7741_v35, %s8058_s3  ;;  %6659 = vmatprep.subr.msk.bf16.mxu0 %vm7517_vm7, %v6657_v38 }
0x1097   : > { %6922 = vrot.lane.b32.xlu1 %v7741_v35, %s8077_s9  ;;  %6662 = vmatpush3.bf16.xpose.msk.msra.mxu0 %vm7517_vm7, %v6657_v38 }
0x109a   : > { %4562 = vrot.lane.b32.xlu0 %v7733_v20, %s8077_s9 }
0x109b   : > { %4564 = vrot.lane.b32.xlu1 %v7729_v19, %s8077_s9 }
0x109e   : > { %6372 = vmatmul.mubr.msk.f32.vlgmr.msra.gmra.mrb[16].mxu0 %vm1912_vm6, %v7729_v19 }
0x10fe   : > { %v4195_v39 = vpop.permute.xlu1 %4194 }
0x10ff   : > { %6385 = vmatprep.mubr.msk.f32.mxu0 %vm1912_vm6, %v4195_v39 }
0x1102   : > { %v4197_v40 = vpop.permute.xlu1 %4196 }
0x1108   : > { %v6918_v41 = vpop.permute.xlu0 %6917 }
0x1109   : > { %v6920_v54 = vunpack.i.h.bf16 %v6918_v41  ;;  %v6919_v42 = vunpack.i.l.bf16 %v6918_v41  ;;  %v6923_v37 = vpop.permute.xlu1 %6922 }
0x110a   : > { %v6925_v46 = vunpack.i.h.bf16 %v6923_v37  ;;  %v6924_v47 = vunpack.i.l.bf16 %v6923_v37 }
0x110b   : > { %v6669_v48 = vpack.c.bf16 %v6920_v54, %v6919_v42 }
0x110c   : > { %v6681_v50 = vpack.c.bf16 %v6925_v46, %v6924_v47  ;;  %v4563_v51 = vpop.permute.xlu0 %4562 }
0x110d   : > { %6671 = vmatprep.subr.msk.bf16.mxu0 %vm7517_vm7, %v6669_v48  ;;  %v4565_v52 = vpop.permute.xlu1 %4564 }
0x110e   : > { %6674 = vmatpush3.bf16.xpose.msk.msra.mxu0 %vm7517_vm7, %v6669_v48 }
0x110f   : > { %6683 = vmatprep.subr.msk.bf16.mxu0 %vm7517_vm7, %v6681_v50 }
0x1115   : > { %6386 = vmatmul.mubr.msk.f32.vlgmr.msra.gmra.mrb[18].mxu0 %vm1912_vm6, %v4197_v40 }
0x1116   : > { %6686 = vmatpush3.bf16.xpose.msk.msra.mxu0 %vm7517_vm7, %v6681_v50  ;;  %6409 = vmatprep.mubr.msk.f32.mxu0 %vm1912_vm6, %v4563_v51 }
0x111d   : > { %6410 = vmatmul.mubr.msk.f32.vlgmr.msra.gmra.mrb[20].mxu0 %vm1912_vm6, %v4565_v52 }
0x1171   : > { %v6373_v53 = vpop.f32.mrb[16].mxu0 }
0x1172   : > { %v4085_v13 = vmul.f32 0.35355338, %v6373_v53  ;;  %v4075_v55 = vpop.f32.mrb[17].mxu0 }
0x1173   : > { %v4084_v56 = vmul.f32 0.35355338, %v4075_v55 }
0x1174   : > { %v4087_v57 = vadd.f32 %v4085_v13, %v7549_v17 }
0x1175   : > { %v4086_v59 = vadd.f32 %v4084_v56, %v7549_v17 }
0x1176   : > { %v4091_v61 = vsel %vm2010_vm9, %v4087_v57, -inf }
0x1177   : > { %4092 = vmax.xlane.f32.xlu1 %v4091_v61  ;;  %v4088_v62 = vsel %vm2010_vm9, %v4086_v59, -inf }
0x1178   : > { %4089 = vmax.xlane.f32.xlu0 %v4088_v62 }
0x11e8   : > { %v6387_v63 = vpop.f32.mrb[18].mxu0 }
0x11e9   : > { %v4276_v0 = vpop.f32.mrb[19].mxu0  ;;  %v4286_v1 = vmul.f32 0.35355338, %v6387_v63 }
0x11ea   : > { %v4285_v2 = vmul.f32 0.35355338, %v4276_v0 }
0x11eb   : > { %v4288_v4 = vadd.f32 %v4286_v1, %v7549_v17 }
0x11ec   : > { %v4287_v16 = vadd.f32 %v4285_v2, %v7549_v17 }
0x11ed   : > { %v4292_v6 = vsel %vm2010_vm9, %v4288_v4, -inf }
0x11ee   : > { %v4289_v3 = vsel %vm2010_vm9, %v4287_v16, -inf }
0x11ef   : > { %4290 = vmax.xlane.f32.xlu0 %v4289_v3 }
0x11f0   : > { %v6411_v5 = vpop.f32.mrb[20].mxu0 }
0x11f1   : > { %v4644_v58 = vpop.f32.mrb[21].mxu0  ;;  %v4654_v54 = vmul.f32 0.35355338, %v6411_v5 }
0x11f3   : > { %4293 = vmax.xlane.f32.xlu0 %v4292_v6  ;;  %v3461_v6 = vld [vmem:[%s8079_s10 + $0x8] sm:$0xff] }
0x1204   : > { %v4093_v7 = vpop.xlane.xlu1 %4092 }
0x1205   : > { %v4095_v8 = vsub.f32 %v4087_v57, %v4093_v7  ;;  %v4090_v9 = vpop.xlane.xlu0 %4089  ;;  %v3460_v7 = vld [vmem:[%s8079_s10] sm:$0xff] }
0x1206   : > { %v4094_v43 = vsub.f32 %v4086_v59, %v4090_v9 }
0x1207   : > { %v4098_v36 = vmul.f32 1.442695, %v4095_v8 }
0x1208   : > { %v4096_v10 = vmul.f32 1.442695, %v4094_v43 }
0x1209   : > { %7002 = vpow2.f32 %v4098_v36 }
0x120a   : > { %7004 = vpow2.f32 %v4096_v10 }
0x1213   : > { %v7003_v11 = vpop.eup %7002 }
0x1214   : > { %v7005_v34 = vpop.eup %7004  ;;  %v4103_v12 = vsel %vm2010_vm9, %v7003_v11, 0.0 }
0x1215   : > { %4104 = vadd.xlane.f32.xlu1 %v4103_v12  ;;  %v4100_v14 = vsel %vm2010_vm9, %v7005_v34, 0.0 }
0x1216   : > { %4101 = vadd.xlane.f32.xlu0 %v4100_v14 }
0x127c   : > { %v4291_v15 = vpop.xlane.xlu0 %4290 }
0x127d   : > { %v4295_v18 = vsub.f32 %v4287_v16, %v4291_v15 }
0x127f   : > { %v4297_v21 = vmul.f32 1.442695, %v4295_v18 }
0x1280   : > { %v4294_v22 = vpop.xlane.xlu0 %4293 }
0x1281   : > { %7006 = vpow2.f32 %v4297_v21  ;;  %v4296_v23 = vsub.f32 %v4288_v4, %v4294_v22 }
0x1283   : > { %v4299_v24 = vmul.f32 1.442695, %v4296_v23 }
0x1285   : > { %7008 = vpow2.f32 %v4299_v24 }
0x128b   : > { %v7007_v25 = vpop.eup %7006 }
0x128c   : > { %v4301_v26 = vsel %vm2010_vm9, %v7007_v25, 0.0 }
0x128d   : > { %4302 = vadd.xlane.f32.xlu0 %v4301_v26 }
0x128f   : > { %v7009_v31 = vpop.eup %7008 }
0x1290   : > { %v4304_v27 = vsel %vm2010_vm9, %v7009_v31, 0.0 }
0x1291   : > { %4305 = vadd.xlane.f32.xlu1 %v4304_v27 }
0x12a2   : > { %v4105_v28 = vpop.xlane.xlu1 %4104  ;;  %6932 = vrot.lane.b32.xlu1 %v7741_v35, %s8078_s1  ;;  %v4653_v35 = vmul.f32 0.35355338, %v4644_v58 }
0x12a3   : > { %7010 = vrcp.f32 %v4105_v28  ;;  %6927 = vrot.lane.b32.xlu0 %v7717_v44, %s8058_s3  ;;  %v4102_v30 = vpop.xlane.xlu0 %4101  ;;  %s7152_s3 = smov 32  }
0x12a4   : > { %7012 = vrcp.f32 %v4102_v30  ;;  %v4655_v40 = vadd.f32 %v4653_v35, %v7549_v17 }
0x12a6   : > { %4850 = vrot.lane.b32.xlu1 %v7733_v20, %s8078_s1  ;;  %v4657_v41 = vsel %vm2010_vm9, %v4655_v40, -inf  ;;  %v4656_v20 = vadd.f32 %v4654_v54, %v7549_v17 }
0x12a8   : > { %v4660_v42 = vsel %vm2010_vm9, %v4656_v20, -inf }
0x12aa   : > { %4852 = vrot.lane.b32.xlu1 %v7729_v19, %s8078_s1 }
0x12ad   : > { %v7011_v32 = vpop.eup %7010 }
0x12ae   : > { %v7013_v33 = vpop.eup %7012  ;;  %v4109_v39 = vmul.f32 %v7011_v32, %v7003_v11 }
0x12af   : > { %v4108_v38 = vmul.f32 %v7013_v33, %v7005_v34  ;;  %v3462_v33 = vld [vmem:[%s8079_s10 + $0x10] sm:$0xff] }
0x12b1   : > { %6378 = vmatprep.mubr.msk.f32.mxu1 %vm2010_vm9, %v4108_v38 }
0x12b2   : > { %6379 = vmatmul.mubr.msk.f32.vlgmr.msra.gmra.mrb[30].mxu1 %vm2010_vm9, %v4109_v39 }
0x12c2   : > { %4658 = vmax.xlane.f32.xlu0 %v4657_v41 }
0x12ce   : > { %4661 = vmax.xlane.f32.xlu1 %v4660_v42 }
0x131a   : > { %v4303_v19 = vpop.xlane.xlu0 %4302 }
0x131b   : > { %7014 = vrcp.f32 %v4303_v19 }
0x131e   : > { %v4306_v37 = vpop.xlane.xlu1 %4305  ;;  %v6928_v46 = vpop.permute.xlu0 %6927 }
0x131f   : > { %7016 = vrcp.f32 %v4306_v37  ;;  %v6930_v47 = vunpack.i.h.bf16 %v6928_v46  ;;  %v6929_v48 = vunpack.i.l.bf16 %v6928_v46 }
0x1321   : > { %v6675_v50 = vpack.c.bf16 %v6930_v47, %v6929_v48 }
0x1322   : > { %v6933_v51 = vpop.permute.xlu1 %6932 }
0x1323   : > { %v6935_v52 = vunpack.i.h.bf16 %v6933_v51  ;;  %v6934_v53 = vunpack.i.l.bf16 %v6933_v51  ;;  %6677 = vmatprep.subr.msk.bf16.mxu1 %vm7485_vm5, %v6675_v50 }
0x1324   : > { %6680 = vmatpush3.bf16.msk.msra.mxu1 %vm7485_vm5, %v6675_v50 }
0x1325   : > { %v7015_v13 = vpop.eup %7014  ;;  %v6693_v55 = vpack.c.bf16 %v6935_v52, %v6934_v53  ;;  %6395 = vmatprep.subr.mxu1 %v3461_v6 }
0x1326   : > { %v4851_v56 = vpop.permute.xlu1 %4850  ;;  %v4309_v57 = vmul.f32 %v7015_v13, %v7007_v25  ;;  %v3463_v13 = vld [vmem:[%s8079_s10 + $0x18] sm:$0xff] }
0x1327   : > { %6695 = vmatprep.subr.msk.bf16.mxu0 %vm7517_vm7, %v6693_v55  ;;  %6428 = vmatprep.mubr.msk.f32.mxu0 %vm1912_vm6, %v4851_v56 }
0x1328   : > { %6392 = vmatprep.mubr.msk.f32.mxu1 %vm2010_vm9, %v4309_v57  ;;  %6698 = vmatpush3.bf16.xpose.msk.msra.mxu0 %vm7517_vm7, %v6693_v55 }
0x1329   : > { %v7017_v59 = vpop.eup %7016 }
0x132a   : > { %v4310_v61 = vmul.f32 %v7017_v59, %v7009_v31  ;;  %v4853_v62 = vpop.permute.xlu1 %4852 }
0x132c   : > { %6393 = vmatmul.mubr.msk.f32.vlgmr.msra.gmra.mrb[32].mxu1 %vm2010_vm9, %v4310_v61 }
0x132d   : > { %6396 = vmatpush3.msra.mxu1 %v3461_v6 }
0x132e   : > { %6400 = vmatprep.subr.mxu1 %v3460_v7 }
0x132f   : > { %6429 = vmatmul.mubr.msk.f32.vlgmr.msra.gmra.mrb[22].mxu0 %vm1912_vm6, %v4853_v62  ;;  %v3538_v62 = vld [vmem:[%s7355_s12] sm:$0xff] }
0x1330   : > { %6447 = vmatprep.mubr.msk.f32.mxu0 %vm1279_vm1, %v3538_v62 }
0x134f   : > { %v4659_v63 = vpop.xlane.xlu0 %4658 }
0x1350   : > { %v4663_v0 = vsub.f32 %v4655_v40, %v4659_v63 }
0x1352   : > { %v4665_v16 = vmul.f32 1.442695, %v4663_v0 }
0x135b   : > { %v4662_v1 = vpop.xlane.xlu1 %4661 }
0x135c   : > { %v4664_v2 = vsub.f32 %v4656_v20, %v4662_v1 }
0x135e   : > { %v4667_v3 = vmul.f32 1.442695, %v4664_v2 }
0x1360   : > { %7018 = vpow2.f32 %v4667_v3 }
0x1361   : > { %7020 = vpow2.f32 %v4665_v16  ;;  %v3539_v16 = vld [vmem:[%s7355_s12 + $0x8] sm:$0xff] }
0x136a   : > { %v7019_v4 = vpop.eup %7018 }
0x136b   : > { %v4672_v60 = vsel %vm2010_vm9, %v7019_v4, 0.0  ;;  %v7021_v5 = vpop.eup %7020 }
0x136c   : > { %4673 = vadd.xlane.f32.xlu0 %v4672_v60  ;;  %v4669_v58 = vsel %vm2010_vm9, %v7021_v5, 0.0 }
0x1370   : > { %4670 = vadd.xlane.f32.xlu0 %v4669_v58 }
0x1385   : > { %v6380_v8 = vpop.f32.mrb[30].mxu1 }
0x1386   : > { %v4185_v9 = vpop.f32.mrb[31].mxu1  ;;  %6937 = vrot.lane.b32.xlu0 %v7717_v44, %s8077_s9  ;;  %s8082_s9 = sld [smem:[#allocation30_spill]] }
0x13f9   : > { %v4674_v43 = vpop.xlane.xlu0 %4673 }
0x13fd   : > { %v4671_v36 = vpop.xlane.xlu0 %4670 }
0x13fe   : > { %7022 = vrcp.f32 %v4671_v36 }
0x13ff   : > { %7024 = vrcp.f32 %v4674_v43  ;;  %v6394_v10 = vpop.f32.mrb[32].mxu1  ;;  %v3493_v43 = vld [vmem:[%s7345_s27 + $0x18] sm:$0xff] }
0x1400   : > { %v4391_v11 = vpop.f32.mrb[33].mxu1 }
0x1401   : > { %v6938_v34 = vpop.permute.xlu0 %6937  ;;  %6397 = vmatprep.mubr.msk.f32.mxu1 %vm1912_vm6, %v4391_v11  ;;  %v3477_v11 = vld [vmem:[%s8080_s6 + $0x18] sm:$0xff] }
0x1402   : > { %v6940_v12 = vunpack.i.h.bf16 %v6938_v34  ;;  %v6939_v14 = vunpack.i.l.bf16 %v6938_v34  ;;  %6398 = vmatmul.mubr.msk.f32.vlgmr.msra.gmra.mrb[34].mxu1 %vm1912_vm6, %v6394_v10  ;;  %v6430_v15 = vpop.f32.mrb[22].mxu0  ;;  %v3475_v10 = vld [vmem:[%s8080_s6 + $0x8] sm:$0xff]  ;;  %v3490_v34 = vld [vmem:[%s7345_s27] sm:$0xff] }
0x1403   : > { %6402 = vmatprep.mubr.msk.f32.mxu1 %vm1912_vm6, %v4185_v9  ;;  %v4932_v18 = vpop.f32.mrb[23].mxu0  ;;  %6401 = vmatpush3.msra.mxu1 %v3460_v7  ;;  %v4942_v22 = vmul.f32 0.35355338, %v6430_v15  ;;  %v3491_v9 = vld [vmem:[%s7345_s27 + $0x8] sm:$0xff]  ;;  %v3474_v15 = vld [vmem:[%s8080_s6] sm:$0xff] }
0x1404   : > { %v6687_v21 = vpack.c.bf16 %v6940_v12, %v6939_v14  ;;  %v4941_v23 = vmul.f32 0.35355338, %v4932_v18  ;;  %v6725_v36 = vpack.c.bf16 %v3493_v43, %v3491_v9  ;;  %v6709_v12 = vpack.c.bf16 %v3477_v11, %v3475_v10  ;;  %v3492_v14 = vld [vmem:[%s7345_s27 + $0x10] sm:$0xff]  ;;  %v3469_v43 = vld [vmem:[%s8082_s9 + $0x18] sm:$0xff]  ;;  %v3471_v10 = vld [vmem:[%s8082_s9 + $0x28] sm:$0xff] }
0x1405   : > { %v4944_v31 = vadd.f32 %v4942_v22, %v7549_v17  ;;  %v3476_v18 = vld [vmem:[%s8080_s6 + $0x10] sm:$0xff] }
0x1406   : > { %6689 = vmatprep.subr.msk.bf16.mxu1 %vm7485_vm5, %v6687_v21  ;;  %v4943_v24 = vadd.f32 %v4941_v23, %v7549_v17  ;;  %v6711_v22 = vpack.c.bf16 %v3476_v18, %v3474_v15  ;;  %v3495_v23 = vld [vmem:[%s7345_s27 + $0x28] sm:$0xff]  ;;  %v3468_v9 = vld [vmem:[%s8082_s9 + $0x10] sm:$0xff]  ;;  %v3522_v15 = vld [vmem:[%s8047_s4 + $0x80] sm:$0xff] }
0x1407   : > { %v4948_v32 = vsel %vm2010_vm9, %v4944_v31, -inf  ;;  %v3523_v18 = vld [vmem:[%s8047_s4 + $0x88] sm:$0xff] }
0x1408   : > { %v7023_v25 = vpop.eup %7022  ;;  %v4945_v26 = vsel %vm2010_vm9, %v4943_v24, -inf }
0x1409   : > { %v7025_v27 = vpop.eup %7024  ;;  %4946 = vmax.xlane.f32.xlu1 %v4945_v26  ;;  %v4677_v28 = vmul.f32 %v7023_v25, %v7021_v5  ;;  %v3479_v26 = vld [vmem:[%s8080_s6 + $0x28] sm:$0xff] }
0x140a   : > { %6403 = vmatmul.mubr.msk.f32.vlgmr.msra.gmra.mrb[34].mxu1 %vm1912_vm6, %v6380_v8  ;;  %v4678_v30 = vmul.f32 %v7025_v27, %v7019_v4  ;;  %v3494_v27 = vld [vmem:[%s7345_s27 + $0x20] sm:$0xff] }
0x140b   : > { %6692 = vmatpush3.bf16.msk.msra.mxu1 %vm7485_vm5, %v6687_v21  ;;  %6416 = vmatprep.mubr.msk.f32.mxu1 %vm2010_vm9, %v4677_v28  ;;  %v6727_v21 = vpack.c.bf16 %v3492_v14, %v3490_v34  ;;  %v3472_v34 = vld [vmem:[%s8082_s9 + $0x30] sm:$0xff] }
0x140c   : > { %6419 = vmatprep.subr.mxu1 %v3462_v33 }
0x140d   : > { %4949 = vmax.xlane.f32.xlu1 %v4948_v32  ;;  %v3478_v32 = vld [vmem:[%s8080_s6 + $0x20] sm:$0xff] }
0x140e   : > { %6417 = vmatmul.mubr.msk.f32.vlgmr.msra.gmra.mrb[36].mxu1 %vm2010_vm9, %v4678_v30  ;;  %v3496_v30 = vld [vmem:[%s7345_s27 + $0x30] sm:$0xff] }
0x140f   : > { %6420 = vmatpush3.msra.mxu1 %v3462_v33  ;;  %v3480_v33 = vld [vmem:[%s8080_s6 + $0x30] sm:$0xff] }
0x1496   : > { %v4947_v17 = vpop.xlane.xlu1 %4946 }
0x1497   : > { %v4951_v38 = vsub.f32 %v4943_v24, %v4947_v17  ;;  %v3497_v24 = vld [vmem:[%s7345_s27 + $0x38] sm:$0xff]  ;;  %v6731_v17 = vpack.c.bf16 %v3496_v30, %v3494_v27  ;;  %v3508_v27 = vld [vmem:[%s8047_s4 + $0x10] sm:$0xff]  ;;  %v3526_v30 = vld [vmem:[%s8047_s4 + $0xa0] sm:$0xff] }
0x1498   : > { %v6729_v25 = vpack.c.bf16 %v3497_v24, %v3495_v23  ;;  %v3507_v23 = vld [vmem:[%s8047_s4 + $0x8] sm:$0xff] }
0x1499   : > { %v4953_v40 = vmul.f32 1.442695, %v4951_v38  ;;  %v6715_v38 = vpack.c.bf16 %v3480_v33, %v3478_v32  ;;  %v3527_v32 = vld [vmem:[%s8047_s4 + $0xa8] sm:$0xff] }
0x149a   : > { %v4950_v39 = vpop.xlane.xlu1 %4949  ;;  %v6749_v33 = vpack.c.bf16 %v3527_v32, %v3526_v30 }
0x149b   : > { %v4952_v35 = vsub.f32 %v4944_v31, %v4950_v39  ;;  %v3481_v31 = vld [vmem:[%s8080_s6 + $0x38] sm:$0xff]  ;;  %v3499_v39 = vld [vmem:[%s7345_s27 + $0x48] sm:$0xff] }
0x149c   : > { %v6713_v28 = vpack.c.bf16 %v3481_v31, %v3479_v26  ;;  %v3525_v26 = vld [vmem:[%s8047_s4 + $0x98] sm:$0xff] }
0x149d   : > { %v4955_v41 = vmul.f32 1.442695, %v4952_v35  ;;  %v3501_v35 = vld [vmem:[%s7345_s27 + $0x58] sm:$0xff] }
0x149f   : > { %7026 = vpow2.f32 %v4955_v41  ;;  %v3483_v41 = vld [vmem:[%s8080_s6 + $0x48] sm:$0xff] }
0x14a0   : > { %7028 = vpow2.f32 %v4953_v40  ;;  %v6733_v40 = vpack.c.bf16 %v3501_v35, %v3499_v39  ;;  %v3528_v35 = vld [vmem:[%s8047_s4 + $0xb0] sm:$0xff] }
0x14a9   : > { %v7027_v54 = vpop.eup %7026 }
0x14aa   : > { %v4960_v20 = vsel %vm2010_vm9, %v7027_v54, 0.0  ;;  %v7029_v42 = vpop.eup %7028 }
0x14ab   : > { %4961 = vadd.xlane.f32.xlu1 %v4960_v20  ;;  %v4957_v19 = vsel %vm2010_vm9, %v7029_v42, 0.0  ;;  %v3498_v20 = vld [vmem:[%s7345_s27 + $0x40] sm:$0xff] }
0x14af   : > { %4958 = vadd.xlane.f32.xlu1 %v4957_v19  ;;  %v3500_v19 = vld [vmem:[%s7345_s27 + $0x50] sm:$0xff] }
0x14c0   : > { %6942 = vrot.lane.b32.xlu1 %v7717_v44, %s8078_s1  ;;  %s8083_s1 = sld [smem:[#allocation29_spill]] }
0x14e1   : > { %v6418_v37 = vpop.f32.mrb[36].mxu1 }
0x14e2   : > { %v4758_v46 = vpop.f32.mrb[37].mxu1 }
0x14e3   : > { %6421 = vmatprep.mubr.msk.f32.mxu1 %vm1912_vm6, %v4758_v46  ;;  %v3484_v46 = vld [vmem:[%s8080_s6 + $0x50] sm:$0xff] }
0x14e4   : > { %6422 = vmatmul.mubr.msk.f32.vlgmr.msra.gmra.mrb[34].mxu1 %vm1912_vm6, %v6418_v37  ;;  %v3482_v37 = vld [vmem:[%s8080_s6 + $0x40] sm:$0xff] }
0x1538   : > { %v4962_v47 = vpop.xlane.xlu1 %4961 }
0x1539   : > { %7030 = vrcp.f32 %v4962_v47  ;;  %v6735_v47 = vpack.c.bf16 %v3500_v19, %v3498_v20  ;;  %v3513_v20 = vld [vmem:[%s8047_s4 + $0x38] sm:$0xff]  ;;  %v3530_v19 = vld [vmem:[%s8047_s4 + $0xc0] sm:$0xff] }
0x153c   : > { %v4959_v48 = vpop.xlane.xlu1 %4958 }
0x153d   : > { %7032 = vrcp.f32 %v4959_v48  ;;  %v6719_v48 = vpack.c.bf16 %v3484_v46, %v3482_v37  ;;  %v3531_v37 = vld [vmem:[%s8047_s4 + $0xc8] sm:$0xff] }
0x153e   : > { %v6757_v46 = vpack.c.bf16 %v3531_v37, %v3530_v19 }
0x1540   : > { %v6943_v50 = vpop.permute.xlu1 %6942 }
0x1541   : > { %v6945_v51 = vunpack.i.h.bf16 %v6943_v50  ;;  %v6944_v52 = vunpack.i.l.bf16 %v6943_v50  ;;  %v3503_v50 = vld [vmem:[%s7345_s27 + $0x68] sm:$0xff] }
0x1543   : > { %v6699_v53 = vpack.c.bf16 %v6945_v51, %v6944_v52  ;;  %v7031_v44 = vpop.eup %7030  ;;  %v3505_v51 = vld [vmem:[%s7345_s27 + $0x78] sm:$0xff] }
0x1544   : > { %v4966_v57 = vmul.f32 %v7031_v44, %v7027_v54  ;;  %v3485_v54 = vld [vmem:[%s8080_s6 + $0x58] sm:$0xff]  ;;  %v6737_v52 = vpack.c.bf16 %v3505_v51, %v3503_v50  ;;  %v3502_v44 = vld [vmem:[%s7345_s27 + $0x60] sm:$0xff]  ;;  %v3532_v51 = vld [vmem:[%s8047_s4 + $0xd0] sm:$0xff] }
0x1545   : > { %6701 = vmatprep.subr.msk.bf16.mxu1 %vm7485_vm5, %v6699_v53 }
0x1546   : > { %6704 = vmatpush3.bf16.msk.msra.mxu1 %vm7485_vm5, %v6699_v53  ;;  %v3487_v53 = vld [vmem:[%s8080_s6 + $0x68] sm:$0xff] }
0x1547   : > { %v7033_v55 = vpop.eup %7032  ;;  %6438 = vmatprep.subr.mxu1 %v3463_v13 }
0x1548   : > { %v4965_v56 = vmul.f32 %v7033_v55, %v7029_v42  ;;  %v6717_v42 = vpack.c.bf16 %v3485_v54, %v3483_v41  ;;  %v3512_v54 = vld [vmem:[%s8047_s4 + $0x30] sm:$0xff] }
0x154a   : > { %6435 = vmatprep.mubr.msk.f32.mxu1 %vm2010_vm9, %v4965_v56  ;;  %v3504_v56 = vld [vmem:[%s7345_s27 + $0x70] sm:$0xff] }
0x154b   : > { %6436 = vmatmul.mubr.msk.f32.vlgmr.msra.gmra.mrb[38].mxu1 %vm2010_vm9, %v4966_v57  ;;  %v3486_v57 = vld [vmem:[%s8080_s6 + $0x60] sm:$0xff] }
0x154c   : > { %6439 = vmatpush3.msra.mxu1 %v3463_v13  ;;  %v3489_v13 = vld [vmem:[%s8080_s6 + $0x78] sm:$0xff] }
0x154d   : > { %6726 = vmatprep.subr.bf16.mxu1 %v6725_v36  ;;  %v6721_v55 = vpack.c.bf16 %v3489_v13, %v3487_v53  ;;  %v6777_v36 = vpack.c.bf16 %v3469_v43, %v3468_v9  ;;  %v3516_v13 = vld [vmem:[%s8047_s4 + $0x50] sm:$0xff] }
0x161e   : > { %v6437_v59 = vpop.f32.mrb[38].mxu1 }
0x161f   : > { %v5046_v61 = vpop.f32.mrb[39].mxu1 }
0x1620   : > { %6440 = vmatprep.mubr.msk.f32.mxu1 %vm1912_vm6, %v5046_v61  ;;  %v6739_v61 = vpack.c.bf16 %v3504_v56, %v3502_v44  ;;  %v3517_v44 = vld [vmem:[%s8047_s4 + $0x58] sm:$0xff]  ;;  %v3534_v56 = vld [vmem:[%s8047_s4 + $0xe0] sm:$0xff] }
0x1621   : > { %6441 = vmatmul.mubr.msk.f32.vlgmr.msra.gmra.mrb[34].mxu1 %vm1912_vm6, %v6437_v59  ;;  %v3488_v59 = vld [vmem:[%s8080_s6 + $0x70] sm:$0xff] }
0x1622   : > { %6728 = vmatpush1.bf16.msra.mxu1 %v6727_v21  ;;  %v6723_v62 = vpack.c.bf16 %v3488_v59, %v3486_v57  ;;  %v6741_v21 = vpack.c.bf16 %v3523_v18, %v3522_v15  ;;  %v3535_v57 = vld [vmem:[%s8047_s4 + $0xe8] sm:$0xff] }
0x1623   : > { %6730 = vmatprep.subr.bf16.mxu1 %v6729_v25  ;;  %v3524_v25 = vld [vmem:[%s8047_s4 + $0x90] sm:$0xff]  ;;  %v6765_v59 = vpack.c.bf16 %v3535_v57, %v3534_v56 }
0x1624   : > { %v6745_v31 = vpack.c.bf16 %v3525_v26, %v3524_v25 }
0x1626   : > { %6732 = vmatpush1.bf16.msra.mxu1 %v6731_v17  ;;  %v3510_v17 = vld [vmem:[%s8047_s4 + $0x20] sm:$0xff] }
0x1627   : > { %6734 = vmatprep.subr.bf16.mxu1 %v6733_v40  ;;  %v3529_v40 = vld [vmem:[%s8047_s4 + $0xb8] sm:$0xff] }
0x1628   : > { %v6753_v41 = vpack.c.bf16 %v3529_v40, %v3528_v35 }
0x162a   : > { %6736 = vmatpush1.bf16.msra.mxu1 %v6735_v47  ;;  %v3514_v47 = vld [vmem:[%s8047_s4 + $0x40] sm:$0xff] }
0x162b   : > { %6738 = vmatprep.subr.bf16.mxu1 %v6737_v52  ;;  %v3533_v52 = vld [vmem:[%s8047_s4 + $0xd8] sm:$0xff] }
0x162c   : > { %v6761_v53 = vpack.c.bf16 %v3533_v52, %v3532_v51 }
0x162e   : > { %6740 = vmatpush1.bf16.msra.mxu1 %v6739_v61  ;;  %v3518_v61 = vld [vmem:[%s8047_s4 + $0x60] sm:$0xff] }
0x16f4   : > { %v6442_v29 = vpop.f32.mrb[34].mxu1 }
0x16f5   : > { %v5139_v63 = vadd.f32 %v6442_v29, %v7696_v49  ;;  %v5127_v0 = vpop.f32.mrb[35].mxu1  ;;  %v7153_v29 = vmov 0.0  }
0x16f6   : > { %v5138_v1 = vadd.f32 %v5127_v0, %v7689_v45  ;;  %5393 = vmatprep.mubr.f32.mxu1 %v7153_v29 }
0x16f8   : > { %v6705_v2 = vpack.c.bf16 %v5139_v63, %v5138_v1  ;;  %v7154_v63 = vmov 0.0|0.0  }
0x16f9   : > { %6773 = vmatprep.subr.bf16.mxu1 %v7154_v63 }
0x16fa   : > { %6706 = vmatprep.subr.bf16.mxu0 %v6705_v2 }
0x16fb   : > { %6708 = vmatpush3.bf16.msra.mxu0 %v6705_v2 }
0x16fc   : > { %6710 = vmatprep.subr.bf16.mxu0 %v6709_v12  ;;  %v3473_v12 = vld [vmem:[%s8082_s9 + $0x38] sm:$0xff] }
0x16fd   : > { %v6783_v14 = vpack.c.bf16 %v3473_v12, %v3472_v34 }
0x16fe   : > { %6448 = vmatmul.mubr.msk.f32.vlgmr.msra.gmra.mrb[24].mxu0 %vm1279_vm1, %v3539_v16 }
0x16ff   : > { %6712 = vmatpush1.bf16.msra.mxu0 %v6711_v22  ;;  %5322 = vmatprep.mubr.f32.mxu0 %v7153_v29  ;;  %v3506_v22 = vld [vmem:[%s8047_s4] sm:$0xff] }
0x1700   : > { %6714 = vmatprep.subr.bf16.mxu0 %v6713_v28  ;;  %v6743_v24 = vpack.c.bf16 %v3507_v23, %v3506_v22 }
0x1703   : > { %6716 = vmatpush1.bf16.msra.mxu0 %v6715_v38  ;;  %v3511_v38 = vld [vmem:[%s8047_s4 + $0x28] sm:$0xff] }
0x1704   : > { %6718 = vmatprep.subr.bf16.mxu0 %v6717_v42  ;;  %v6751_v39 = vpack.c.bf16 %v3511_v38, %v3510_v17  ;;  %v6755_v42 = vpack.c.bf16 %v3513_v20, %v3512_v54 }
0x1707   : > { %6720 = vmatpush1.bf16.msra.mxu0 %v6719_v48  ;;  %v3515_v48 = vld [vmem:[%s8047_s4 + $0x48] sm:$0xff] }
0x1708   : > { %6722 = vmatprep.subr.bf16.mxu0 %v6721_v55  ;;  %v6759_v50 = vpack.c.bf16 %v3515_v48, %v3514_v47  ;;  %v6763_v55 = vpack.c.bf16 %v3517_v44, %v3516_v13 }
0x170b   : > { %6724 = vmatpush1.bf16.msra.mxu0 %v6723_v62  ;;  %v3519_v62 = vld [vmem:[%s8047_s4 + $0x68] sm:$0xff] }
0x170c   : > { %6742 = vmatprep.subr.bf16.mxu0 %v6741_v21 }
0x17d1   : > { %v6449_v3 = vpop.f32.mrb[24].mxu0 }
0x17d2   : > { %5222 = vrot.lane.b32.xlu0 %v6449_v3, %s7152_s3  ;;  %v5212_v4 = vpop.f32.mrb[25].mxu0  ;;  %v5854_v3 = vld [vmem:[%s8081_s7] ss:$0 sm:$0xff]  ;;  %s1244_s3 = sand.u32 1, %s7098_s23  }
0x17d3   : > { %s5733_s7 = sshll.u32 %s1244_s3, 3  ;;  %s5561_s8 = scalar_lea.sflag [#allocation3], %s1244_s3 }
0x1844   : > { %v5223_v49 = vpop.permute.xlu0 %5222 }
0x1845   : > { %v7850_v60 = vsel %vm1426_vm0, %v5212_v4, %v5223_v49  ;;  %v3466_v49 = vld [vmem:[%s8082_s9] sm:$0xff] }
0x1846   : > { %v5227_v45 = vsel %vm5226_vm10, %v7850_v60, 0.0 }
0x1847   : > { %5228 = vadd.xlane.f32.xlu0 %v5227_v45  ;;  %v3467_v45 = vld [vmem:[%s8082_s9 + $0x8] sm:$0xff] }
0x18d4   : > { %v5229_v5 = vpop.xlane.xlu0 %5228 }
0x18d5   : > { %v5231_v58 = vmul.f32 0.015625, %v5229_v5  ;;  %v5855_v5 = vld [vmem:[%s8083_s1] ss:$0 sm:$0xff]  ;;  %s5862_s1 = sshll.u32 %s7383_s0, 7  ;;  %s7156_s0 = smov [#allocation2]  }
0x18d6   : > { %s7942_s6 = scalar_lea.hbm %s7360_s20, %s5862_s1 }
0x18d7   : > { %v7855_v6 = vsub.f32 %v7850_v60, %v5231_v58 }
0x18d9   : > { %v5233_v7 = vmul.f32 %v7855_v6, %v7855_v6 }
0x18db   : > { %v5234_v8 = vsel %vm5226_vm10, %v5233_v7, 0.0  ;;  %v6774_v7 = vpack.c.bf16 %v3467_v45, %v3466_v49 }
0x18dc   : > { %5235 = vadd.xlane.f32.xlu1 %v5234_v8 }
0x1969   : > { %v5236_v0 = vpop.xlane.xlu1 %5235 }
0x196a   : > { %v5237_v1 = vmul.f32 0.015625, %v5236_v0  ;;  %v3537_v0 = vld [vmem:[%s8047_s4 + $0xf8] sm:$0xff] }
0x196c   : > { %v5238_v2 = vadd.f32 1e-05, %v5237_v1 }
0x196e   : > { %7034 = vrsqrt.f32 %v5238_v2  ;;  %v3520_v2 = vld [vmem:[%s8047_s4 + $0x70] sm:$0xff] }
0x1978   : > { %v7035_v16 = vpop.eup %7034 }
0x1979   : > { %v5240_v4 = vmul.f32 %v7035_v16, %v7855_v6  ;;  %v3470_v6 = vld [vmem:[%s8082_s9 + $0x20] sm:$0xff]  ;;  %v3521_v16 = vld [vmem:[%s8047_s4 + $0x78] sm:$0xff] }
0x197a   : > { %v6780_v11 = vpack.c.bf16 %v3471_v10, %v3470_v6 }
0x197b   : > { %v5247_v58 = vmul.f32 %v5854_v3, %v5240_v4  ;;  %v6771_v3 = vpack.c.bf16 %v3521_v16, %v3520_v2 }
0x197d   : > { %v5254_v8 = vadd.f32 %v5855_v5, %v5247_v58 }
0x197f   : > { %5856 = vmatmul.mubr.msk.f32.vlgmr.msra.gmra.mrb[26].mxu0 %vm5226_vm10, %v5254_v8  ;;  %5857 = vmatmul.mubr.msk.f32.vlgmr.msra.gmra.mrb[40].mxu1 %vm5226_vm10, %v5254_v8 }
0x1980   : > { %6775 = vmatpush3.bf16.msra.mxu1 %v6774_v7  ;;  %6466 = vmatprep.mubr.msk.f32.mxu1 %vm7155_vm11, %v7153_v29  ;;  %v6767_v29 = vpack.c.bf16 %v3519_v62, %v3518_v61 }
0x1981   : > { %6776 = vmatprep.subr.bf16.mxu1 %v7154_v63  ;;  %6744 = vmatpush3.bf16.msra.mxu0 %v6743_v24 }
0x1982   : > { %6746 = vmatprep.subr.bf16.mxu0 %v6745_v31 }
0x1984   : > { %6778 = vmatpush3.bf16.msra.mxu1 %v6777_v36 }
0x1985   : > { %6779 = vmatprep.subr.bf16.mxu1 %v7154_v63 }
0x1988   : > { %6781 = vmatpush3.bf16.msra.mxu1 %v6780_v11 }
0x1989   : > { %6782 = vmatprep.subr.bf16.mxu1 %v7154_v63  ;;  %v3536_v63 = vld [vmem:[%s8047_s4 + $0xf0] sm:$0xff] }
0x198a   : > { %v6769_v1 = vpack.c.bf16 %v3537_v0, %v3536_v63 }
0x198c   : > { %6784 = vmatpush3.bf16.msra.mxu1 %v6783_v14 }
0x198f   : > { %6467 = vmatmul.mubr.msk.f32.vlgmr.msra.gmra.mrb[42].mxu1 %vm5226_vm10, %v7850_v60  ;;  %v3509_v60 = vld [vmem:[%s8047_s4 + $0x18] sm:$0xff]  ;;  %s1246_s4 = scalar_lea.vmem [#allocation2], %s5733_s7  ;;  %s7048_s7 = sshll.u32 %s7156_s0, 4  ;;  %s7049_s7 = int_to_ptr.vmem [resolvable:$false] %s7048_s7 }
0x1990   : > { %v6747_v28 = vpack.c.bf16 %v3509_v60, %v3508_v27  ;;  %s5574_s5 = sshll.u32 %s1246_s4, 4  ;;  %s7050_s10 = scalar_lea.vmem %s7049_s7, 256  ;;  %s7944_s5 = int_to_ptr.vmem [resolvable:$true] %s5574_s5 }
0x1991   : > { %s7044_s9 = scalar_lea.vmem %s7944_s5, 128  ;;  %p7051_p0 = scmp.lt.s32.totalorder %s7944_s5, %s7049_s7 }
0x1992   : > { %6748 = vmatpush3.bf16.msra.mxu0 %v6747_v28  ;;  %p7045_p11 = scmp.ne.s32.totalorder %s7944_s5, %s7044_s9  ;;  %p7052_p1 = scmp.lt.s32.totalorder %s7050_s10, %s7044_s9 }
0x1993   : > { %6750 = vmatprep.subr.bf16.mxu0 %v6749_v33 }
0x1994   : > { %p7046_p12 = pnand %p7045_p11, %p7400_p5  ;;  %p7053_p2 = por %p7052_p1, %p7051_p0 }
0x1996   : > { %6752 = vmatpush3.bf16.msra.mxu0 %v6751_v39  ;;  %p7047_p13 = pneg %p7046_p12 }
0x1997   : > { %6754 = vmatprep.subr.bf16.mxu0 %v6753_v41 }
0x1998   : > { %p7054_p3 = pnand %p7053_p2, %p7047_p13 }
0x199a   : > { %6756 = vmatpush3.bf16.msra.mxu0 %v6755_v42 }
0x199b   : > { %6758 = vmatprep.subr.bf16.mxu0 %v6757_v46 }
0x199e   : > { %6760 = vmatpush3.bf16.msra.mxu0 %v6759_v50 }
0x199f   : > { %6762 = vmatprep.subr.bf16.mxu0 %v6761_v53 }
0x19a2   : > { %6764 = vmatpush3.bf16.msra.mxu0 %v6763_v55 }
0x19a3   : > { %6766 = vmatprep.subr.bf16.mxu0 %v6765_v59 }
0x19a6   : > { %6768 = vmatpush3.bf16.msra.mxu0 %v6767_v29 }
0x19a7   : > { %6770 = vmatprep.subr.bf16.mxu0 %v6769_v1 }
0x19aa   : > { %6772 = vmatpush3.bf16.msra.mxu0 %v6771_v3 }
0x1a52   : > { %v5324_v4 = vpop.f32.mrb[26].mxu0  ;;  %v5395_v49 = vpop.f32.mrb[40].mxu1 }
0x1a53   : > { %v5858_v45 = vmul.f32 -1.442695, %v5395_v49  ;;  %v5326_v5 = vpop.f32.mrb[27].mxu0  ;;  %v5397_v58 = vpop.f32.mrb[41].mxu1 }
0x1a54   : > { %v5859_v7 = vmul.f32 -1.442695, %v5397_v58 }
0x1a55   : > { %7036 = vpow2.f32 %v5858_v45 }
0x1a56   : > { %7038 = vpow2.f32 %v5859_v7 }
0x1a5f   : > { %v7037_v8 = vpop.eup %7036 }
0x1a60   : > { %v7039_v9 = vpop.eup %7038  ;;  %v5406_v43 = vadd.f32 1.0, %v7037_v8 }
0x1a61   : > { %v5407_v36 = vadd.f32 1.0, %v7039_v9 }
0x1a62   : > { %7040 = vrcp.f32 %v5406_v43  ;;  %v5555_v6 = vpop.f32.mrb[42].mxu1 }
0x1a63   : > { %7042 = vrcp.f32 %v5407_v36  ;;  %v6468_v10 = vpop.f32.mrb[43].mxu1 }
0x1a6c   : > { %v7041_v11 = vpop.eup %7040 }
0x1a6d   : > { %v7043_v34 = vpop.eup %7042  ;;  %v5412_v12 = vmul.f32 %v7041_v11, %v5395_v49 }
0x1a6e   : > { %v5413_v14 = vmul.f32 %v7043_v34, %v5397_v58 }
0x1a6f   : > { %v5414_v15 = vmul.f32 %v5412_v12, %v5324_v4 }
0x1a70   : > { %v5415_v18 = vmul.f32 %v5413_v14, %v5326_v5 }
0x1a72   : > { %5480 = vmatprep.mubr.f32.mxu0 %v5415_v18 }
0x1a73   : > { %5481 = vmatmul.mubr.f32.vlgmr.msra.gmra.mrb[28].mxu0 %v5414_v15 }
0x1b46   : > { %v6094_v21 = vpop.f32.mrb[28].mxu0 }
0x1b47   : > { %v6095_v22 = vpop.f32.mrb[29].mxu0 }
0x1b48   : > { %v6096_v23 = vadd.f32 %v6095_v22, %v6094_v21 }
0x1b4a   : > { %v5556_v24 = vadd.f32 %v6096_v23, %v5555_v6 }
0x1b4c   : > { %5559 = vst.msk [vmem:[%s1246_s4] sm:$0xff] %vm5226_vm10, %v5556_v24 }
0x1b4d   : > { %7057 = shalt.err (!%p7054_p3)
}
0x1b4e   : > { %s7058_s4 = scalar_lea.hbm %s7942_s6, 128  ;;  %s7062_s3 = scalar_lea.hbm %s7360_s20, 256 }
0x1b4f   : > { %p7059_p4 = scmp.ne.s32.totalorder %s7942_s6, %s7058_s4  ;;  %p7063_p9 = scmp.lt.u32.totalorder %s7942_s6, %s7360_s20 }
0x1b50   : > { %p7064_p10 = scmp.lt.u32.totalorder %s7062_s3, %s7058_s4  ;;  %p7066_p12 = scmp.lt.u32.totalorder %s7058_s4, %s7942_s6 }
0x1b51   : > { %p7060_p7 = pnand %p7059_p4, %p7400_p5 }
0x1b52   : > { %p7065_p11 = por %p7064_p10, %p7063_p9 }
0x1b53   : > { %p7061_p8 = pneg %p7060_p7 }
0x1b54   : > { %p7067_p0 = por %p7066_p12, %p7065_p11 }
0x1b56   : > { %p7068_p13 = pnand %p7067_p0, %p7061_p8 }
0x1b58   : > { %7071 = shalt.err (!%p7068_p13)
}
0x1b59   : > { %6799 = dma.vmem_to_hbm [thread:$0]  (%p7400_p5), %s7944_s5, 128, %s7942_s6, %s5561_s8  }
0x1b5a PF: > { %p6805_p1 = scmp.ge.s32.totalorder %s7106_s28, 2  ;;  %s5586_s10 = sand.u32 1, %s7094_s22  }
0x1b5b   : > { %s5587_s9 = scalar_lea.sflag [#allocation3], %s5586_s10 }
0x1b5c   : > { %p6802_p2 = pnand %p6805_p1, %p7404_p6 }
0x1b5e   : > { %7089 = dma.done.wait (!%p6802_p2), %s5587_s9, 128  }
0x1b5f   : > { %7091 = vsyncadd (!%p6802_p2), %s5587_s9, 4294967168  ;;  %p89_p3 = scmp.ge.s32.totalorder %s7387_s2, 4   ;;  %s8084_s22 = smov %s7098_s23 }
0x1b60   : > { %s8085_s23 = smov %s7102_s26  ;;  %s8086_s26 = smov %s7398_s11 }
0x1b61   : > { %s8087_s28 = smov %s7387_s2  ;;  %91 = sbr.rel (!%p89_p3) target bundleno = 83 (0x53), region = 265 }
0x1b68   :  { %5592 = vsyncpa [#allocation3], 1 }
0x1b69   :  { %5594 = vsyncpa [#allocation3 + $0x1], 1 }

</bundles_post_ra>
